<compile_context>
chip_gen: v6e
topology: v6e:2x2x1
jax: 0.10.0
libtpu: 0.0.40
codegen_flags: <defaults>
</compile_context>

<pallas_src>
import functools
import math

import jax
import jax.numpy as jnp
from jax.experimental import pallas as pl
from jax.experimental.pallas import tpu as pltpu


class Config:
    POOL_SIZE = 4          # pooled ROI spatial size (conv1 kernel size)
    IMAGE_MAX_DIM = 64     # input image size in pixels
    IMAGES_PER_GPU = 2     # batch
    NUM_CLASSES = 8


# --------------------------------------------------------------------------
# Fused Pallas kernel: conv1+BN+ReLU -> conv2+BN+ReLU -> heads (+softmax)
# --------------------------------------------------------------------------

def _fused_head_kernel(x_ref, w1_ref, pk_ref, w2_ref, wh_ref, bh_ref,
                       out_ref, acc_ref, *, num_classes):
    k = pl.program_id(0)

    @pl.when(k == 0)
    def _():
        acc_ref[...] = jnp.zeros_like(acc_ref)

    # conv1 (PxP conv == matmul over K = 256*P*P).  int8 weight values are
    # exact when cast to bf16 (|q| <= 127); the per-output-channel dequant
    # scale is applied once in the epilogue.  bf16 x bf16 -> f32 accumulation.
    acc_ref[...] += jnp.dot(x_ref[...], w1_ref[...].astype(jnp.bfloat16),
                            preferred_element_type=jnp.float32)

    @pl.when(k == pl.num_programs(0) - 1)
    def _():
        eps = 1e-3
        pk = pk_ref[...]                       # (8, hid) packed epilogue params
        s1, b1, g1, beta1 = pk[0:1], pk[1:2], pk[2:3], pk[3:4]
        s2, b2, g2, beta2 = pk[4:5], pk[5:6], pk[6:7], pk[7:8]

        # conv1 dequant + bias + BatchNorm(train) + ReLU
        y = acc_ref[...] * s1 + b1
        mean = jnp.mean(y, axis=0, keepdims=True)
        var = jnp.mean((y - mean) ** 2, axis=0, keepdims=True)
        h1 = jnp.maximum(
            g1 * (y - mean) * jax.lax.rsqrt(var + eps) + beta1, 0.0)

        # conv2 (1x1 conv == matmul) dequant + bias + BatchNorm(train) + ReLU
        y2 = jnp.dot(h1.astype(jnp.bfloat16), w2_ref[...].astype(jnp.bfloat16),
                     preferred_element_type=jnp.float32) * s2 + b2
        mean2 = jnp.mean(y2, axis=0, keepdims=True)
        var2 = jnp.mean((y2 - mean2) ** 2, axis=0, keepdims=True)
        shared = jnp.maximum(
            g2 * (y2 - mean2) * jax.lax.rsqrt(var2 + eps) + beta2, 0.0)

        # Fused heads, one matmul into a lane-dense slab:
        #   lanes [0:C) = logits, [C:2C) = probs, [2C:6C) = bbox deltas, rest 0.
        raw = jnp.dot(shared.astype(jnp.bfloat16), wh_ref[...],
                      preferred_element_type=jnp.float32) + bh_ref[...]

        c = num_classes
        col = jax.lax.broadcasted_iota(jnp.int32, raw.shape, 1)
        prob_lane = (col >= c) & (col < 2 * c)
        # Softmax over the C real class lanes only.  Mask BEFORE the exp so
        # bbox / logit lanes never produce a transient inf.
        masked = jnp.where(prob_lane, raw, -1e30)
        m = jnp.max(masked, axis=-1, keepdims=True)
        e = jnp.exp(masked - m)                # masked lanes underflow to 0
        s = jnp.sum(e, axis=-1, keepdims=True)
        out_ref[...] = jnp.where(prob_lane, e / s, raw)


def _pick_tk(k1, max_tk=2048):
    """Largest multiple of 128 that divides k1 and is <= max_tk."""
    best = 128
    for t in range(128, min(max_tk, k1) + 1, 128):
        if k1 % t == 0:
            best = t
    return best


def fused_fpn_head(x_flat, prep, num_classes):
    """x_flat: [N, 256*P*P] bf16.  Returns lane-dense slab [N, SLAB] f32."""
    n, k1 = x_flat.shape
    hid = prep["w1_q"].shape[1]
    slab = prep["wh_bf16"].shape[1]
    tk = _pick_tk(k1)                          # int8 weight tile <= 2 MiB
    assert k1 % tk == 0 and tk % 128 == 0 and n % 8 == 0
    nk = k1 // tk
    # TODO(synk): N-tiled grid + two-pass BN stats for realistic ROI counts.

    kernel = functools.partial(_fused_head_kernel, num_classes=num_classes)

    flops = 2 * n * (k1 * hid + hid * hid + hid * slab)
    bytes_accessed = (n * k1 * 2                        # activations (bf16)
                      + (k1 + hid) * hid                # int8 w1 + w2
                      + hid * slab * 2                  # bf16 head weights
                      + 8 * hid * 4 + slab * 4          # packed params + head bias
                      + n * slab * 4)                   # output slab

    return pl.pallas_call(
        kernel,
        out_shape=jax.ShapeDtypeStruct((n, slab), jnp.float32),
        grid_spec=pltpu.PrefetchScalarGridSpec(
            num_scalar_prefetch=0,
            grid=(nk,),
            in_specs=[
                pl.BlockSpec((n, tk), lambda k: (0, k)),      # x  (K-streamed, bf16)
                pl.BlockSpec((tk, hid), lambda k: (k, 0)),    # w1 (K-streamed, int8)
                pl.BlockSpec((8, hid), lambda k: (0, 0)),     # packed scale/bias/BN
                pl.BlockSpec((hid, hid), lambda k: (0, 0)),   # w2 (resident, int8)
                pl.BlockSpec((hid, slab), lambda k: (0, 0)),  # head weights (bf16)
                pl.BlockSpec((1, slab), lambda k: (0, 0)),    # head bias
            ],
            out_specs=pl.BlockSpec((n, slab), lambda k: (0, 0)),
            scratch_shapes=[pltpu.VMEM((n, hid), jnp.float32)],
        ),
        compiler_params=pltpu.CompilerParams(
            dimension_semantics=("arbitrary",),
            vmem_limit_bytes=32 * 1024 * 1024),
        cost_estimate=pl.CostEstimate(
            flops=flops,
            transcendentals=n * num_classes + 2 * hid,
            bytes_accessed=bytes_accessed),
    )(x_flat, prep["w1_q"], prep["pk"], prep["w2_q"],
      prep["wh_bf16"], prep["bh"])


# --------------------------------------------------------------------------
# transfer_function (ROI-independent -> hoisted out of the forward hot path)
# --------------------------------------------------------------------------

def _transfer_kernel(wd_ref, wt1_ref, bt1_ref, wt2_ref, bt2_ref, o_ref):
    """Linear(1024,1024)+LeakyReLU+Linear(1024,256)+LeakyReLU on w_det rows."""
    h = jnp.dot(wd_ref[...].astype(jnp.bfloat16), wt1_ref[...],
                preferred_element_type=jnp.float32) + bt1_ref[...]
    h = jnp.where(h > 0, h, 0.01 * h)          # LeakyReLU(negative_slope=0.01)
    o = jnp.dot(h.astype(jnp.bfloat16), wt2_ref[...],
                preferred_element_type=jnp.float32) + bt2_ref[...]
    o_ref[...] = jnp.where(o > 0, o, 0.01 * o)


def compute_mask_weights(prep):
    """detection_weights == 'cls': mask_weights = transfer_function(wc)."""
    c, hid = prep["wc"].shape
    out = prep["wt2_bf16"].shape[1]
    full = lambda *s: pl.BlockSpec(s, lambda i: (0,) * len(s))
    return pl.pallas_call(
        _transfer_kernel,
        out_shape=jax.ShapeDtypeStruct((c, out), jnp.float32),
        grid_spec=pltpu.PrefetchScalarGridSpec(
            num_scalar_prefetch=0,
            grid=(1,),
            in_specs=[full(c, hid), full(hid, hid), full(1, hid),
                      full(hid, out), full(1, out)],
            out_specs=full(c, out),
        ),
        compiler_params=pltpu.CompilerParams(
            dimension_semantics=("arbitrary",),
            vmem_limit_bytes=32 * 1024 * 1024),
    )(prep["wc"], prep["wt1_bf16"], prep["bt1"], prep["wt2_bf16"], prep["bt2"])


# --------------------------------------------------------------------------
# ROIAlign glue (plain JAX): TF-style crop_and_resize + per-level routing.
# --------------------------------------------------------------------------

def crop_and_resize(image, boxes, box_ind, crop_size):
    """image: [B, C, H, W]; boxes: [Nb, 4] normalized (y1, x1, y2, x2)."""
    _, C, H, W = image.shape
    P = crop_size
    y1, x1, y2, x2 = boxes[:, 0], boxes[:, 1], boxes[:, 2], boxes[:, 3]
    idx = jnp.arange(P, dtype=jnp.float32)
    if P > 1:
        ys = y1[:, None] * (H - 1) + idx[None, :] * ((y2 - y1) * (H - 1) / (P - 1))[:, None]
        xs = x1[:, None] * (W - 1) + idx[None, :] * ((x2 - x1) * (W - 1) / (P - 1))[:, None]
    else:
        ys = 0.5 * (y1 + y2)[:, None] * (H - 1) * jnp.ones((1, P))
        xs = 0.5 * (x1 + x2)[:, None] * (W - 1) * jnp.ones((1, P))

    y_valid = (ys >= 0) & (ys <= H - 1)
    x_valid = (xs >= 0) & (xs <= W - 1)

    y0f = jnp.floor(ys)
    x0f = jnp.floor(xs)
    wy = ys - y0f
    wx = xs - x0f
    y0 = jnp.clip(y0f, 0, H - 1).astype(jnp.int32)
    y1i = jnp.clip(y0f + 1, 0, H - 1).astype(jnp.int32)
    x0 = jnp.clip(x0f, 0, W - 1).astype(jnp.int32)
    x1i = jnp.clip(x0f + 1, 0, W - 1).astype(jnp.int32)

    img = image[box_ind]                                    # [Nb, C, H, W]
    nb = img.shape[0]
    bi = jnp.arange(nb)[:, None, None, None]
    ci = jnp.arange(C)[None, :, None, None]

    def gather(yi, xi):
        return img[bi, ci, yi[:, None, :, None], xi[:, None, None, :]]

    v00 = gather(y0, x0)
    v01 = gather(y0, x1i)
    v10 = gather(y1i, x0)
    v11 = gather(y1i, x1i)
    wy_ = wy[:, None, :, None]
    wx_ = wx[:, None, None, :]
    top = v00 * (1 - wx_) + v01 * wx_
    bot = v10 * (1 - wx_) + v11 * wx_
    out = top * (1 - wy_) + bot * wy_
    valid = y_valid[:, None, :, None] & x_valid[:, None, None, :]
    return jnp.where(valid, out, 0.0)                        # extrapolation = 0


def roi_align(feature_maps, rois, config, pool_size):
    B, R, _ = rois.shape
    rois_flat = rois.reshape(B * R, 4)
    x_1, y_1, x_2, y_2 = (rois_flat[:, 0], rois_flat[:, 1],
                          rois_flat[:, 2], rois_flat[:, 3])
    roi_level = jnp.log(jnp.sqrt((y_2 - y_1) * (x_2 - x_1)) / 224.0) / math.log(2.0)
    roi_level = jnp.clip(jnp.round(roi_level) + 4.0, 2.0, 5.0)

    boxes_norm = rois_flat / float(config.IMAGE_MAX_DIM)
    boxes_yx = boxes_norm[:, jnp.array([1, 0, 3, 2])]        # (y1, x1, y2, x2)
    # Original code: box_indices = ixx.view(-1).int() * 0  -> always image 0.
    box_ind = jnp.zeros((B * R,), jnp.int32)

    pooled = jnp.zeros((B * R, 256, pool_size, pool_size), jnp.float32)
    for i, level in enumerate(range(2, 6)):
        crops = crop_and_resize(feature_maps[i], boxes_yx, box_ind, pool_size)
        sel = (roi_level == float(level))[:, None, None, None]
        pooled = jnp.where(sel, crops, pooled)
    return pooled.reshape(B, R, 256, pool_size, pool_size)


# --------------------------------------------------------------------------
# Parameter init (PyTorch-layout f32) + one-time preparation (int8/bf16, slab)
# --------------------------------------------------------------------------

def init_params(key, num_classes, pool_size):
    k = jax.random.split(key, 16)
    k1 = 256 * pool_size * pool_size
    s = 0.02
    p = {}
    # conv1 weight [1024, 256, P, P] -> flatten (Cin, kh, kw) -> [K1, 1024]
    p["w1"] = (jax.random.normal(k[0], (1024, 256, pool_size, pool_size)) * s
               ).reshape(1024, k1).T
    p["b1"] = jax.random.normal(k[1], (1, 1024)) * s
    p["g1"] = 1.0 + jax.random.normal(k[2], (1, 1024)) * s
    p["beta1"] = jax.random.normal(k[3], (1, 1024)) * s
    # conv2 (1x1) weight [1024, 1024, 1, 1] -> [1024, 1024] transposed
    p["w2"] = (jax.random.normal(k[4], (1024, 1024, 1, 1)) * s).reshape(1024, 1024).T
    p["b2"] = jax.random.normal(k[5], (1, 1024)) * s
    p["g2"] = 1.0 + jax.random.normal(k[6], (1, 1024)) * s
    p["beta2"] = jax.random.normal(k[7], (1, 1024)) * s
    # Linear weights stored PyTorch-style [out, in]
    p["wc"] = jax.random.normal(k[8], (num_classes, 1024)) * s
    p["bc"] = jax.random.normal(k[9], (1, num_classes)) * s
    p["wb"] = jax.random.normal(k[10], (num_classes * 4, 1024)) * s
    p["bb"] = jax.random.normal(k[11], (1, num_classes * 4)) * s
    p["wt1"] = jax.random.normal(k[12], (1024, 1024)) * s
    p["bt1"] = jax.random.normal(k[13], (1, 1024)) * s
    p["wt2"] = jax.random.normal(k[14], (256, 1024)) * s
    p["bt2"] = jax.random.normal(k[15], (1, 256)) * s
    return {kk: v.astype(jnp.float32) for kk, v in p.items()}


def _quantize_per_output_channel(w):
    """Symmetric per-output-channel int8 quantization of [K, out] weights."""
    amax = jnp.max(jnp.abs(w), axis=0, keepdims=True)       # (1, out)
    scale = jnp.maximum(amax, 1e-12) / 127.0
    q = jnp.clip(jnp.round(w / scale), -127.0, 127.0).astype(jnp.int8)
    return q, scale.astype(jnp.float32)


def prepare_params(params, config):
    """One-time: int8-quantize streamed weights, pack epilogue params, build slab."""
    C = config.NUM_CLASSES
    slab = max(128, ((6 * C + 127) // 128) * 128)
    prep = {}
    prep["w1_q"], s1 = _quantize_per_output_channel(params["w1"])   # [K1,1024] int8
    prep["w2_q"], s2 = _quantize_per_output_channel(params["w2"])   # [1024,1024] int8
    # Packed epilogue params (one DMA): rows = s1,b1,g1,beta1,s2,b2,g2,beta2.
    prep["pk"] = jnp.concatenate(
        [s1, params["b1"], params["g1"], params["beta1"],
         s2, params["b2"], params["g2"], params["beta2"]], axis=0)   # (8, 1024) f32
    # Fused head weight: [wc^T | wc^T | wb^T | 0] -> [1024, slab] (lane-dense)
    wc_t = params["wc"].T                                     # [1024, C]
    wb_t = params["wb"].T                                     # [1024, 4C]
    pad_cols = slab - 6 * C
    wh = jnp.concatenate(
        [wc_t, wc_t, wb_t, jnp.zeros((1024, pad_cols), jnp.float32)], axis=1)
    bh = jnp.concatenate(
        [params["bc"], params["bc"], params["bb"],
         jnp.zeros((1, pad_cols), jnp.float32)], axis=1)
    prep["wh_bf16"] = wh.astype(jnp.bfloat16)
    prep["bh"] = bh
    # transfer MLP (ROI-independent); w_det = wc ('cls' branch), kept f32.
    prep["wc"] = params["wc"]
    prep["wt1_bf16"] = params["wt1"].T.astype(jnp.bfloat16)   # [1024, 1024]
    prep["bt1"] = params["bt1"]
    prep["wt2_bf16"] = params["wt2"].T.astype(jnp.bfloat16)   # [1024, 256]
    prep["bt2"] = params["bt2"]
    return prep


# --------------------------------------------------------------------------
# Forward pass
# --------------------------------------------------------------------------

def fpn_classifier_graph_forward(prep, feature_maps, rpn_rois, config,
                                 mask_weights=None):
    B = config.IMAGES_PER_GPU
    P = config.POOL_SIZE
    C = config.NUM_CLASSES

    pooled = roi_align(feature_maps, rpn_rois, config, P)    # [B, R, 256, P, P]
    R = pooled.shape[1]
    # Cast activations to bf16 once here (halves the x stream; keeps the
    # kernel's K loop purely MXU + DMA).
    x = pooled.reshape(B * R, 256 * P * P).astype(jnp.bfloat16)

    slab = fused_fpn_head(x, prep, C)                        # [B*R, SLAB]
    mrcnn_class_logits = slab[:, 0:C].reshape(B, R, C)
    mrcnn_probs = slab[:, C:2 * C].reshape(B, R, C)
    mrcnn_bbox = slab[:, 2 * C:6 * C].reshape(B, R, C, 4)

    if mask_weights is None:
        # ROI-independent; callers should precompute once and pass it in.
        mask_weights = compute_mask_weights(prep)

    return mrcnn_class_logits, mrcnn_probs, mrcnn_bbox, mask_weights


if __name__ == "__main__":
    cfg = Config()
    key = jax.random.PRNGKey(0)
    kp, kf, kr1, kr2 = jax.random.split(key, 4)
    params = init_params(kp, cfg.NUM_CLASSES, cfg.POOL_SIZE)
    prep = prepare_params(params, cfg)

    # Hoisted: mask_weights depends only on params -> compute once and cache.
    mask_weights = jax.block_until_ready(compute_mask_weights(prep))

    B = cfg.IMAGES_PER_GPU
    R = 8  # ROIs per image -> B*R = 16 rows (multiple of 8 for TPU tiling)

    fkeys = jax.random.split(kf, 4)
    feature_maps = [
        jax.random.normal(
            fkeys[i],
            (B, 256, cfg.IMAGE_MAX_DIM // (2 ** lvl),
             cfg.IMAGE_MAX_DIM // (2 ** lvl)),
        ).astype(jnp.float32)
        for i, lvl in enumerate(range(2, 6))
    ]

    xy1 = jax.random.uniform(kr1, (B, R, 2), minval=0.0,
                             maxval=cfg.IMAGE_MAX_DIM * 0.4)
    wh = jax.random.uniform(kr2, (B, R, 2), minval=4.0,
                            maxval=cfg.IMAGE_MAX_DIM * 0.5)
    rpn_rois = jnp.concatenate([xy1, xy1 + wh], axis=-1).astype(jnp.float32)

    fwd = jax.jit(
        lambda pp, fm, rr, mw: fpn_classifier_graph_forward(pp, fm, rr, cfg, mw))
    outs = fwd(prep, feature_maps, rpn_rois, mask_weights)
    outs = jax.block_until_ready(outs)
    logits, probs, bbox, mask_w = outs

    assert logits.shape == (B, R, cfg.NUM_CLASSES)
    assert probs.shape == (B, R, cfg.NUM_CLASSES)
    assert bbox.shape == (B, R, cfg.NUM_CLASSES, 4)
    assert mask_w.shape == (cfg.NUM_CLASSES, 256)
    assert bool(jnp.all(jnp.isfinite(logits)))
    assert bool(jnp.all(jnp.isfinite(probs)))
    assert bool(jnp.all(jnp.isfinite(bbox)))
    assert bool(jnp.allclose(jnp.sum(probs, axis=-1), 1.0, atol=1e-3))

    print("KERNEL_OK")
</pallas_src>

<mosaic_0001>
module attributes {stable_mosaic.version = 11 : i64} {
  func.func @_transfer_kernel(%arg0: i32, %arg1: memref<8x1024xf32, #tpu.memory_space<vmem>>, %arg2: memref<1024x1024xbf16, #tpu.memory_space<vmem>>, %arg3: memref<1x1024xf32, #tpu.memory_space<vmem>>, %arg4: memref<1024x256xbf16, #tpu.memory_space<vmem>>, %arg5: memref<1x256xf32, #tpu.memory_space<vmem>>, %arg6: memref<8x256xf32, #tpu.memory_space<vmem>>) attributes {dimension_semantics = [#tpu.dimension_semantics<arbitrary>], iteration_bounds = array<i64: 1>, scalar_prefetch = 0 : i64, scratch_operands = 0 : i64, tpu.core_type = #tpu.core_type<tc>, window_params = [{pipeline_mode = #tpu.pipeline_mode<synchronous>, transform_indices = @transform_0, window_bounds = array<i64: 8, 1024>}, {pipeline_mode = #tpu.pipeline_mode<synchronous>, transform_indices = @transform_1, window_bounds = array<i64: 1024, 1024>}, {pipeline_mode = #tpu.pipeline_mode<synchronous>, transform_indices = @transform_2, window_bounds = array<i64: 1, 1024>}, {pipeline_mode = #tpu.pipeline_mode<synchronous>, transform_indices = @transform_3, window_bounds = array<i64: 1024, 256>}, {pipeline_mode = #tpu.pipeline_mode<synchronous>, transform_indices = @transform_4, window_bounds = array<i64: 1, 256>}, {pipeline_mode = #tpu.pipeline_mode<synchronous>, transform_indices = @transform_5, window_bounds = array<i64: 8, 256>}]} {
    %c0 = arith.constant 0 : index
    %c0_0 = arith.constant 0 : index
    %0 = vector.load %arg1[%c0, %c0_0] : memref<8x1024xf32, #tpu.memory_space<vmem>>, vector<8x1024xf32>
    %1 = arith.truncf %0 : vector<8x1024xf32> to vector<8x1024xbf16>
    %c0_1 = arith.constant 0 : index
    %c0_2 = arith.constant 0 : index
    %2 = vector.load %arg2[%c0_1, %c0_2] : memref<1024x1024xbf16, #tpu.memory_space<vmem>>, vector<1024x1024xbf16>
    %cst = arith.constant dense<0.000000e+00> : vector<8x1024xf32>
    %3 = tpu.matmul %1, %2, %cst {dimension_numbers = #tpu.dot_dimension_numbers<[1], [0], [0], [1], [0, 0, 1, 1], [], []>} : vector<8x1024xbf16>, vector<1024x1024xbf16>, vector<8x1024xf32> -> vector<8x1024xf32>
    %c0_3 = arith.constant 0 : index
    %c0_4 = arith.constant 0 : index
    %4 = vector.load %arg3[%c0_3, %c0_4] : memref<1x1024xf32, #tpu.memory_space<vmem>>, vector<1x1024xf32>
    %5 = vector.broadcast %4 : vector<1x1024xf32> to vector<8x1024xf32>
    %6 = arith.addf %3, %5 : vector<8x1024xf32>
    %cst_5 = arith.constant 0.000000e+00 : f32
    %7 = vector.broadcast %cst_5 : f32 to vector<8x1024xf32>
    %8 = arith.cmpf ogt, %6, %7 : vector<8x1024xf32>
    %cst_6 = arith.constant 0.00999999977 : f32
    %9 = vector.broadcast %cst_6 : f32 to vector<8x1024xf32>
    %10 = arith.mulf %9, %6 : vector<8x1024xf32>
    %11 = arith.select %8, %6, %10 : vector<8x1024xi1>, vector<8x1024xf32>
    %12 = arith.truncf %11 : vector<8x1024xf32> to vector<8x1024xbf16>
    %c0_7 = arith.constant 0 : index
    %c0_8 = arith.constant 0 : index
    %13 = vector.load %arg4[%c0_7, %c0_8] : memref<1024x256xbf16, #tpu.memory_space<vmem>>, vector<1024x256xbf16>
    %cst_9 = arith.constant dense<0.000000e+00> : vector<8x256xf32>
    %14 = tpu.matmul %12, %13, %cst_9 {dimension_numbers = #tpu.dot_dimension_numbers<[1], [0], [0], [1], [0, 0, 1, 1], [], []>} : vector<8x1024xbf16>, vector<1024x256xbf16>, vector<8x256xf32> -> vector<8x256xf32>
    %c0_10 = arith.constant 0 : index
    %c0_11 = arith.constant 0 : index
    %15 = vector.load %arg5[%c0_10, %c0_11] : memref<1x256xf32, #tpu.memory_space<vmem>>, vector<1x256xf32>
    %16 = vector.broadcast %15 : vector<1x256xf32> to vector<8x256xf32>
    %17 = arith.addf %14, %16 : vector<8x256xf32>
    %cst_12 = arith.constant 0.000000e+00 : f32
    %18 = vector.broadcast %cst_12 : f32 to vector<8x256xf32>
    %19 = arith.cmpf ogt, %17, %18 : vector<8x256xf32>
    %cst_13 = arith.constant 0.00999999977 : f32
    %20 = vector.broadcast %cst_13 : f32 to vector<8x256xf32>
    %21 = arith.mulf %20, %17 : vector<8x256xf32>
    %22 = arith.select %19, %17, %21 : vector<8x256xi1>, vector<8x256xf32>
    %c0_14 = arith.constant 0 : index
    %c0_15 = arith.constant 0 : index
    %23 = vector.load %arg6[%c0_14, %c0_15] : memref<8x256xf32, #tpu.memory_space<vmem>>, vector<8x256xf32>
    tpu.vector_store %arg6[%c0_14, %c0_15], %22 {strides = array<i32>} : memref<8x256xf32, #tpu.memory_space<vmem>>, vector<8x256xf32>,
    return
  }
  func.func @transform_0(%arg0: i32) -> (i32, i32) {
    %c0_i32 = arith.constant 0 : i32
    %c0_i32_0 = arith.constant 0 : i32
    %c0_i32_1 = arith.constant 0 : i32
    return %c0_i32, %c0_i32_0 : i32, i32
  }
  func.func @transform_1(%arg0: i32) -> (i32, i32) {
    %c0_i32 = arith.constant 0 : i32
    %c0_i32_0 = arith.constant 0 : i32
    %c0_i32_1 = arith.constant 0 : i32
    return %c0_i32, %c0_i32_0 : i32, i32
  }
  func.func @transform_2(%arg0: i32) -> (i32, i32) {
    %c0_i32 = arith.constant 0 : i32
    %c0_i32_0 = arith.constant 0 : i32
    %c0_i32_1 = arith.constant 0 : i32
    return %c0_i32, %c0_i32_0 : i32, i32
  }
  func.func @transform_3(%arg0: i32) -> (i32, i32) {
    %c0_i32 = arith.constant 0 : i32
    %c0_i32_0 = arith.constant 0 : i32
    %c0_i32_1 = arith.constant 0 : i32
    return %c0_i32, %c0_i32_0 : i32, i32
  }
  func.func @transform_4(%arg0: i32) -> (i32, i32) {
    %c0_i32 = arith.constant 0 : i32
    %c0_i32_0 = arith.constant 0 : i32
    %c0_i32_1 = arith.constant 0 : i32
    return %c0_i32, %c0_i32_0 : i32, i32
  }
  func.func @transform_5(%arg0: i32) -> (i32, i32) {
    %c0_i32 = arith.constant 0 : i32
    %c0_i32_0 = arith.constant 0 : i32
    %c0_i32_1 = arith.constant 0 : i32
    return %c0_i32, %c0_i32_0 : i32, i32
  }
}

</mosaic_0001>

<bundles_post_ra>
// kernel: tpu_custom_call.1
= control target key start
LH: loop header
LB: loop body
LE: loop exit
PB: predicated region body
PF: predicated region fallthrough
CT: control target
= control target key end

     0   :  { %10 = vsyncpa [#allocation3], 0  ;;  %s6025_s0 = inlined_call_operand.hbm [shape: f32[8,1024], index: 0, kind: input, shape index: {}]   ;;  %s6026_s1 = inlined_call_operand.hbm [shape: bf16[1024,1024], index: 1, kind: input, shape index: {}]   ;;  %s6027_s2 = inlined_call_operand.hbm [shape: f32[1,1024], index: 2, kind: input, shape index: {}]   ;;  %s6028_s3 = inlined_call_operand.hbm [shape: bf16[1024,256], index: 3, kind: input, shape index: {}]   ;;  %s6029_s4 = inlined_call_operand.hbm [shape: f32[1,256], index: 4, kind: input, shape index: {}]   ;;  %s6030_s5 = inlined_call_operand.hbm [shape: f32[8,256], index: 5, kind: output, shape index: {}]  }
   0x1   :  { %11 = vsyncpa [#allocation6], 0 }
   0x2   :  { %12 = vsyncpa [#allocation9], 0 }
   0x3   :  { %13 = vsyncpa [#allocation4], 0  ;;  %s5841_s18 = smov [#allocation5]  }
   0x4   :  { %s29_s19 = sshll.u32 %s5841_s18, 4  ;;  %s30_s19 = int_to_ptr.vmem [resolvable:$true] %s29_s19 }
   0x5   :  { %s5721_s20 = scalar_lea.vmem %s30_s19, 65536  ;;  %p5726_p1 = scmp.lt.s32.totalorder %s30_s19, %s30_s19 }
   0x6   :  { %p5722_p0 = scmp.ne.s32.totalorder %s30_s19, %s5721_s20  ;;  %p5727_p2 = scmp.lt.s32.totalorder %s5721_s20, %s5721_s20 }
   0x8   :  { %p5728_p3 = por %p5727_p2, %p5726_p1 }
   0xa   :  { %p5729_p4 = pnand %p5728_p3, %p5722_p0 }
   0xc   :  { %5732 = shalt.err (!%p5729_p4)
}
   0xd   :  { %s5842_s21 = smov 512   ;;  %s5843_s22 = smov 32  }
   0xe   :  { %35 = dma.hbm_to_vmem [thread:$0]  %s6026_s1, 65536, %s30_s19, [#allocation6], %s5842_s21, %s5842_s21, %s5843_s22  }
   0xf   :  { %s5844_s25 = smov [#allocation8]  }
  0x10   :  { %s51_s26 = sshll.u32 %s5844_s25, 4  ;;  %s52_s26 = int_to_ptr.vmem [resolvable:$true] %s51_s26 }
  0x11   :  { %s5741_s27 = scalar_lea.vmem %s52_s26, 16384  ;;  %p5746_p6 = scmp.lt.s32.totalorder %s52_s26, %s52_s26 }
  0x12   :  { %p5742_p5 = scmp.ne.s32.totalorder %s52_s26, %s5741_s27  ;;  %p5747_p7 = scmp.lt.s32.totalorder %s5741_s27, %s5741_s27 }
  0x14   :  { %p5748_p8 = por %p5747_p7, %p5746_p6 }
  0x16   :  { %p5749_p9 = pnand %p5748_p8, %p5742_p5 }
  0x18   :  { %5752 = shalt.err (!%p5749_p9)
}
  0x19   :  { %s5845_s28 = smov 128   ;;  %s5846_s29 = smov 8  }
  0x1a   :  { %57 = dma.hbm_to_vmem [thread:$0]  %s6028_s3, 16384, %s52_s26, [#allocation9], %s5845_s28, %s5845_s28, %s5846_s29  }
  0x1b   :  { %s5847_s7 = smov [#allocation2]   ;;  %s5848_s9 = smov [#allocation7]  }
  0x1c   :  { %s20_s8 = sshll.u32 %s5847_s7, 4  ;;  %s42_s1 = sshll.u32 %s5848_s9, 4  ;;  %s21_s8 = int_to_ptr.vmem [resolvable:$true] %s20_s8  ;;  %s43_s1 = int_to_ptr.vmem [resolvable:$true] %s42_s1 }
  0x1d   :  { %s5761_s10 = scalar_lea.vmem %s21_s8, 1024  ;;  %p5766_p11 = scmp.lt.s32.totalorder %s21_s8, %s21_s8 }
  0x1e   :  { %p5762_p10 = scmp.ne.s32.totalorder %s21_s8, %s5761_s10  ;;  %p5767_p12 = scmp.lt.s32.totalorder %s5761_s10, %s5761_s10 }
  0x20   :  { %p5768_p13 = por %p5767_p12, %p5766_p11 }
  0x22   :  { %p5769_p0 = pnand %p5768_p13, %p5762_p10 }
  0x24   :  { %5772 = shalt.err (!%p5769_p0)
}
  0x25   :  { %23 = dma.hbm_to_vmem [thread:$0]  %s6025_s0, 1024, %s21_s8, [#allocation3]  }
  0x26   :  { %s5781_s13 = scalar_lea.vmem %s43_s1, 128  ;;  %p5786_p2 = scmp.lt.s32.totalorder %s43_s1, %s43_s1 }
  0x27   :  { %p5782_p1 = scmp.ne.s32.totalorder %s43_s1, %s5781_s13  ;;  %p5787_p3 = scmp.lt.s32.totalorder %s5781_s13, %s5781_s13 }
  0x29   :  { %p5788_p4 = por %p5787_p3, %p5786_p2 }
  0x2b   :  { %p5789_p5 = pnand %p5788_p4, %p5782_p1 }
  0x2d   :  { %5792 = shalt.err (!%p5789_p5)
}
  0x2e   :  { %45 = dma.hbm_to_vmem [thread:$0]  %s6027_s2, 128, %s43_s1, [#allocation6]  }
  0x2f   :  { %s5849_s15 = smov [#allocation10]  }
  0x30   :  { %s64_s16 = sshll.u32 %s5849_s15, 4  ;;  %s65_s16 = int_to_ptr.vmem [resolvable:$true] %s64_s16 }
  0x31   :  { %s5801_s17 = scalar_lea.vmem %s65_s16, 32  ;;  %p5806_p7 = scmp.lt.s32.totalorder %s65_s16, %s65_s16 }
  0x32   :  { %p5802_p6 = scmp.ne.s32.totalorder %s65_s16, %s5801_s17  ;;  %p5807_p8 = scmp.lt.s32.totalorder %s5801_s17, %s5801_s17 }
  0x34   :  { %p5808_p9 = por %p5807_p8, %p5806_p7 }
  0x36   :  { %p5809_p10 = pnand %p5808_p9, %p5802_p6 }
  0x38   :  { %5812 = shalt.err (!%p5809_p10)
}
  0x39   :  { %67 = dma.hbm_to_vmem [thread:$0]  %s6029_s4, 32, %s65_s16, [#allocation9]  }
  0x3a   :  { %5833 = dma.done.wait [#allocation3], 1024  }
  0x3b   :  { %5834 = vsyncadd [#allocation3], 4294966272 }
  0x3c   :  { %5835 = dma.done.wait [#allocation6], 65664  }
  0x3d   :  { %5836 = vsyncadd [#allocation6], 4294901632 }
  0x3e   :  { %5837 = dma.done.wait [#allocation9], 16416  }
  0x3f   :  { %5838 = vsyncadd [#allocation9], 4294950880  ;;  %v155_v0 = vld [vmem:[#allocation5 + $0x1c0] sm:$0xff]  ;;  %v84_v53 = vld [vmem:[#allocation2 + $0x8] sm:$0xff]  ;;  %s5850_s2 = smov [#allocation11]  }
  0x40   :  { %v159_v1 = vld [vmem:[#allocation5 + $0x1e0] sm:$0xff]  ;;  %v86_v54 = vld [vmem:[#allocation2 + $0x18] sm:$0xff]  ;;  %v5896_v58 = vpack.c.bf16 %v84_v53, %v84_v53  ;;  %s4859_s4 = sshll.u32 %s5850_s2, 4  ;;  %s4860_s4 = int_to_ptr.vmem [resolvable:$true] %s4859_s4 }
  0x41   :  { %v283_v2 = vld [vmem:[#allocation5 + $0x5c0] sm:$0xff]  ;;  %v4927_v3 = vcombine.high %v155_v0, %v159_v1  ;;  %v4926_v5 = vcombine.low %v155_v0, %v159_v1  ;;  %v5898_v59 = vpack.c.bf16 %v86_v54, %v86_v54  ;;  %s5813_s19 = scalar_lea.vmem %s4860_s4, 256  ;;  %p5818_p12 = scmp.lt.s32.totalorder %s4860_s4, %s4860_s4 }
  0x42   :  { %v287_v4 = vld [vmem:[#allocation5 + $0x5e0] sm:$0xff]  ;;  %3245 = vmatprep.mubr.bf16.mxu0 %v5896_v58  ;;  %p5814_p11 = scmp.ne.s32.totalorder %s4860_s4, %s5813_s19  ;;  %p5819_p13 = scmp.lt.s32.totalorder %s5813_s19, %s5813_s19 }
  0x43   :  { %v147_v6 = vld [vmem:[#allocation5 + $0x180] sm:$0xff]  ;;  %v5055_v8 = vcombine.high %v283_v2, %v287_v4  ;;  %v5054_v9 = vcombine.low %v283_v2, %v287_v4  ;;  %3213 = vmatprep.subr.bf16.mxu0 %v4927_v3  ;;  %3286 = vmatprep.mubr.bf16.mxu1 %v5898_v59 }
  0x44   :  { %v151_v7 = vld [vmem:[#allocation5 + $0x1a0] sm:$0xff]  ;;  %3214 = vmatpush1.bf16.msra.mxu0 %v4926_v5  ;;  %p5820_p0 = por %p5819_p13, %p5818_p12 }
  0x45   :  { %v4919_v10 = vcombine.high %v147_v6, %v151_v7  ;;  %v275_v11 = vld [vmem:[#allocation5 + $0x580] sm:$0xff]  ;;  %3254 = vmatprep.subr.bf16.mxu1 %v5055_v8  ;;  %v4918_v18 = vcombine.low %v147_v6, %v151_v7 }
  0x46   :  { %v279_v12 = vld [vmem:[#allocation5 + $0x5a0] sm:$0xff]  ;;  %3255 = vmatpush1.bf16.msra.mxu1 %v5054_v9  ;;  %p5821_p1 = pnand %p5820_p0, %p5814_p11 }
  0x47   :  { %v139_v13 = vld [vmem:[#allocation5 + $0x140] sm:$0xff]  ;;  %v5047_v14 = vcombine.high %v275_v11, %v279_v12  ;;  %3215 = vmatprep.subr.bf16.mxu0 %v4919_v10  ;;  %v5046_v19 = vcombine.low %v275_v11, %v279_v12 }
  0x48   :  { %v143_v15 = vld [vmem:[#allocation5 + $0x160] sm:$0xff]  ;;  %3216 = vmatpush1.bf16.msra.mxu0 %v4918_v18 }
  0x49   :  { %v267_v16 = vld [vmem:[#allocation5 + $0x540] sm:$0xff]  ;;  %v4911_v20 = vcombine.high %v139_v13, %v143_v15  ;;  %3256 = vmatprep.subr.bf16.mxu1 %v5047_v14  ;;  %v4910_v26 = vcombine.low %v139_v13, %v143_v15 }
  0x4a   :  { %v271_v17 = vld [vmem:[#allocation5 + $0x560] sm:$0xff]  ;;  %3257 = vmatpush1.bf16.msra.mxu1 %v5046_v19 }
  0x4b   :  { %v5039_v21 = vcombine.high %v267_v16, %v271_v17  ;;  %v131_v22 = vld [vmem:[#allocation5 + $0x100] sm:$0xff]  ;;  %3217 = vmatprep.subr.bf16.mxu0 %v4911_v20  ;;  %v5038_v27 = vcombine.low %v267_v16, %v271_v17 }
  0x4c   :  { %v135_v23 = vld [vmem:[#allocation5 + $0x120] sm:$0xff]  ;;  %3218 = vmatpush1.bf16.msra.mxu0 %v4910_v26 }
  0x4d   :  { %v259_v24 = vld [vmem:[#allocation5 + $0x500] sm:$0xff]  ;;  %v4903_v28 = vcombine.high %v131_v22, %v135_v23  ;;  %3258 = vmatprep.subr.bf16.mxu1 %v5039_v21  ;;  %v4902_v34 = vcombine.low %v131_v22, %v135_v23 }
  0x4e   :  { %v263_v25 = vld [vmem:[#allocation5 + $0x520] sm:$0xff]  ;;  %3259 = vmatpush1.bf16.msra.mxu1 %v5038_v27 }
  0x4f   :  { %v5031_v29 = vcombine.high %v259_v24, %v263_v25  ;;  %v123_v30 = vld [vmem:[#allocation5 + $0xc0] sm:$0xff]  ;;  %3219 = vmatprep.subr.bf16.mxu0 %v4903_v28  ;;  %v5030_v35 = vcombine.low %v259_v24, %v263_v25 }
  0x50   :  { %v127_v31 = vld [vmem:[#allocation5 + $0xe0] sm:$0xff]  ;;  %3220 = vmatpush1.bf16.msra.mxu0 %v4902_v34 }
  0x51   :  { %v251_v32 = vld [vmem:[#allocation5 + $0x4c0] sm:$0xff]  ;;  %v4895_v36 = vcombine.high %v123_v30, %v127_v31  ;;  %3260 = vmatprep.subr.bf16.mxu1 %v5031_v29  ;;  %v4894_v42 = vcombine.low %v123_v30, %v127_v31 }
  0x52   :  { %v255_v33 = vld [vmem:[#allocation5 + $0x4e0] sm:$0xff]  ;;  %3261 = vmatpush1.bf16.msra.mxu1 %v5030_v35 }
  0x53   :  { %v5023_v37 = vcombine.high %v251_v32, %v255_v33  ;;  %v115_v38 = vld [vmem:[#allocation5 + $0x80] sm:$0xff]  ;;  %3221 = vmatprep.subr.bf16.mxu0 %v4895_v36  ;;  %v5022_v43 = vcombine.low %v251_v32, %v255_v33 }
  0x54   :  { %v119_v39 = vld [vmem:[#allocation5 + $0xa0] sm:$0xff]  ;;  %3222 = vmatpush1.bf16.msra.mxu0 %v4894_v42 }
  0x55   :  { %v243_v40 = vld [vmem:[#allocation5 + $0x480] sm:$0xff]  ;;  %v4887_v44 = vcombine.high %v115_v38, %v119_v39  ;;  %3262 = vmatprep.subr.bf16.mxu1 %v5023_v37  ;;  %v4886_v50 = vcombine.low %v115_v38, %v119_v39 }
  0x56   :  { %v247_v41 = vld [vmem:[#allocation5 + $0x4a0] sm:$0xff]  ;;  %3263 = vmatpush1.bf16.msra.mxu1 %v5022_v43 }
  0x57   :  { %v5015_v45 = vcombine.high %v243_v40, %v247_v41  ;;  %v107_v46 = vld [vmem:[#allocation5 + $0x40] sm:$0xff]  ;;  %3223 = vmatprep.subr.bf16.mxu0 %v4887_v44  ;;  %v5014_v51 = vcombine.low %v243_v40, %v247_v41 }
  0x58   :  { %v111_v47 = vld [vmem:[#allocation5 + $0x60] sm:$0xff]  ;;  %3224 = vmatpush1.bf16.msra.mxu0 %v4886_v50 }
  0x59   :  { %v235_v48 = vld [vmem:[#allocation5 + $0x440] sm:$0xff]  ;;  %v4879_v52 = vcombine.high %v107_v46, %v111_v47  ;;  %3264 = vmatprep.subr.bf16.mxu1 %v5015_v45  ;;  %v4878_v62 = vcombine.low %v107_v46, %v111_v47 }
  0x5a   :  { %v239_v49 = vld [vmem:[#allocation5 + $0x460] sm:$0xff]  ;;  %3265 = vmatpush1.bf16.msra.mxu1 %v5014_v51 }
  0x5b   :  { %v5007_v55 = vcombine.high %v235_v48, %v239_v49  ;;  %v99_v56 = vld [vmem:[#allocation5] sm:$0xff]  ;;  %3225 = vmatprep.subr.bf16.mxu0 %v4879_v52  ;;  %v5006_v63 = vcombine.low %v235_v48, %v239_v49 }
  0x5c   :  { %v103_v57 = vld [vmem:[#allocation5 + $0x20] sm:$0xff]  ;;  %3226 = vmatpush1.bf16.msra.mxu0 %v4878_v62 }
  0x5d   :  { %v227_v60 = vld [vmem:[#allocation5 + $0x400] sm:$0xff]  ;;  %v4871_v0 = vcombine.high %v99_v56, %v103_v57  ;;  %3266 = vmatprep.subr.bf16.mxu1 %v5007_v55  ;;  %v4870_v6 = vcombine.low %v99_v56, %v103_v57 }
  0x5e   :  { %v231_v61 = vld [vmem:[#allocation5 + $0x420] sm:$0xff]  ;;  %3267 = vmatpush1.bf16.msra.mxu1 %v5006_v63 }
  0x5f   :  { %v4999_v1 = vcombine.high %v227_v60, %v231_v61  ;;  %v219_v2 = vld [vmem:[#allocation5 + $0x3c0] sm:$0xff]  ;;  %3227 = vmatprep.subr.bf16.mxu0 %v4871_v0  ;;  %v4998_v7 = vcombine.low %v227_v60, %v231_v61 }
  0x60   :  { %v223_v3 = vld [vmem:[#allocation5 + $0x3e0] sm:$0xff]  ;;  %3228 = vmatpush1.bf16.msra.mxu0 %v4870_v6 }
  0x61   :  { %v347_v4 = vld [vmem:[#allocation5 + $0x7c0] sm:$0xff]  ;;  %v4991_v8 = vcombine.high %v219_v2, %v223_v3  ;;  %3268 = vmatprep.subr.bf16.mxu1 %v4999_v1  ;;  %v4990_v14 = vcombine.low %v219_v2, %v223_v3 }
  0x62   :  { %v351_v5 = vld [vmem:[#allocation5 + $0x7e0] sm:$0xff]  ;;  %3269 = vmatpush1.bf16.msra.mxu1 %v4998_v7 }
  0x63   :  { %v5119_v9 = vcombine.high %v347_v4, %v351_v5  ;;  %v211_v10 = vld [vmem:[#allocation5 + $0x380] sm:$0xff]  ;;  %3229 = vmatprep.subr.bf16.mxu0 %v4991_v8  ;;  %v5118_v15 = vcombine.low %v347_v4, %v351_v5 }
  0x64   :  { %v215_v11 = vld [vmem:[#allocation5 + $0x3a0] sm:$0xff]  ;;  %3230 = vmatpush2.bf16.msra.mxu0 %v4990_v14 }
  0x65   :  { %v339_v12 = vld [vmem:[#allocation5 + $0x780] sm:$0xff]  ;;  %v4983_v16 = vcombine.high %v211_v10, %v215_v11  ;;  %3270 = vmatprep.subr.bf16.mxu1 %v5119_v9  ;;  %v4982_v22 = vcombine.low %v211_v10, %v215_v11  ;;  %v85_v11 = vld [vmem:[#allocation2 + $0x10] sm:$0xff] }
  0x66   :  { %v343_v13 = vld [vmem:[#allocation5 + $0x7a0] sm:$0xff]  ;;  %3271 = vmatpush2.bf16.msra.mxu1 %v5118_v15 }
  0x67   :  { %v5111_v17 = vcombine.high %v339_v12, %v343_v13  ;;  %v203_v18 = vld [vmem:[#allocation5 + $0x340] sm:$0xff]  ;;  %3231 = vmatprep.subr.bf16.mxu0 %v4983_v16  ;;  %v5110_v23 = vcombine.low %v339_v12, %v343_v13 }
  0x68   :  { %v207_v19 = vld [vmem:[#allocation5 + $0x360] sm:$0xff]  ;;  %3232 = vmatpush2.bf16.msra.mxu0 %v4982_v22  ;;  %v90_v22 = vld [vmem:[#allocation2 + $0x38] sm:$0xff] }
  0x69   :  { %v331_v20 = vld [vmem:[#allocation5 + $0x740] sm:$0xff]  ;;  %v4975_v24 = vcombine.high %v203_v18, %v207_v19  ;;  %3272 = vmatprep.subr.bf16.mxu1 %v5111_v17  ;;  %v4974_v30 = vcombine.low %v203_v18, %v207_v19  ;;  %v88_v19 = vld [vmem:[#allocation2 + $0x28] sm:$0xff] }
  0x6a   :  { %v335_v21 = vld [vmem:[#allocation5 + $0x760] sm:$0xff]  ;;  %3273 = vmatpush2.bf16.msra.mxu1 %v5110_v23 }
  0x6b   :  { %v5103_v25 = vcombine.high %v331_v20, %v335_v21  ;;  %v195_v26 = vld [vmem:[#allocation5 + $0x300] sm:$0xff]  ;;  %3233 = vmatprep.subr.bf16.mxu0 %v4975_v24  ;;  %v5102_v31 = vcombine.low %v331_v20, %v335_v21  ;;  %v5904_v20 = vpack.c.bf16 %v85_v11, %v85_v11 }
  0x6c   :  { %v199_v27 = vld [vmem:[#allocation5 + $0x320] sm:$0xff]  ;;  %3234 = vmatpush2.bf16.msra.mxu0 %v4974_v30 }
  0x6d   :  { %v323_v28 = vld [vmem:[#allocation5 + $0x700] sm:$0xff]  ;;  %v4967_v32 = vcombine.high %v195_v26, %v199_v27  ;;  %3274 = vmatprep.subr.bf16.mxu1 %v5103_v25  ;;  %v4966_v38 = vcombine.low %v195_v26, %v199_v27 }
  0x6e   :  { %v327_v29 = vld [vmem:[#allocation5 + $0x720] sm:$0xff]  ;;  %3275 = vmatpush2.bf16.msra.mxu1 %v5102_v31  ;;  %v5909_v31 = vpack.c.bf16 %v90_v22, %v90_v22 }
  0x6f   :  { %v5095_v33 = vcombine.high %v323_v28, %v327_v29  ;;  %v187_v34 = vld [vmem:[#allocation5 + $0x2c0] sm:$0xff]  ;;  %3235 = vmatprep.subr.bf16.mxu0 %v4967_v32  ;;  %v5094_v39 = vcombine.low %v323_v28, %v327_v29  ;;  %v5906_v28 = vpack.c.bf16 %v88_v19, %v88_v19 }
  0x70   :  { %v191_v35 = vld [vmem:[#allocation5 + $0x2e0] sm:$0xff]  ;;  %3236 = vmatpush2.bf16.msra.mxu0 %v4966_v38 }
  0x71   :  { %v315_v36 = vld [vmem:[#allocation5 + $0x6c0] sm:$0xff]  ;;  %v4959_v40 = vcombine.high %v187_v34, %v191_v35  ;;  %3276 = vmatprep.subr.bf16.mxu1 %v5095_v33  ;;  %v4958_v46 = vcombine.low %v187_v34, %v191_v35 }
  0x72   :  { %v319_v37 = vld [vmem:[#allocation5 + $0x6e0] sm:$0xff]  ;;  %3277 = vmatpush2.bf16.msra.mxu1 %v5094_v39 }
  0x73   :  { %v5087_v41 = vcombine.high %v315_v36, %v319_v37  ;;  %v179_v42 = vld [vmem:[#allocation5 + $0x280] sm:$0xff]  ;;  %3237 = vmatprep.subr.bf16.mxu0 %v4959_v40  ;;  %v5086_v47 = vcombine.low %v315_v36, %v319_v37 }
  0x74   :  { %v183_v43 = vld [vmem:[#allocation5 + $0x2a0] sm:$0xff]  ;;  %3238 = vmatpush2.bf16.msra.mxu0 %v4958_v46 }
  0x75   :  { %v307_v44 = vld [vmem:[#allocation5 + $0x680] sm:$0xff]  ;;  %v4951_v48 = vcombine.high %v179_v42, %v183_v43  ;;  %3278 = vmatprep.subr.bf16.mxu1 %v5087_v41  ;;  %v4950_v54 = vcombine.low %v179_v42, %v183_v43 }
  0x76   :  { %v311_v45 = vld [vmem:[#allocation5 + $0x6a0] sm:$0xff]  ;;  %3279 = vmatpush2.bf16.msra.mxu1 %v5086_v47 }
  0x77   :  { %v5079_v49 = vcombine.high %v307_v44, %v311_v45  ;;  %v171_v50 = vld [vmem:[#allocation5 + $0x240] sm:$0xff]  ;;  %3239 = vmatprep.subr.bf16.mxu0 %v4951_v48  ;;  %v5078_v55 = vcombine.low %v307_v44, %v311_v45 }
  0x78   :  { %v175_v51 = vld [vmem:[#allocation5 + $0x260] sm:$0xff]  ;;  %3240 = vmatpush2.bf16.msra.mxu0 %v4950_v54 }
  0x79   :  { %v299_v52 = vld [vmem:[#allocation5 + $0x640] sm:$0xff]  ;;  %v4943_v56 = vcombine.high %v171_v50, %v175_v51  ;;  %3280 = vmatprep.subr.bf16.mxu1 %v5079_v49  ;;  %v4942_v0 = vcombine.low %v171_v50, %v175_v51 }
  0x7a   :  { %v303_v53 = vld [vmem:[#allocation5 + $0x660] sm:$0xff]  ;;  %3281 = vmatpush2.bf16.msra.mxu1 %v5078_v55 }
  0x7b   :  { %v5071_v57 = vcombine.high %v299_v52, %v303_v53  ;;  %v163_v60 = vld [vmem:[#allocation5 + $0x200] sm:$0xff]  ;;  %3241 = vmatprep.subr.bf16.mxu0 %v4943_v56  ;;  %v5070_v1 = vcombine.low %v299_v52, %v303_v53 }
  0x7c   :  { %v167_v61 = vld [vmem:[#allocation5 + $0x220] sm:$0xff]  ;;  %3242 = vmatpush2.bf16.msra.mxu0 %v4942_v0 }
  0x7d   :  { %v291_v62 = vld [vmem:[#allocation5 + $0x600] sm:$0xff]  ;;  %v4935_v2 = vcombine.high %v163_v60, %v167_v61  ;;  %3282 = vmatprep.subr.bf16.mxu1 %v5071_v57  ;;  %v4934_v8 = vcombine.low %v163_v60, %v167_v61 }
  0x7e   :  { %v295_v63 = vld [vmem:[#allocation5 + $0x620] sm:$0xff]  ;;  %3283 = vmatpush2.bf16.msra.mxu1 %v5070_v1 }
  0x7f   :  { %v5063_v3 = vcombine.high %v291_v62, %v295_v63  ;;  %v411_v4 = vld [vmem:[#allocation5 + $0x9c0] sm:$0xff]  ;;  %3243 = vmatprep.subr.bf16.mxu0 %v4935_v2  ;;  %v5062_v10 = vcombine.low %v291_v62, %v295_v63 }
  0x80   :  { %v415_v5 = vld [vmem:[#allocation5 + $0x9e0] sm:$0xff]  ;;  %3244 = vmatpush2.bf16.msra.mxu0 %v4934_v8 }
  0x81   :  { %v539_v6 = vld [vmem:[#allocation5 + $0xdc0] sm:$0xff]  ;;  %v5183_v12 = vcombine.high %v411_v4, %v415_v5  ;;  %3284 = vmatprep.subr.bf16.mxu1 %v5063_v3  ;;  %v5182_v21 = vcombine.low %v411_v4, %v415_v5 }
  0x82   :  { %v543_v7 = vld [vmem:[#allocation5 + $0xde0] sm:$0xff]  ;;  %3285 = vmatpush2.bf16.msra.mxu1 %v5062_v10 }
  0x83   :  { %v83_v9 = vld [vmem:[#allocation2] sm:$0xff]  ;;  %v5311_v13 = vcombine.high %v539_v6, %v543_v7  ;;  %3295 = vmatprep.subr.bf16.mxu0 %v5183_v12  ;;  %v5310_v23 = vcombine.low %v539_v6, %v543_v7 }
  0x84   :  { %v403_v14 = vld [vmem:[#allocation5 + $0x980] sm:$0xff]  ;;  %v5902_v16 = vpack.c.bf16 %v83_v9, %v83_v9 }
  0x85   :  { %v407_v15 = vld [vmem:[#allocation5 + $0x9a0] sm:$0xff]  ;;  %3336 = vmatprep.subr.bf16.mxu1 %v5311_v13  ;;  %3287 = vmatmul.mubr.bf16.vlgmr.msra.gmra.mxu1 %v5904_v20 }
  0x86   :  { %v531_v17 = vld [vmem:[#allocation5 + $0xd80] sm:$0xff]  ;;  %v5175_v24 = vcombine.high %v403_v14, %v407_v15  ;;  %3246 = vmatmul.mubr.bf16.vlgmr.msra.gmra.mxu0 %v5902_v16  ;;  %v5174_v32 = vcombine.low %v403_v14, %v407_v15  ;;  %3337 = vmatpush1.bf16.msra.mxu1 %v5310_v23 }
  0x87   :  { %v535_v18 = vld [vmem:[#allocation5 + $0xda0] sm:$0xff]  ;;  %3296 = vmatpush1.bf16.msra.mxu0 %v5182_v21  ;;  %3327 = vmatprep.mubr.bf16.mxu0 %v5906_v28 }
  0x88   :  { %v5303_v25 = vcombine.high %v531_v17, %v535_v18  ;;  %v395_v26 = vld [vmem:[#allocation5 + $0x940] sm:$0xff]  ;;  %3297 = vmatprep.subr.bf16.mxu0 %v5175_v24  ;;  %v5302_v33 = vcombine.low %v531_v17, %v535_v18  ;;  %3368 = vmatprep.mubr.bf16.mxu1 %v5909_v31 }
  0x89   :  { %v399_v27 = vld [vmem:[#allocation5 + $0x960] sm:$0xff] }
  0x8a   :  { %v523_v29 = vld [vmem:[#allocation5 + $0xd40] sm:$0xff]  ;;  %v5167_v34 = vcombine.high %v395_v26, %v399_v27  ;;  %3338 = vmatprep.subr.bf16.mxu1 %v5303_v25  ;;  %v5166_v40 = vcombine.low %v395_v26, %v399_v27 }
  0x8b   :  { %v527_v30 = vld [vmem:[#allocation5 + $0xd60] sm:$0xff]  ;;  %3298 = vmatpush1.bf16.msra.mxu0 %v5174_v32  ;;  %3339 = vmatpush1.bf16.msra.mxu1 %v5302_v33 }
  0x8c   :  { %v387_v35 = vld [vmem:[#allocation5 + $0x900] sm:$0xff]  ;;  %v5295_v38 = vcombine.high %v523_v29, %v527_v30  ;;  %3299 = vmatprep.subr.bf16.mxu0 %v5167_v34  ;;  %v5294_v41 = vcombine.low %v523_v29, %v527_v30 }
  0x8d   :  { %v391_v36 = vld [vmem:[#allocation5 + $0x920] sm:$0xff] }
  0x8e   :  { %v515_v37 = vld [vmem:[#allocation5 + $0xd00] sm:$0xff]  ;;  %v5159_v42 = vcombine.high %v387_v35, %v391_v36  ;;  %3340 = vmatprep.subr.bf16.mxu1 %v5295_v38  ;;  %v5158_v48 = vcombine.low %v387_v35, %v391_v36 }
  0x8f   :  { %v519_v39 = vld [vmem:[#allocation5 + $0xd20] sm:$0xff]  ;;  %3300 = vmatpush1.bf16.msra.mxu0 %v5166_v40  ;;  %3341 = vmatpush1.bf16.msra.mxu1 %v5294_v41 }
  0x90   :  { %v379_v43 = vld [vmem:[#allocation5 + $0x8c0] sm:$0xff]  ;;  %v5287_v46 = vcombine.high %v515_v37, %v519_v39  ;;  %3301 = vmatprep.subr.bf16.mxu0 %v5159_v42  ;;  %v5286_v49 = vcombine.low %v515_v37, %v519_v39 }
  0x91   :  { %v383_v44 = vld [vmem:[#allocation5 + $0x8e0] sm:$0xff] }
  0x92   :  { %v507_v45 = vld [vmem:[#allocation5 + $0xcc0] sm:$0xff]  ;;  %v5151_v50 = vcombine.high %v379_v43, %v383_v44  ;;  %3342 = vmatprep.subr.bf16.mxu1 %v5287_v46  ;;  %v5150_v56 = vcombine.low %v379_v43, %v383_v44 }
  0x93   :  { %v511_v47 = vld [vmem:[#allocation5 + $0xce0] sm:$0xff]  ;;  %3302 = vmatpush1.bf16.msra.mxu0 %v5158_v48  ;;  %3343 = vmatpush1.bf16.msra.mxu1 %v5286_v49 }
  0x94   :  { %v371_v51 = vld [vmem:[#allocation5 + $0x880] sm:$0xff]  ;;  %v5279_v54 = vcombine.high %v507_v45, %v511_v47  ;;  %3303 = vmatprep.subr.bf16.mxu0 %v5151_v50  ;;  %v5278_v57 = vcombine.low %v507_v45, %v511_v47 }
  0x95   :  { %v375_v52 = vld [vmem:[#allocation5 + $0x8a0] sm:$0xff] }
  0x96   :  { %v499_v53 = vld [vmem:[#allocation5 + $0xc80] sm:$0xff]  ;;  %v5143_v60 = vcombine.high %v371_v51, %v375_v52  ;;  %3344 = vmatprep.subr.bf16.mxu1 %v5279_v54  ;;  %v5142_v2 = vcombine.low %v371_v51, %v375_v52 }
  0x97   :  { %v503_v55 = vld [vmem:[#allocation5 + $0xca0] sm:$0xff]  ;;  %3304 = vmatpush1.bf16.msra.mxu0 %v5150_v56  ;;  %3345 = vmatpush1.bf16.msra.mxu1 %v5278_v57 }
  0x98   :  { %v363_v61 = vld [vmem:[#allocation5 + $0x840] sm:$0xff]  ;;  %v5271_v0 = vcombine.high %v499_v53, %v503_v55  ;;  %3305 = vmatprep.subr.bf16.mxu0 %v5143_v60  ;;  %v5270_v3 = vcombine.low %v499_v53, %v503_v55 }
  0x99   :  { %v367_v62 = vld [vmem:[#allocation5 + $0x860] sm:$0xff] }
  0x9a   :  { %v491_v63 = vld [vmem:[#allocation5 + $0xc40] sm:$0xff]  ;;  %v5135_v4 = vcombine.high %v363_v61, %v367_v62  ;;  %3346 = vmatprep.subr.bf16.mxu1 %v5271_v0  ;;  %v5134_v10 = vcombine.low %v363_v61, %v367_v62 }
  0x9b   :  { %v495_v1 = vld [vmem:[#allocation5 + $0xc60] sm:$0xff]  ;;  %3306 = vmatpush1.bf16.msra.mxu0 %v5142_v2  ;;  %3347 = vmatpush1.bf16.msra.mxu1 %v5270_v3 }
  0x9c   :  { %v355_v5 = vld [vmem:[#allocation5 + $0x800] sm:$0xff]  ;;  %v5263_v8 = vcombine.high %v491_v63, %v495_v1  ;;  %3307 = vmatprep.subr.bf16.mxu0 %v5135_v4  ;;  %v5262_v11 = vcombine.low %v491_v63, %v495_v1 }
  0x9d   :  { %v359_v6 = vld [vmem:[#allocation5 + $0x820] sm:$0xff] }
  0x9e   :  { %v483_v7 = vld [vmem:[#allocation5 + $0xc00] sm:$0xff]  ;;  %v5127_v12 = vcombine.high %v355_v5, %v359_v6  ;;  %3348 = vmatprep.subr.bf16.mxu1 %v5263_v8  ;;  %v5126_v19 = vcombine.low %v355_v5, %v359_v6 }
  0x9f   :  { %v487_v9 = vld [vmem:[#allocation5 + $0xc20] sm:$0xff]  ;;  %3308 = vmatpush1.bf16.msra.mxu0 %v5134_v10  ;;  %3349 = vmatpush1.bf16.msra.mxu1 %v5262_v11 }
  0xa0   :  { %v475_v13 = vld [vmem:[#allocation5 + $0xbc0] sm:$0xff]  ;;  %v5255_v17 = vcombine.high %v483_v7, %v487_v9  ;;  %3309 = vmatprep.subr.bf16.mxu0 %v5127_v12  ;;  %v5254_v21 = vcombine.low %v483_v7, %v487_v9 }
  0xa1   :  { %v479_v14 = vld [vmem:[#allocation5 + $0xbe0] sm:$0xff] }
  0xa2   :  { %v603_v15 = vld [vmem:[#allocation5 + $0xfc0] sm:$0xff]  ;;  %v5247_v22 = vcombine.high %v475_v13, %v479_v14  ;;  %3350 = vmatprep.subr.bf16.mxu1 %v5255_v17  ;;  %v5246_v29 = vcombine.low %v475_v13, %v479_v14 }
  0xa3   :  { %v607_v18 = vld [vmem:[#allocation5 + $0xfe0] sm:$0xff]  ;;  %3310 = vmatpush1.bf16.msra.mxu0 %v5126_v19  ;;  %3351 = vmatpush1.bf16.msra.mxu1 %v5254_v21  ;;  %v156_v21 = vld [vmem:[#allocation5 + $0x1c8] sm:$0xff] }
  0xa4   :  { %v467_v23 = vld [vmem:[#allocation5 + $0xb80] sm:$0xff]  ;;  %v5375_v26 = vcombine.high %v603_v15, %v607_v18  ;;  %3311 = vmatprep.subr.bf16.mxu0 %v5247_v22  ;;  %v5374_v30 = vcombine.low %v603_v15, %v607_v18  ;;  %v160_v22 = vld [vmem:[#allocation5 + $0x1e8] sm:$0xff] }
  0xa5   :  { %v471_v24 = vld [vmem:[#allocation5 + $0xba0] sm:$0xff] }
  0xa6   :  { %v595_v25 = vld [vmem:[#allocation5 + $0xf80] sm:$0xff]  ;;  %v5239_v32 = vcombine.high %v467_v23, %v471_v24  ;;  %3352 = vmatprep.subr.bf16.mxu1 %v5375_v26  ;;  %v5238_v38 = vcombine.low %v467_v23, %v471_v24  ;;  %v284_v23 = vld [vmem:[#allocation5 + $0x5c8] sm:$0xff] }
  0xa7   :  { %v599_v27 = vld [vmem:[#allocation5 + $0xfa0] sm:$0xff]  ;;  %3312 = vmatpush2.bf16.msra.mxu0 %v5246_v29  ;;  %3353 = vmatpush2.bf16.msra.mxu1 %v5374_v30  ;;  %v288_v26 = vld [vmem:[#allocation5 + $0x5e8] sm:$0xff] }
  0xa8   :  { %v459_v33 = vld [vmem:[#allocation5 + $0xb40] sm:$0xff]  ;;  %v5367_v36 = vcombine.high %v595_v25, %v599_v27  ;;  %3313 = vmatprep.subr.bf16.mxu0 %v5239_v32  ;;  %v5366_v39 = vcombine.low %v595_v25, %v599_v27  ;;  %v89_v27 = vld [vmem:[#allocation2 + $0x30] sm:$0xff]  ;;  %v4929_v32 = vcombine.high %v156_v21, %v160_v22 }
  0xa9   :  { %v463_v34 = vld [vmem:[#allocation5 + $0xb60] sm:$0xff] }
  0xaa   :  { %v587_v35 = vld [vmem:[#allocation5 + $0xf40] sm:$0xff]  ;;  %v5231_v40 = vcombine.high %v459_v33, %v463_v34  ;;  %3354 = vmatprep.subr.bf16.mxu1 %v5367_v36  ;;  %v5230_v46 = vcombine.low %v459_v33, %v463_v34  ;;  %v148_v33 = vld [vmem:[#allocation5 + $0x188] sm:$0xff]  ;;  %v5057_v36 = vcombine.high %v284_v23, %v288_v26 }
  0xab   :  { %v591_v37 = vld [vmem:[#allocation5 + $0xf60] sm:$0xff]  ;;  %3314 = vmatpush2.bf16.msra.mxu0 %v5238_v38  ;;  %3355 = vmatpush2.bf16.msra.mxu1 %v5366_v39  ;;  %v152_v34 = vld [vmem:[#allocation5 + $0x1a8] sm:$0xff]  ;;  %v5916_v39 = vpack.c.bf16 %v89_v27, %v89_v27 }
  0xac   :  { %v451_v41 = vld [vmem:[#allocation5 + $0xb00] sm:$0xff]  ;;  %v5359_v44 = vcombine.high %v587_v35, %v591_v37  ;;  %3315 = vmatprep.subr.bf16.mxu0 %v5231_v40  ;;  %v5358_v47 = vcombine.low %v587_v35, %v591_v37  ;;  %v276_v35 = vld [vmem:[#allocation5 + $0x588] sm:$0xff]  ;;  %v4928_v40 = vcombine.low %v156_v21, %v160_v22 }
  0xad   :  { %v455_v42 = vld [vmem:[#allocation5 + $0xb20] sm:$0xff]  ;;  %v280_v37 = vld [vmem:[#allocation5 + $0x5a8] sm:$0xff] }
  0xae   :  { %v579_v43 = vld [vmem:[#allocation5 + $0xf00] sm:$0xff]  ;;  %v5223_v48 = vcombine.high %v451_v41, %v455_v42  ;;  %3356 = vmatprep.subr.bf16.mxu1 %v5359_v44  ;;  %v5222_v54 = vcombine.low %v451_v41, %v455_v42  ;;  %v5056_v41 = vcombine.low %v284_v23, %v288_v26  ;;  %v4921_v42 = vcombine.high %v148_v33, %v152_v34  ;;  %v144_v44 = vld [vmem:[#allocation5 + $0x168] sm:$0xff] }
  0xaf   :  { %v583_v45 = vld [vmem:[#allocation5 + $0xf20] sm:$0xff]  ;;  %3316 = vmatpush2.bf16.msra.mxu0 %v5230_v46  ;;  %3357 = vmatpush2.bf16.msra.mxu1 %v5358_v47  ;;  %v268_v46 = vld [vmem:[#allocation5 + $0x548] sm:$0xff] }
  0xb0   :  { %v443_v49 = vld [vmem:[#allocation5 + $0xac0] sm:$0xff]  ;;  %v5351_v52 = vcombine.high %v579_v43, %v583_v45  ;;  %3317 = vmatprep.subr.bf16.mxu0 %v5223_v48  ;;  %v5350_v55 = vcombine.low %v579_v43, %v583_v45  ;;  %v140_v43 = vld [vmem:[#allocation5 + $0x148] sm:$0xff]  ;;  %v5049_v45 = vcombine.high %v276_v35, %v280_v37  ;;  %v4920_v48 = vcombine.low %v148_v33, %v152_v34 }
  0xb1   :  { %v447_v50 = vld [vmem:[#allocation5 + $0xae0] sm:$0xff]  ;;  %v272_v47 = vld [vmem:[#allocation5 + $0x568] sm:$0xff] }
  0xb2   :  { %v571_v51 = vld [vmem:[#allocation5 + $0xec0] sm:$0xff]  ;;  %v5215_v56 = vcombine.high %v443_v49, %v447_v50  ;;  %3358 = vmatprep.subr.bf16.mxu1 %v5351_v52  ;;  %v5214_v0 = vcombine.low %v443_v49, %v447_v50  ;;  %v5048_v49 = vcombine.low %v276_v35, %v280_v37  ;;  %v4913_v50 = vcombine.high %v140_v43, %v144_v44  ;;  %v132_v52 = vld [vmem:[#allocation5 + $0x108] sm:$0xff] }
  0xb3   :  { %v575_v53 = vld [vmem:[#allocation5 + $0xee0] sm:$0xff]  ;;  %3318 = vmatpush2.bf16.msra.mxu0 %v5222_v54  ;;  %3359 = vmatpush2.bf16.msra.mxu1 %v5350_v55  ;;  %v260_v54 = vld [vmem:[#allocation5 + $0x508] sm:$0xff] }
  0xb4   :  { %v435_v57 = vld [vmem:[#allocation5 + $0xa80] sm:$0xff]  ;;  %v5343_v62 = vcombine.high %v571_v51, %v575_v53  ;;  %3319 = vmatprep.subr.bf16.mxu0 %v5215_v56  ;;  %v5342_v1 = vcombine.low %v571_v51, %v575_v53  ;;  %v5041_v51 = vcombine.high %v268_v46, %v272_v47  ;;  %v136_v53 = vld [vmem:[#allocation5 + $0x128] sm:$0xff]  ;;  %v4912_v56 = vcombine.low %v140_v43, %v144_v44 }
  0xb5   :  { %v439_v60 = vld [vmem:[#allocation5 + $0xaa0] sm:$0xff]  ;;  %v264_v55 = vld [vmem:[#allocation5 + $0x528] sm:$0xff] }
  0xb6   :  { %v563_v61 = vld [vmem:[#allocation5 + $0xe80] sm:$0xff]  ;;  %v5207_v2 = vcombine.high %v435_v57, %v439_v60  ;;  %3360 = vmatprep.subr.bf16.mxu1 %v5343_v62  ;;  %v5206_v8 = vcombine.low %v435_v57, %v439_v60  ;;  %v5040_v57 = vcombine.low %v268_v46, %v272_v47  ;;  %v4905_v60 = vcombine.high %v132_v52, %v136_v53  ;;  %v124_v62 = vld [vmem:[#allocation5 + $0xc8] sm:$0xff] }
  0xb7   :  { %v567_v63 = vld [vmem:[#allocation5 + $0xea0] sm:$0xff]  ;;  %3320 = vmatpush2.bf16.msra.mxu0 %v5214_v0  ;;  %3361 = vmatpush2.bf16.msra.mxu1 %v5342_v1  ;;  %v252_v0 = vld [vmem:[#allocation5 + $0x4c8] sm:$0xff] }
  0xb8   :  { %v427_v3 = vld [vmem:[#allocation5 + $0xa40] sm:$0xff]  ;;  %v5335_v6 = vcombine.high %v563_v61, %v567_v63  ;;  %3321 = vmatprep.subr.bf16.mxu0 %v5207_v2  ;;  %v5334_v9 = vcombine.low %v563_v61, %v567_v63  ;;  %v5033_v61 = vcombine.high %v260_v54, %v264_v55  ;;  %v128_v63 = vld [vmem:[#allocation5 + $0xe8] sm:$0xff]  ;;  %v4904_v2 = vcombine.low %v132_v52, %v136_v53 }
  0xb9   :  { %v431_v4 = vld [vmem:[#allocation5 + $0xa60] sm:$0xff]  ;;  %v256_v1 = vld [vmem:[#allocation5 + $0x4e8] sm:$0xff] }
  0xba   :  { %v555_v5 = vld [vmem:[#allocation5 + $0xe40] sm:$0xff]  ;;  %v5199_v10 = vcombine.high %v427_v3, %v431_v4  ;;  %3362 = vmatprep.subr.bf16.mxu1 %v5335_v6  ;;  %v5198_v17 = vcombine.low %v427_v3, %v431_v4  ;;  %v5032_v3 = vcombine.low %v260_v54, %v264_v55  ;;  %v4897_v4 = vcombine.high %v124_v62, %v128_v63  ;;  %v116_v6 = vld [vmem:[#allocation5 + $0x88] sm:$0xff] }
  0xbb   :  { %v559_v7 = vld [vmem:[#allocation5 + $0xe60] sm:$0xff]  ;;  %3322 = vmatpush2.bf16.msra.mxu0 %v5206_v8  ;;  %3363 = vmatpush2.bf16.msra.mxu1 %v5334_v9  ;;  %v244_v8 = vld [vmem:[#allocation5 + $0x488] sm:$0xff] }
  0xbc   :  { %v419_v11 = vld [vmem:[#allocation5 + $0xa00] sm:$0xff]  ;;  %v5327_v14 = vcombine.high %v555_v5, %v559_v7  ;;  %3323 = vmatprep.subr.bf16.mxu0 %v5199_v10  ;;  %v5326_v18 = vcombine.low %v555_v5, %v559_v7  ;;  %v5025_v5 = vcombine.high %v252_v0, %v256_v1  ;;  %v120_v7 = vld [vmem:[#allocation5 + $0xa8] sm:$0xff]  ;;  %v4896_v10 = vcombine.low %v124_v62, %v128_v63 }
  0xbd   :  { %v423_v12 = vld [vmem:[#allocation5 + $0xa20] sm:$0xff]  ;;  %v248_v9 = vld [vmem:[#allocation5 + $0x4a8] sm:$0xff] }
  0xbe   :  { %v547_v13 = vld [vmem:[#allocation5 + $0xe00] sm:$0xff]  ;;  %v5191_v19 = vcombine.high %v419_v11, %v423_v12  ;;  %3364 = vmatprep.subr.bf16.mxu1 %v5327_v14  ;;  %v5190_v29 = vcombine.low %v419_v11, %v423_v12  ;;  %v5024_v11 = vcombine.low %v252_v0, %v256_v1  ;;  %v4889_v12 = vcombine.high %v116_v6, %v120_v7  ;;  %v108_v14 = vld [vmem:[#allocation5 + $0x48] sm:$0xff] }
  0xbf   :  { %v551_v15 = vld [vmem:[#allocation5 + $0xe20] sm:$0xff]  ;;  %3324 = vmatpush2.bf16.msra.mxu0 %v5198_v17  ;;  %3365 = vmatpush2.bf16.msra.mxu1 %v5326_v18  ;;  %v236_v17 = vld [vmem:[#allocation5 + $0x448] sm:$0xff]  ;;  %v5016_v21 = vcombine.low %v244_v8, %v248_v9 }
  0xc0   :  { %v5319_v24 = vcombine.high %v547_v13, %v551_v15  ;;  %v87_v25 = vld [vmem:[#allocation2 + $0x20] sm:$0xff]  ;;  %3325 = vmatprep.subr.bf16.mxu0 %v5191_v19  ;;  %v5318_v30 = vcombine.low %v547_v13, %v551_v15  ;;  %v5017_v13 = vcombine.high %v244_v8, %v248_v9  ;;  %v112_v15 = vld [vmem:[#allocation5 + $0x68] sm:$0xff]  ;;  %v4888_v19 = vcombine.low %v116_v6, %v120_v7 }
  0xc1   :  { %v5914_v38 = vpack.c.bf16 %v87_v25, %v87_v25  ;;  %v240_v18 = vld [vmem:[#allocation5 + $0x468] sm:$0xff]  ;;  %v4881_v22 = vcombine.high %v108_v14, %v112_v15 }
  0xc2   :  { %3366 = vmatprep.subr.bf16.mxu1 %v5319_v24  ;;  %v5009_v23 = vcombine.high %v236_v17, %v240_v18  ;;  %v100_v24 = vld [vmem:[#allocation5 + $0x8] sm:$0xff] }
  0xc3   :  { %3326 = vmatpush2.bf16.msra.mxu0 %v5190_v29  ;;  %3367 = vmatpush2.bf16.msra.mxu1 %v5318_v30  ;;  %v104_v25 = vld [vmem:[#allocation5 + $0x28] sm:$0xff]  ;;  %v4880_v29 = vcombine.low %v108_v14, %v112_v15  ;;  %v5008_v30 = vcombine.low %v236_v17, %v240_v18 }
  0xc4   :  { %3377 = vmatprep.subr.bf16.mxu0 %v4929_v32  ;;  %3418 = vmatprep.subr.bf16.mxu1 %v5057_v36  ;;  %v228_v26 = vld [vmem:[#allocation5 + $0x408] sm:$0xff]  ;;  %v4873_v32 = vcombine.high %v100_v24, %v104_v25 }
  0xc5   :  { %v232_v27 = vld [vmem:[#allocation5 + $0x428] sm:$0xff] }
  0xc6   :  { %3328 = vmatmul.mubr.bf16.vlgmr.msra.gmra.mxu0 %v5914_v38  ;;  %3369 = vmatmul.mubr.bf16.vlgmr.msra.gmra.mxu1 %v5916_v39  ;;  %v5001_v33 = vcombine.high %v228_v26, %v232_v27  ;;  %v220_v34 = vld [vmem:[#allocation5 + $0x3c8] sm:$0xff] }
  0xc7   :  { %3378 = vmatpush1.bf16.msra.mxu0 %v4928_v40  ;;  %3419 = vmatpush1.bf16.msra.mxu1 %v5056_v41  ;;  %v224_v35 = vld [vmem:[#allocation5 + $0x3e8] sm:$0xff]  ;;  %v4872_v40 = vcombine.low %v100_v24, %v104_v25  ;;  %v5000_v41 = vcombine.low %v228_v26, %v232_v27 }
  0xc8   :  { %3379 = vmatprep.subr.bf16.mxu0 %v4921_v42  ;;  %3420 = vmatprep.subr.bf16.mxu1 %v5049_v45  ;;  %v348_v36 = vld [vmem:[#allocation5 + $0x7c8] sm:$0xff]  ;;  %v4993_v42 = vcombine.high %v220_v34, %v224_v35 }
  0xc9   :  { %3409 = vmatprep.mubr.bf16.mxu0 %v5896_v58  ;;  %3450 = vmatprep.mubr.bf16.mxu1 %v5898_v59  ;;  %v352_v37 = vld [vmem:[#allocation5 + $0x7e8] sm:$0xff] }
  0xca   :  { %v5121_v43 = vcombine.high %v348_v36, %v352_v37  ;;  %v212_v44 = vld [vmem:[#allocation5 + $0x388] sm:$0xff] }
  0xcb   :  { %3380 = vmatpush1.bf16.msra.mxu0 %v4920_v48  ;;  %3421 = vmatpush1.bf16.msra.mxu1 %v5048_v49  ;;  %v216_v45 = vld [vmem:[#allocation5 + $0x3a8] sm:$0xff]  ;;  %v4992_v48 = vcombine.low %v220_v34, %v224_v35  ;;  %v5120_v49 = vcombine.low %v348_v36, %v352_v37 }
  0xcc   :  { %3381 = vmatprep.subr.bf16.mxu0 %v4913_v50  ;;  %3422 = vmatprep.subr.bf16.mxu1 %v5041_v51  ;;  %v340_v46 = vld [vmem:[#allocation5 + $0x788] sm:$0xff]  ;;  %v4985_v50 = vcombine.high %v212_v44, %v216_v45 }
  0xcd   :  { %v344_v47 = vld [vmem:[#allocation5 + $0x7a8] sm:$0xff] }
  0xce   :  { %v5113_v51 = vcombine.high %v340_v46, %v344_v47  ;;  %v204_v52 = vld [vmem:[#allocation5 + $0x348] sm:$0xff] }
  0xcf   :  { %3382 = vmatpush1.bf16.msra.mxu0 %v4912_v56  ;;  %3423 = vmatpush1.bf16.msra.mxu1 %v5040_v57  ;;  %v208_v53 = vld [vmem:[#allocation5 + $0x368] sm:$0xff]  ;;  %v4984_v56 = vcombine.low %v212_v44, %v216_v45  ;;  %v5112_v57 = vcombine.low %v340_v46, %v344_v47 }
  0xd0   :  { %3383 = vmatprep.subr.bf16.mxu0 %v4905_v60  ;;  %3424 = vmatprep.subr.bf16.mxu1 %v5033_v61  ;;  %v332_v54 = vld [vmem:[#allocation5 + $0x748] sm:$0xff]  ;;  %v4977_v60 = vcombine.high %v204_v52, %v208_v53 }
  0xd1   :  { %v336_v55 = vld [vmem:[#allocation5 + $0x768] sm:$0xff] }
  0xd2   :  { %v5105_v61 = vcombine.high %v332_v54, %v336_v55  ;;  %v196_v62 = vld [vmem:[#allocation5 + $0x308] sm:$0xff] }
  0xd3   :  { %3384 = vmatpush1.bf16.msra.mxu0 %v4904_v2  ;;  %3425 = vmatpush1.bf16.msra.mxu1 %v5032_v3  ;;  %v200_v63 = vld [vmem:[#allocation5 + $0x328] sm:$0xff]  ;;  %v4976_v2 = vcombine.low %v204_v52, %v208_v53  ;;  %v5104_v3 = vcombine.low %v332_v54, %v336_v55 }
  0xd4   :  { %3385 = vmatprep.subr.bf16.mxu0 %v4897_v4  ;;  %3426 = vmatprep.subr.bf16.mxu1 %v5025_v5  ;;  %v324_v0 = vld [vmem:[#allocation5 + $0x708] sm:$0xff]  ;;  %v4969_v4 = vcombine.high %v196_v62, %v200_v63 }
  0xd5   :  { %v328_v1 = vld [vmem:[#allocation5 + $0x728] sm:$0xff] }
  0xd6   :  { %v5097_v5 = vcombine.high %v324_v0, %v328_v1  ;;  %v188_v6 = vld [vmem:[#allocation5 + $0x2c8] sm:$0xff] }
  0xd7   :  { %3386 = vmatpush1.bf16.msra.mxu0 %v4896_v10  ;;  %3427 = vmatpush1.bf16.msra.mxu1 %v5024_v11  ;;  %v192_v7 = vld [vmem:[#allocation5 + $0x2e8] sm:$0xff]  ;;  %v4968_v10 = vcombine.low %v196_v62, %v200_v63  ;;  %v5096_v11 = vcombine.low %v324_v0, %v328_v1 }
  0xd8   :  { %3387 = vmatprep.subr.bf16.mxu0 %v4889_v12  ;;  %3428 = vmatprep.subr.bf16.mxu1 %v5017_v13  ;;  %v316_v8 = vld [vmem:[#allocation5 + $0x6c8] sm:$0xff]  ;;  %v4961_v12 = vcombine.high %v188_v6, %v192_v7 }
  0xd9   :  { %v320_v9 = vld [vmem:[#allocation5 + $0x6e8] sm:$0xff] }
  0xda   :  { %v5089_v13 = vcombine.high %v316_v8, %v320_v9  ;;  %v180_v14 = vld [vmem:[#allocation5 + $0x288] sm:$0xff] }
  0xdb   :  { %3388 = vmatpush1.bf16.msra.mxu0 %v4888_v19  ;;  %3429 = vmatpush1.bf16.msra.mxu1 %v5016_v21  ;;  %v184_v15 = vld [vmem:[#allocation5 + $0x2a8] sm:$0xff]  ;;  %v4960_v19 = vcombine.low %v188_v6, %v192_v7  ;;  %v5088_v21 = vcombine.low %v316_v8, %v320_v9 }
  0xdc   :  { %3389 = vmatprep.subr.bf16.mxu0 %v4881_v22  ;;  %3430 = vmatprep.subr.bf16.mxu1 %v5009_v23  ;;  %v308_v17 = vld [vmem:[#allocation5 + $0x688] sm:$0xff]  ;;  %v4953_v22 = vcombine.high %v180_v14, %v184_v15 }
  0xdd   :  { %v312_v18 = vld [vmem:[#allocation5 + $0x6a8] sm:$0xff] }
  0xde   :  { %v5081_v23 = vcombine.high %v308_v17, %v312_v18  ;;  %v172_v24 = vld [vmem:[#allocation5 + $0x248] sm:$0xff] }
  0xdf   :  { %3390 = vmatpush1.bf16.msra.mxu0 %v4880_v29  ;;  %3431 = vmatpush1.bf16.msra.mxu1 %v5008_v30  ;;  %v176_v25 = vld [vmem:[#allocation5 + $0x268] sm:$0xff]  ;;  %v4952_v29 = vcombine.low %v180_v14, %v184_v15  ;;  %v5080_v30 = vcombine.low %v308_v17, %v312_v18 }
  0xe0   :  { %3391 = vmatprep.subr.bf16.mxu0 %v4873_v32  ;;  %3432 = vmatprep.subr.bf16.mxu1 %v5001_v33  ;;  %v300_v26 = vld [vmem:[#allocation5 + $0x648] sm:$0xff]  ;;  %v4945_v32 = vcombine.high %v172_v24, %v176_v25 }
  0xe1   :  { %v304_v27 = vld [vmem:[#allocation5 + $0x668] sm:$0xff] }
  0xe2   :  { %v5073_v33 = vcombine.high %v300_v26, %v304_v27  ;;  %v164_v34 = vld [vmem:[#allocation5 + $0x208] sm:$0xff] }
  0xe3   :  { %3392 = vmatpush1.bf16.msra.mxu0 %v4872_v40  ;;  %3433 = vmatpush1.bf16.msra.mxu1 %v5000_v41  ;;  %v168_v35 = vld [vmem:[#allocation5 + $0x228] sm:$0xff]  ;;  %v4944_v40 = vcombine.low %v172_v24, %v176_v25  ;;  %v5072_v41 = vcombine.low %v300_v26, %v304_v27 }
  0xe4   :  { %3393 = vmatprep.subr.bf16.mxu0 %v4993_v42  ;;  %3434 = vmatprep.subr.bf16.mxu1 %v5121_v43  ;;  %v292_v36 = vld [vmem:[#allocation5 + $0x608] sm:$0xff]  ;;  %v4937_v42 = vcombine.high %v164_v34, %v168_v35 }
  0xe5   :  { %v296_v37 = vld [vmem:[#allocation5 + $0x628] sm:$0xff] }
  0xe6   :  { %v5065_v43 = vcombine.high %v292_v36, %v296_v37  ;;  %v412_v44 = vld [vmem:[#allocation5 + $0x9c8] sm:$0xff] }
  0xe7   :  { %3394 = vmatpush2.bf16.msra.mxu0 %v4992_v48  ;;  %3435 = vmatpush2.bf16.msra.mxu1 %v5120_v49  ;;  %v416_v45 = vld [vmem:[#allocation5 + $0x9e8] sm:$0xff]  ;;  %v4936_v48 = vcombine.low %v164_v34, %v168_v35  ;;  %v5064_v49 = vcombine.low %v292_v36, %v296_v37 }
  0xe8   :  { %3395 = vmatprep.subr.bf16.mxu0 %v4985_v50  ;;  %3436 = vmatprep.subr.bf16.mxu1 %v5113_v51  ;;  %v540_v46 = vld [vmem:[#allocation5 + $0xdc8] sm:$0xff]  ;;  %v5185_v50 = vcombine.high %v412_v44, %v416_v45 }
  0xe9   :  { %v544_v47 = vld [vmem:[#allocation5 + $0xde8] sm:$0xff] }
  0xea   :  { %v5313_v51 = vcombine.high %v540_v46, %v544_v47  ;;  %v404_v52 = vld [vmem:[#allocation5 + $0x988] sm:$0xff] }
  0xeb   :  { %3396 = vmatpush2.bf16.msra.mxu0 %v4984_v56  ;;  %3437 = vmatpush2.bf16.msra.mxu1 %v5112_v57  ;;  %v408_v53 = vld [vmem:[#allocation5 + $0x9a8] sm:$0xff]  ;;  %v5184_v56 = vcombine.low %v412_v44, %v416_v45  ;;  %v5312_v57 = vcombine.low %v540_v46, %v544_v47 }
  0xec   :  { %3397 = vmatprep.subr.bf16.mxu0 %v4977_v60  ;;  %3438 = vmatprep.subr.bf16.mxu1 %v5105_v61  ;;  %v532_v54 = vld [vmem:[#allocation5 + $0xd88] sm:$0xff]  ;;  %v5177_v60 = vcombine.high %v404_v52, %v408_v53 }
  0xed   :  { %v536_v55 = vld [vmem:[#allocation5 + $0xda8] sm:$0xff] }
  0xee   :  { %v5305_v61 = vcombine.high %v532_v54, %v536_v55  ;;  %v396_v62 = vld [vmem:[#allocation5 + $0x948] sm:$0xff] }
  0xef   :  { %3398 = vmatpush2.bf16.msra.mxu0 %v4976_v2  ;;  %3439 = vmatpush2.bf16.msra.mxu1 %v5104_v3  ;;  %v400_v63 = vld [vmem:[#allocation5 + $0x968] sm:$0xff]  ;;  %v5176_v2 = vcombine.low %v404_v52, %v408_v53  ;;  %v5304_v3 = vcombine.low %v532_v54, %v536_v55 }
  0xf0   :  { %3399 = vmatprep.subr.bf16.mxu0 %v4969_v4  ;;  %3440 = vmatprep.subr.bf16.mxu1 %v5097_v5  ;;  %v524_v0 = vld [vmem:[#allocation5 + $0xd48] sm:$0xff]  ;;  %v5169_v4 = vcombine.high %v396_v62, %v400_v63 }
  0xf1   :  { %v528_v1 = vld [vmem:[#allocation5 + $0xd68] sm:$0xff] }
  0xf2   :  { %v5297_v5 = vcombine.high %v524_v0, %v528_v1  ;;  %v388_v6 = vld [vmem:[#allocation5 + $0x908] sm:$0xff] }
  0xf3   :  { %3400 = vmatpush2.bf16.msra.mxu0 %v4968_v10  ;;  %3441 = vmatpush2.bf16.msra.mxu1 %v5096_v11  ;;  %v392_v7 = vld [vmem:[#allocation5 + $0x928] sm:$0xff]  ;;  %v5168_v10 = vcombine.low %v396_v62, %v400_v63  ;;  %v5296_v11 = vcombine.low %v524_v0, %v528_v1 }
  0xf4   :  { %3401 = vmatprep.subr.bf16.mxu0 %v4961_v12  ;;  %3442 = vmatprep.subr.bf16.mxu1 %v5089_v13  ;;  %v516_v8 = vld [vmem:[#allocation5 + $0xd08] sm:$0xff]  ;;  %v5161_v12 = vcombine.high %v388_v6, %v392_v7 }
  0xf5   :  { %v520_v9 = vld [vmem:[#allocation5 + $0xd28] sm:$0xff] }
  0xf6   :  { %v5289_v13 = vcombine.high %v516_v8, %v520_v9  ;;  %v380_v14 = vld [vmem:[#allocation5 + $0x8c8] sm:$0xff] }
  0xf7   :  { %3402 = vmatpush2.bf16.msra.mxu0 %v4960_v19  ;;  %3443 = vmatpush2.bf16.msra.mxu1 %v5088_v21  ;;  %v384_v15 = vld [vmem:[#allocation5 + $0x8e8] sm:$0xff]  ;;  %v5160_v19 = vcombine.low %v388_v6, %v392_v7  ;;  %v5288_v21 = vcombine.low %v516_v8, %v520_v9 }
  0xf8   :  { %3403 = vmatprep.subr.bf16.mxu0 %v4953_v22  ;;  %3444 = vmatprep.subr.bf16.mxu1 %v5081_v23  ;;  %v508_v17 = vld [vmem:[#allocation5 + $0xcc8] sm:$0xff]  ;;  %v5153_v22 = vcombine.high %v380_v14, %v384_v15 }
  0xf9   :  { %v512_v18 = vld [vmem:[#allocation5 + $0xce8] sm:$0xff] }
  0xfa   :  { %v5281_v23 = vcombine.high %v508_v17, %v512_v18  ;;  %v372_v24 = vld [vmem:[#allocation5 + $0x888] sm:$0xff] }
  0xfb   :  { %3404 = vmatpush2.bf16.msra.mxu0 %v4952_v29  ;;  %3445 = vmatpush2.bf16.msra.mxu1 %v5080_v30  ;;  %v376_v25 = vld [vmem:[#allocation5 + $0x8a8] sm:$0xff]  ;;  %v5152_v29 = vcombine.low %v380_v14, %v384_v15  ;;  %v5280_v30 = vcombine.low %v508_v17, %v512_v18 }
  0xfc   :  { %3405 = vmatprep.subr.bf16.mxu0 %v4945_v32  ;;  %3446 = vmatprep.subr.bf16.mxu1 %v5073_v33  ;;  %v500_v26 = vld [vmem:[#allocation5 + $0xc88] sm:$0xff]  ;;  %v5145_v32 = vcombine.high %v372_v24, %v376_v25 }
  0xfd   :  { %v504_v27 = vld [vmem:[#allocation5 + $0xca8] sm:$0xff] }
  0xfe   :  { %v5273_v33 = vcombine.high %v500_v26, %v504_v27  ;;  %v364_v34 = vld [vmem:[#allocation5 + $0x848] sm:$0xff] }
  0xff   :  { %3406 = vmatpush2.bf16.msra.mxu0 %v4944_v40  ;;  %3447 = vmatpush2.bf16.msra.mxu1 %v5072_v41  ;;  %v368_v35 = vld [vmem:[#allocation5 + $0x868] sm:$0xff]  ;;  %v5144_v40 = vcombine.low %v372_v24, %v376_v25  ;;  %v5272_v41 = vcombine.low %v500_v26, %v504_v27 }
 0x100   :  { %3407 = vmatprep.subr.bf16.mxu0 %v4937_v42  ;;  %3448 = vmatprep.subr.bf16.mxu1 %v5065_v43  ;;  %v492_v36 = vld [vmem:[#allocation5 + $0xc48] sm:$0xff]  ;;  %v5137_v42 = vcombine.high %v364_v34, %v368_v35 }
 0x101   :  { %v496_v37 = vld [vmem:[#allocation5 + $0xc68] sm:$0xff] }
 0x102   :  { %v5265_v43 = vcombine.high %v492_v36, %v496_v37  ;;  %v356_v44 = vld [vmem:[#allocation5 + $0x808] sm:$0xff] }
 0x103   :  { %3408 = vmatpush2.bf16.msra.mxu0 %v4936_v48  ;;  %3449 = vmatpush2.bf16.msra.mxu1 %v5064_v49  ;;  %v360_v45 = vld [vmem:[#allocation5 + $0x828] sm:$0xff]  ;;  %v5136_v48 = vcombine.low %v364_v34, %v368_v35  ;;  %v5264_v49 = vcombine.low %v492_v36, %v496_v37 }
 0x104   :  { %3459 = vmatprep.subr.bf16.mxu0 %v5185_v50  ;;  %3500 = vmatprep.subr.bf16.mxu1 %v5313_v51  ;;  %v484_v46 = vld [vmem:[#allocation5 + $0xc08] sm:$0xff]  ;;  %v5129_v50 = vcombine.high %v356_v44, %v360_v45 }
 0x105   :  { %v488_v47 = vld [vmem:[#allocation5 + $0xc28] sm:$0xff] }
 0x106   :  { %3410 = vmatmul.mubr.bf16.vlgmr.msra.gmra.mxu0 %v5902_v16  ;;  %3451 = vmatmul.mubr.bf16.vlgmr.msra.gmra.mxu1 %v5904_v20  ;;  %v5257_v51 = vcombine.high %v484_v46, %v488_v47  ;;  %v476_v52 = vld [vmem:[#allocation5 + $0xbc8] sm:$0xff] }
 0x107   :  { %3460 = vmatpush1.bf16.msra.mxu0 %v5184_v56  ;;  %3501 = vmatpush1.bf16.msra.mxu1 %v5312_v57  ;;  %v480_v53 = vld [vmem:[#allocation5 + $0xbe8] sm:$0xff]  ;;  %v5128_v56 = vcombine.low %v356_v44, %v360_v45  ;;  %v5256_v57 = vcombine.low %v484_v46, %v488_v47 }
 0x108   :  { %3461 = vmatprep.subr.bf16.mxu0 %v5177_v60  ;;  %3502 = vmatprep.subr.bf16.mxu1 %v5305_v61  ;;  %v604_v54 = vld [vmem:[#allocation5 + $0xfc8] sm:$0xff]  ;;  %v5249_v60 = vcombine.high %v476_v52, %v480_v53 }
 0x109   :  { %3491 = vmatprep.mubr.bf16.mxu0 %v5906_v28  ;;  %3532 = vmatprep.mubr.bf16.mxu1 %v5909_v31  ;;  %v608_v55 = vld [vmem:[#allocation5 + $0xfe8] sm:$0xff] }
 0x10a   :  { %v5377_v61 = vcombine.high %v604_v54, %v608_v55  ;;  %v468_v62 = vld [vmem:[#allocation5 + $0xb88] sm:$0xff] }
 0x10b   :  { %3462 = vmatpush1.bf16.msra.mxu0 %v5176_v2  ;;  %3503 = vmatpush1.bf16.msra.mxu1 %v5304_v3  ;;  %v472_v63 = vld [vmem:[#allocation5 + $0xba8] sm:$0xff]  ;;  %v5248_v2 = vcombine.low %v476_v52, %v480_v53  ;;  %v5376_v3 = vcombine.low %v604_v54, %v608_v55 }
 0x10c   :  { %3463 = vmatprep.subr.bf16.mxu0 %v5169_v4  ;;  %3504 = vmatprep.subr.bf16.mxu1 %v5297_v5  ;;  %v596_v0 = vld [vmem:[#allocation5 + $0xf88] sm:$0xff]  ;;  %v5241_v4 = vcombine.high %v468_v62, %v472_v63 }
 0x10d   :  { %v600_v1 = vld [vmem:[#allocation5 + $0xfa8] sm:$0xff] }
 0x10e   :  { %v5369_v5 = vcombine.high %v596_v0, %v600_v1  ;;  %v460_v6 = vld [vmem:[#allocation5 + $0xb48] sm:$0xff] }
 0x10f   :  { %3464 = vmatpush1.bf16.msra.mxu0 %v5168_v10  ;;  %3505 = vmatpush1.bf16.msra.mxu1 %v5296_v11  ;;  %v464_v7 = vld [vmem:[#allocation5 + $0xb68] sm:$0xff]  ;;  %v5240_v10 = vcombine.low %v468_v62, %v472_v63  ;;  %v5368_v11 = vcombine.low %v596_v0, %v600_v1  ;;  %v157_v0 = vld [vmem:[#allocation5 + $0x1d0] sm:$0xff] }
 0x110   :  { %3465 = vmatprep.subr.bf16.mxu0 %v5161_v12  ;;  %3506 = vmatprep.subr.bf16.mxu1 %v5289_v13  ;;  %v588_v8 = vld [vmem:[#allocation5 + $0xf48] sm:$0xff]  ;;  %v5233_v12 = vcombine.high %v460_v6, %v464_v7  ;;  %v161_v1 = vld [vmem:[#allocation5 + $0x1f0] sm:$0xff] }
 0x111   :  { %v592_v9 = vld [vmem:[#allocation5 + $0xf68] sm:$0xff] }
 0x112   :  { %v5361_v13 = vcombine.high %v588_v8, %v592_v9  ;;  %v452_v14 = vld [vmem:[#allocation5 + $0xb08] sm:$0xff] }
 0x113   :  { %3466 = vmatpush1.bf16.msra.mxu0 %v5160_v19  ;;  %3507 = vmatpush1.bf16.msra.mxu1 %v5288_v21  ;;  %v456_v15 = vld [vmem:[#allocation5 + $0xb28] sm:$0xff]  ;;  %v5232_v19 = vcombine.low %v460_v6, %v464_v7  ;;  %v5360_v21 = vcombine.low %v588_v8, %v592_v9  ;;  %v5929_v7 = vld [vmem:[#allocation7] sm:$0xff]  ;;  %v4931_v8 = vcombine.high %v157_v0, %v161_v1 }
 0x114   :  { %3467 = vmatprep.subr.bf16.mxu0 %v5153_v22  ;;  %3508 = vmatprep.subr.bf16.mxu1 %v5281_v23  ;;  %v580_v17 = vld [vmem:[#allocation5 + $0xf08] sm:$0xff]  ;;  %v5225_v22 = vcombine.high %v452_v14, %v456_v15 }
 0x115   :  { %v584_v18 = vld [vmem:[#allocation5 + $0xf28] sm:$0xff] }
 0x116   :  { %v5353_v23 = vcombine.high %v580_v17, %v584_v18  ;;  %v444_v24 = vld [vmem:[#allocation5 + $0xac8] sm:$0xff] }
 0x117   :  { %3468 = vmatpush1.bf16.msra.mxu0 %v5152_v29  ;;  %3509 = vmatpush1.bf16.msra.mxu1 %v5280_v30  ;;  %v448_v25 = vld [vmem:[#allocation5 + $0xae8] sm:$0xff]  ;;  %v5224_v29 = vcombine.low %v452_v14, %v456_v15  ;;  %v5352_v30 = vcombine.low %v580_v17, %v584_v18  ;;  %v281_v14 = vld [vmem:[#allocation5 + $0x5b0] sm:$0xff]  ;;  %v4930_v17 = vcombine.low %v157_v0, %v161_v1 }
 0x118   :  { %3469 = vmatprep.subr.bf16.mxu0 %v5145_v32  ;;  %3510 = vmatprep.subr.bf16.mxu1 %v5273_v33  ;;  %v572_v26 = vld [vmem:[#allocation5 + $0xec8] sm:$0xff]  ;;  %v5217_v32 = vcombine.high %v444_v24, %v448_v25 }
 0x119   :  { %v576_v27 = vld [vmem:[#allocation5 + $0xee8] sm:$0xff] }
 0x11a   :  { %v5345_v33 = vcombine.high %v572_v26, %v576_v27  ;;  %v436_v34 = vld [vmem:[#allocation5 + $0xa88] sm:$0xff] }
 0x11b   :  { %3470 = vmatpush1.bf16.msra.mxu0 %v5144_v40  ;;  %3511 = vmatpush1.bf16.msra.mxu1 %v5272_v41  ;;  %v440_v35 = vld [vmem:[#allocation5 + $0xaa8] sm:$0xff]  ;;  %v5216_v40 = vcombine.low %v444_v24, %v448_v25  ;;  %v5344_v41 = vcombine.low %v572_v26, %v576_v27  ;;  %v145_v24 = vld [vmem:[#allocation5 + $0x170] sm:$0xff] }
 0x11c   :  { %3471 = vmatprep.subr.bf16.mxu0 %v5137_v42  ;;  %3512 = vmatprep.subr.bf16.mxu1 %v5265_v43  ;;  %v564_v36 = vld [vmem:[#allocation5 + $0xe88] sm:$0xff]  ;;  %v5209_v42 = vcombine.high %v436_v34, %v440_v35  ;;  %v269_v26 = vld [vmem:[#allocation5 + $0x550] sm:$0xff] }
 0x11d   :  { %v568_v37 = vld [vmem:[#allocation5 + $0xea8] sm:$0xff]  ;;  %v273_v27 = vld [vmem:[#allocation5 + $0x570] sm:$0xff] }
 0x11e   :  { %v5337_v43 = vcombine.high %v564_v36, %v568_v37  ;;  %v428_v44 = vld [vmem:[#allocation5 + $0xa48] sm:$0xff] }
 0x11f   :  { %3472 = vmatpush1.bf16.msra.mxu0 %v5136_v48  ;;  %3513 = vmatpush1.bf16.msra.mxu1 %v5264_v49  ;;  %v432_v45 = vld [vmem:[#allocation5 + $0xa68] sm:$0xff]  ;;  %v5208_v48 = vcombine.low %v436_v34, %v440_v35  ;;  %v613_v49 = vlaneseq }
 0x120   :  { %3473 = vmatprep.subr.bf16.mxu0 %v5129_v50  ;;  %3514 = vmatprep.subr.bf16.mxu1 %v5257_v51  ;;  %v556_v46 = vld [vmem:[#allocation5 + $0xe48] sm:$0xff]  ;;  %v5336_v50 = vcombine.low %v564_v36, %v568_v37  ;;  %v5201_v51 = vcombine.high %v428_v44, %v432_v45 }
 0x121   :  { %v560_v47 = vld [vmem:[#allocation5 + $0xe68] sm:$0xff] }
 0x122   :  { %v5329_v52 = vcombine.high %v556_v46, %v560_v47  ;;  %v420_v53 = vld [vmem:[#allocation5 + $0xa08] sm:$0xff] }
 0x123   :  { %3474 = vmatpush1.bf16.msra.mxu0 %v5128_v56  ;;  %3515 = vmatpush1.bf16.msra.mxu1 %v5256_v57  ;;  %v424_v54 = vld [vmem:[#allocation5 + $0xa28] sm:$0xff]  ;;  %v5200_v57 = vcombine.low %v428_v44, %v432_v45  ;;  %v261_v45 = vld [vmem:[#allocation5 + $0x510] sm:$0xff] }
 0x124   :  { %3475 = vmatprep.subr.bf16.mxu0 %v5249_v60  ;;  %3516 = vmatprep.subr.bf16.mxu1 %v5377_v61  ;;  %v548_v55 = vld [vmem:[#allocation5 + $0xe08] sm:$0xff]  ;;  %v5926_v60 = vshrl.u32 %v613_v49, 7  ;;  %v5328_v61 = vcombine.low %v556_v46, %v560_v47  ;;  %v5193_v62 = vcombine.high %v420_v53, %v424_v54  ;;  %v265_v46 = vld [vmem:[#allocation5 + $0x530] sm:$0xff] }
 0x125   :  { %v552_v56 = vld [vmem:[#allocation5 + $0xe28] sm:$0xff] }
 0x126   :  { %v5321_v63 = vcombine.high %v548_v55, %v552_v56  ;;  %v5320_v6 = vcombine.low %v548_v55, %v552_v56  ;;  %v125_v55 = vld [vmem:[#allocation5 + $0xd0] sm:$0xff] }
 0x127   :  { %3476 = vmatpush2.bf16.msra.mxu0 %v5248_v2  ;;  %3517 = vmatpush2.bf16.msra.mxu1 %v5376_v3  ;;  %v285_v2 = vld [vmem:[#allocation5 + $0x5d0] sm:$0xff] }
 0x128   :  { %3477 = vmatprep.subr.bf16.mxu0 %v5241_v4  ;;  %3518 = vmatprep.subr.bf16.mxu1 %v5369_v5  ;;  %v289_v3 = vld [vmem:[#allocation5 + $0x5f0] sm:$0xff]  ;;  %v5192_v4 = vcombine.low %v420_v53, %v424_v54  ;;  %v615_v5 = vsub.s32 0, %v5926_v60  ;;  %v5035_v54 = vcombine.high %v261_v45, %v265_v46 }
 0x129   :  { %v5059_v9 = vcombine.high %v285_v2, %v289_v3  ;;  %v5058_v18 = vcombine.low %v285_v2, %v289_v3  ;;  %v129_v56 = vld [vmem:[#allocation5 + $0xf0] sm:$0xff] }
 0x12a   :  { %v616_v15 = vrot.slane %v5929_v7, %v615_v5  ;;  %v4899_v0 = vcombine.high %v125_v55, %v129_v56  ;;  %v117_v2 = vld [vmem:[#allocation5 + $0x90] sm:$0xff] }
 0x12b   :  { %3478 = vmatpush2.bf16.msra.mxu0 %v5240_v10  ;;  %3519 = vmatpush2.bf16.msra.mxu1 %v5368_v11  ;;  %v619_v10 = vsub.s32 1, %v5926_v60  ;;  %v149_v11 = vld [vmem:[#allocation5 + $0x190] sm:$0xff] }
 0x12c   :  { %3479 = vmatprep.subr.bf16.mxu0 %v5233_v12  ;;  %3520 = vmatprep.subr.bf16.mxu1 %v5361_v13  ;;  %v153_v12 = vld [vmem:[#allocation5 + $0x1b0] sm:$0xff] }
 0x12d   :  { %v277_v13 = vld [vmem:[#allocation5 + $0x590] sm:$0xff] }
 0x12e   :  { %v5050_v34 = vcombine.low %v277_v13, %v281_v14  ;;  %v121_v3 = vld [vmem:[#allocation5 + $0xb0] sm:$0xff] }
 0x12f   :  { %3480 = vmatpush2.bf16.msra.mxu0 %v5232_v19  ;;  %3521 = vmatpush2.bf16.msra.mxu1 %v5360_v21  ;;  %v4923_v19 = vcombine.high %v149_v11, %v153_v12  ;;  %v620_v21 = vrot.slane %v5929_v7, %v619_v10 }
 0x130   :  { %3481 = vmatprep.subr.bf16.mxu0 %v5225_v22  ;;  %3522 = vmatprep.subr.bf16.mxu1 %v5353_v23  ;;  %v5051_v22 = vcombine.high %v277_v13, %v281_v14  ;;  %v141_v23 = vld [vmem:[#allocation5 + $0x150] sm:$0xff] }
 0x131   :  { %v4915_v35 = vcombine.high %v141_v23, %v145_v24  ;;  %v4914_v49 = vcombine.low %v141_v23, %v145_v24  ;;  %v109_v13 = vld [vmem:[#allocation5 + $0x50] sm:$0xff] }
 0x132   :  { %v113_v14 = vld [vmem:[#allocation5 + $0x70] sm:$0xff] }
 0x133   :  { %3482 = vmatpush2.bf16.msra.mxu0 %v5224_v29  ;;  %3523 = vmatpush2.bf16.msra.mxu1 %v5352_v30  ;;  %v101_v23 = vld [vmem:[#allocation5 + $0x10] sm:$0xff] }
 0x134   :  { %3483 = vmatprep.subr.bf16.mxu0 %v5217_v32  ;;  %3524 = vmatprep.subr.bf16.mxu1 %v5345_v33  ;;  %v4922_v32 = vcombine.low %v149_v11, %v153_v12  ;;  %v4891_v11 = vcombine.high %v117_v2, %v121_v3  ;;  %v105_v24 = vld [vmem:[#allocation5 + $0x30] sm:$0xff] }
 0x137   :  { %3484 = vmatpush2.bf16.msra.mxu0 %v5216_v40  ;;  %3525 = vmatpush2.bf16.msra.mxu1 %v5344_v41  ;;  %v5043_v41 = vcombine.high %v269_v26, %v273_v27 }
 0x138   :  { %3485 = vmatprep.subr.bf16.mxu0 %v5209_v42  ;;  %3526 = vmatprep.subr.bf16.mxu1 %v5337_v43  ;;  %v133_v42 = vld [vmem:[#allocation5 + $0x110] sm:$0xff] }
 0x139   :  { %v137_v43 = vld [vmem:[#allocation5 + $0x130] sm:$0xff] }
 0x13b   :  { %3486 = vmatpush2.bf16.msra.mxu0 %v5208_v48  ;;  %3527 = vmatpush2.bf16.msra.mxu1 %v5336_v50 }
 0x13c   :  { %3487 = vmatprep.subr.bf16.mxu0 %v5201_v51  ;;  %3528 = vmatprep.subr.bf16.mxu1 %v5329_v52  ;;  %v5042_v51 = vcombine.low %v269_v26, %v273_v27  ;;  %v4907_v52 = vcombine.high %v133_v42, %v137_v43  ;;  %v233_v26 = vld [vmem:[#allocation5 + $0x430] sm:$0xff]  ;;  %v4882_v27 = vcombine.low %v109_v13, %v113_v14 }
 0x13f   :  { %3488 = vmatpush2.bf16.msra.mxu0 %v5200_v57  ;;  %3529 = vmatpush2.bf16.msra.mxu1 %v5328_v61  ;;  %v253_v57 = vld [vmem:[#allocation5 + $0x4d0] sm:$0xff] }
 0x140   :  { %3489 = vmatprep.subr.bf16.mxu0 %v5193_v62  ;;  %3530 = vmatprep.subr.bf16.mxu1 %v5321_v63  ;;  %v257_v61 = vld [vmem:[#allocation5 + $0x4f0] sm:$0xff]  ;;  %v4906_v62 = vcombine.low %v133_v42, %v137_v43  ;;  %v5034_v63 = vcombine.low %v261_v45, %v265_v46 }
 0x141   :  { %v5027_v1 = vcombine.high %v253_v57, %v257_v61  ;;  %v217_v45 = vld [vmem:[#allocation5 + $0x3b0] sm:$0xff] }
 0x142   :  { %v341_v46 = vld [vmem:[#allocation5 + $0x790] sm:$0xff] }
 0x143   :  { %3490 = vmatpush2.bf16.msra.mxu0 %v5192_v4  ;;  %3531 = vmatpush2.bf16.msra.mxu1 %v5320_v6  ;;  %v245_v4 = vld [vmem:[#allocation5 + $0x490] sm:$0xff] }
 0x144   :  { %3541 = vmatprep.subr.bf16.mxu0 %v4931_v8  ;;  %3582 = vmatprep.subr.bf16.mxu1 %v5059_v9  ;;  %v249_v6 = vld [vmem:[#allocation5 + $0x4b0] sm:$0xff]  ;;  %v4898_v8 = vcombine.low %v125_v55, %v129_v56  ;;  %v5026_v9 = vcombine.low %v253_v57, %v257_v61 }
 0x145   :  { %v3288_v30 = vpop.f32.mrf.mxu1  ;;  %v5019_v12 = vcombine.high %v245_v4, %v249_v6  ;;  %v333_v55 = vld [vmem:[#allocation5 + $0x750] sm:$0xff] }
 0x146   :  { %v3247_v25 = vpop.f32.mrf.mxu0  ;;  %3492 = vmatmul.mubr.bf16.vlgmr.msra.gmra.mxu0 %v5914_v38  ;;  %3533 = vmatmul.mubr.bf16.vlgmr.msra.gmra.mxu1 %v5916_v39  ;;  %v337_v56 = vld [vmem:[#allocation5 + $0x770] sm:$0xff] }
 0x147   :  { %v3248_v29 = vadd.f32 %v3247_v25, %v616_v15  ;;  %3542 = vmatpush1.bf16.msra.mxu0 %v4930_v17  ;;  %3583 = vmatpush1.bf16.msra.mxu1 %v5058_v18  ;;  %v3290_v40 = vpop.f32.mrf.mxu1  ;;  %v237_v15 = vld [vmem:[#allocation5 + $0x450] sm:$0xff]  ;;  %v4890_v18 = vcombine.low %v117_v2, %v121_v3 }
 0x148   :  { %v3249_v33 = vpop.f32.mrf.mxu0  ;;  %3543 = vmatprep.subr.bf16.mxu0 %v4923_v19  ;;  %3584 = vmatprep.subr.bf16.mxu1 %v5051_v22  ;;  %v241_v17 = vld [vmem:[#allocation5 + $0x470] sm:$0xff]  ;;  %v5018_v19 = vcombine.low %v245_v4, %v249_v6  ;;  %v5106_v6 = vcombine.low %v333_v55, %v337_v56 }
 0x149   :  { %v5940_v36 = vadd.f32 %v3288_v30, %v3248_v29  ;;  %v3250_v37 = vadd.f32 %v3249_v33, %v620_v21  ;;  %3573 = vmatprep.mubr.bf16.mxu0 %v5896_v58  ;;  %3614 = vmatprep.mubr.bf16.mxu1 %v5898_v59  ;;  %v3292_v48 = vpop.f32.mrf.mxu1  ;;  %v4883_v21 = vcombine.high %v109_v13, %v113_v14  ;;  %v229_v25 = vld [vmem:[#allocation5 + $0x410] sm:$0xff] }
 0x14a   :  { %v3251_v44 = vpop.f32.mrf.mxu0  ;;  %v5011_v22 = vcombine.high %v237_v15, %v241_v17  ;;  %v5010_v29 = vcombine.low %v237_v15, %v241_v17  ;;  %v4875_v30 = vcombine.high %v101_v23, %v105_v24  ;;  %v221_v33 = vld [vmem:[#allocation5 + $0x3d0] sm:$0xff] }
 0x14b   :  { %v5944_v47 = vadd.f32 %v3290_v40, %v3250_v37  ;;  %3544 = vmatpush1.bf16.msra.mxu0 %v4922_v32  ;;  %3585 = vmatpush1.bf16.msra.mxu1 %v5050_v34  ;;  %v3293_v53 = vpop.f32.mrf.mxu1  ;;  %v5003_v32 = vcombine.high %v229_v25, %v233_v26  ;;  %v225_v34 = vld [vmem:[#allocation5 + $0x3f0] sm:$0xff]  ;;  %v4874_v40 = vcombine.low %v101_v23, %v105_v24 }
 0x14c   :  { %v3252_v50 = vpop.f32.mrf.mxu0  ;;  %3545 = vmatprep.subr.bf16.mxu0 %v4915_v35  ;;  %3586 = vmatprep.subr.bf16.mxu1 %v5043_v41  ;;  %v349_v35 = vld [vmem:[#allocation5 + $0x7d0] sm:$0xff]  ;;  %v5002_v41 = vcombine.low %v229_v25, %v233_v26  ;;  %v4995_v42 = vcombine.high %v221_v33, %v225_v34 }
 0x14d   :  { %v353_v37 = vld [vmem:[#allocation5 + $0x7f0] sm:$0xff] }
 0x14e   :  { %v5123_v43 = vcombine.high %v349_v35, %v353_v37  ;;  %v213_v44 = vld [vmem:[#allocation5 + $0x390] sm:$0xff]  ;;  %v5122_v50 = vcombine.low %v349_v35, %v353_v37 }
 0x14f   :  { %3546 = vmatpush1.bf16.msra.mxu0 %v4914_v49  ;;  %3587 = vmatpush1.bf16.msra.mxu1 %v5042_v51  ;;  %v345_v48 = vld [vmem:[#allocation5 + $0x7b0] sm:$0xff]  ;;  %v4994_v49 = vcombine.low %v221_v33, %v225_v34  ;;  %v4987_v51 = vcombine.high %v213_v44, %v217_v45  ;;  %v4986_v57 = vcombine.low %v213_v44, %v217_v45 }
 0x150   :  { %3547 = vmatprep.subr.bf16.mxu0 %v4907_v52  ;;  %3588 = vmatprep.subr.bf16.mxu1 %v5035_v54  ;;  %v5115_v52 = vcombine.high %v341_v46, %v345_v48  ;;  %v205_v53 = vld [vmem:[#allocation5 + $0x350] sm:$0xff]  ;;  %v5114_v61 = vcombine.low %v341_v46, %v345_v48 }
 0x151   :  { %v209_v54 = vld [vmem:[#allocation5 + $0x370] sm:$0xff] }
 0x152   :  { %v325_v2 = vld [vmem:[#allocation5 + $0x710] sm:$0xff]  ;;  %v4978_v4 = vcombine.low %v205_v53, %v209_v54 }
 0x153   :  { %3548 = vmatpush1.bf16.msra.mxu0 %v4906_v62  ;;  %3589 = vmatpush1.bf16.msra.mxu1 %v5034_v63  ;;  %v4979_v62 = vcombine.high %v205_v53, %v209_v54  ;;  %v5107_v63 = vcombine.high %v333_v55, %v337_v56  ;;  %v329_v3 = vld [vmem:[#allocation5 + $0x730] sm:$0xff] }
 0x154   :  { %3549 = vmatprep.subr.bf16.mxu0 %v4899_v0  ;;  %3590 = vmatprep.subr.bf16.mxu1 %v5027_v1  ;;  %v197_v0 = vld [vmem:[#allocation5 + $0x310] sm:$0xff]  ;;  %v5098_v17 = vcombine.low %v325_v2, %v329_v3 }
 0x155   :  { %v201_v1 = vld [vmem:[#allocation5 + $0x330] sm:$0xff] }
 0x156   :  { %v317_v13 = vld [vmem:[#allocation5 + $0x6d0] sm:$0xff]  ;;  %v4970_v15 = vcombine.low %v197_v0, %v201_v1 }
 0x157   :  { %3550 = vmatpush1.bf16.msra.mxu0 %v4898_v8  ;;  %3591 = vmatpush1.bf16.msra.mxu1 %v5026_v9  ;;  %v4971_v8 = vcombine.high %v197_v0, %v201_v1  ;;  %v5099_v9 = vcombine.high %v325_v2, %v329_v3  ;;  %v321_v14 = vld [vmem:[#allocation5 + $0x6f0] sm:$0xff] }
 0x158   :  { %3551 = vmatprep.subr.bf16.mxu0 %v4891_v11  ;;  %3592 = vmatprep.subr.bf16.mxu1 %v5019_v12  ;;  %v189_v11 = vld [vmem:[#allocation5 + $0x2d0] sm:$0xff]  ;;  %v5090_v26 = vcombine.low %v317_v13, %v321_v14 }
 0x159   :  { %v193_v12 = vld [vmem:[#allocation5 + $0x2f0] sm:$0xff] }
 0x15a   :  { %v309_v23 = vld [vmem:[#allocation5 + $0x690] sm:$0xff]  ;;  %v4962_v25 = vcombine.low %v189_v11, %v193_v12 }
 0x15b   :  { %3552 = vmatpush1.bf16.msra.mxu0 %v4890_v18  ;;  %3593 = vmatpush1.bf16.msra.mxu1 %v5018_v19  ;;  %v4963_v18 = vcombine.high %v189_v11, %v193_v12  ;;  %v5091_v19 = vcombine.high %v317_v13, %v321_v14  ;;  %v313_v24 = vld [vmem:[#allocation5 + $0x6b0] sm:$0xff] }
 0x15c   :  { %3553 = vmatprep.subr.bf16.mxu0 %v4883_v21  ;;  %3594 = vmatprep.subr.bf16.mxu1 %v5011_v22  ;;  %v181_v21 = vld [vmem:[#allocation5 + $0x290] sm:$0xff]  ;;  %v5082_v37 = vcombine.low %v309_v23, %v313_v24 }
 0x15d   :  { %v185_v22 = vld [vmem:[#allocation5 + $0x2b0] sm:$0xff] }
 0x15e   :  { %v301_v33 = vld [vmem:[#allocation5 + $0x650] sm:$0xff]  ;;  %v4954_v35 = vcombine.low %v181_v21, %v185_v22 }
 0x15f   :  { %3554 = vmatpush1.bf16.msra.mxu0 %v4882_v27  ;;  %3595 = vmatpush1.bf16.msra.mxu1 %v5010_v29  ;;  %v4955_v27 = vcombine.high %v181_v21, %v185_v22  ;;  %v5083_v29 = vcombine.high %v309_v23, %v313_v24  ;;  %v305_v34 = vld [vmem:[#allocation5 + $0x670] sm:$0xff] }
 0x160   :  { %3555 = vmatprep.subr.bf16.mxu0 %v4875_v30  ;;  %3596 = vmatprep.subr.bf16.mxu1 %v5003_v32  ;;  %v173_v30 = vld [vmem:[#allocation5 + $0x250] sm:$0xff]  ;;  %v5074_v48 = vcombine.low %v301_v33, %v305_v34 }
 0x161   :  { %v177_v32 = vld [vmem:[#allocation5 + $0x270] sm:$0xff] }
 0x162   :  { %v293_v44 = vld [vmem:[#allocation5 + $0x610] sm:$0xff]  ;;  %v4946_v46 = vcombine.low %v173_v30, %v177_v32 }
 0x163   :  { %3556 = vmatpush1.bf16.msra.mxu0 %v4874_v40  ;;  %3597 = vmatpush1.bf16.msra.mxu1 %v5002_v41  ;;  %v4947_v40 = vcombine.high %v173_v30, %v177_v32  ;;  %v5075_v41 = vcombine.high %v301_v33, %v305_v34  ;;  %v297_v45 = vld [vmem:[#allocation5 + $0x630] sm:$0xff] }
 0x164   :  { %3557 = vmatprep.subr.bf16.mxu0 %v4995_v42  ;;  %3598 = vmatprep.subr.bf16.mxu1 %v5123_v43  ;;  %v165_v42 = vld [vmem:[#allocation5 + $0x210] sm:$0xff]  ;;  %v5066_v56 = vcombine.low %v293_v44, %v297_v45 }
 0x165   :  { %v169_v43 = vld [vmem:[#allocation5 + $0x230] sm:$0xff] }
 0x166   :  { %v541_v53 = vld [vmem:[#allocation5 + $0xdd0] sm:$0xff]  ;;  %v4938_v55 = vcombine.low %v165_v42, %v169_v43 }
 0x167   :  { %3558 = vmatpush2.bf16.msra.mxu0 %v4994_v49  ;;  %3599 = vmatpush2.bf16.msra.mxu1 %v5122_v50  ;;  %v4939_v49 = vcombine.high %v165_v42, %v169_v43  ;;  %v5067_v50 = vcombine.high %v293_v44, %v297_v45  ;;  %v545_v54 = vld [vmem:[#allocation5 + $0xdf0] sm:$0xff] }
 0x168   :  { %3559 = vmatprep.subr.bf16.mxu0 %v4987_v51  ;;  %3600 = vmatprep.subr.bf16.mxu1 %v5115_v52  ;;  %v413_v51 = vld [vmem:[#allocation5 + $0x9d0] sm:$0xff]  ;;  %v5314_v3 = vcombine.low %v541_v53, %v545_v54 }
 0x169   :  { %v417_v52 = vld [vmem:[#allocation5 + $0x9f0] sm:$0xff] }
 0x16a   :  { %v533_v0 = vld [vmem:[#allocation5 + $0xd90] sm:$0xff]  ;;  %v5186_v2 = vcombine.low %v413_v51, %v417_v52 }
 0x16b   :  { %3560 = vmatpush2.bf16.msra.mxu0 %v4986_v57  ;;  %3601 = vmatpush2.bf16.msra.mxu1 %v5114_v61  ;;  %v5187_v57 = vcombine.high %v413_v51, %v417_v52  ;;  %v5315_v61 = vcombine.high %v541_v53, %v545_v54  ;;  %v537_v1 = vld [vmem:[#allocation5 + $0xdb0] sm:$0xff] }
 0x16c   :  { %3561 = vmatprep.subr.bf16.mxu0 %v4979_v62  ;;  %3602 = vmatprep.subr.bf16.mxu1 %v5107_v63  ;;  %v405_v62 = vld [vmem:[#allocation5 + $0x990] sm:$0xff] }
 0x16d   :  { %v409_v63 = vld [vmem:[#allocation5 + $0x9b0] sm:$0xff] }
 0x16e   :  { %v525_v12 = vld [vmem:[#allocation5 + $0xd50] sm:$0xff] }
 0x16f   :  { %3562 = vmatpush2.bf16.msra.mxu0 %v4978_v4  ;;  %3603 = vmatpush2.bf16.msra.mxu1 %v5106_v6  ;;  %v5179_v4 = vcombine.high %v405_v62, %v409_v63  ;;  %v5307_v6 = vcombine.high %v533_v0, %v537_v1  ;;  %v529_v13 = vld [vmem:[#allocation5 + $0xd70] sm:$0xff] }
 0x170   :  { %3563 = vmatprep.subr.bf16.mxu0 %v4971_v8  ;;  %3604 = vmatprep.subr.bf16.mxu1 %v5099_v9  ;;  %v397_v8 = vld [vmem:[#allocation5 + $0x950] sm:$0xff] }
 0x171   :  { %v401_v9 = vld [vmem:[#allocation5 + $0x970] sm:$0xff] }
 0x172   :  { %v5171_v21 = vcombine.high %v397_v8, %v401_v9  ;;  %v521_v30 = vld [vmem:[#allocation5 + $0xd30] sm:$0xff]  ;;  %v5170_v34 = vcombine.low %v397_v8, %v401_v9 }
 0x173   :  { %3564 = vmatpush2.bf16.msra.mxu0 %v4970_v15  ;;  %3605 = vmatpush2.bf16.msra.mxu1 %v5098_v17  ;;  %v5178_v17 = vcombine.low %v405_v62, %v409_v63  ;;  %v381_v42 = vld [vmem:[#allocation5 + $0x8d0] sm:$0xff] }
 0x174   :  { %3565 = vmatprep.subr.bf16.mxu0 %v4963_v18  ;;  %3606 = vmatprep.subr.bf16.mxu1 %v5091_v19  ;;  %v5306_v19 = vcombine.low %v533_v0, %v537_v1  ;;  %v385_v43 = vld [vmem:[#allocation5 + $0x8f0] sm:$0xff] }
 0x175   :  { %v509_v44 = vld [vmem:[#allocation5 + $0xcd0] sm:$0xff] }
 0x176   :  { %v513_v45 = vld [vmem:[#allocation5 + $0xcf0] sm:$0xff] }
 0x177   :  { %3566 = vmatpush2.bf16.msra.mxu0 %v4962_v25  ;;  %3607 = vmatpush2.bf16.msra.mxu1 %v5090_v26  ;;  %v5299_v25 = vcombine.high %v525_v12, %v529_v13  ;;  %v389_v26 = vld [vmem:[#allocation5 + $0x910] sm:$0xff] }
 0x178   :  { %3567 = vmatprep.subr.bf16.mxu0 %v4955_v27  ;;  %3608 = vmatprep.subr.bf16.mxu1 %v5083_v29  ;;  %v393_v27 = vld [vmem:[#allocation5 + $0x930] sm:$0xff] }
 0x179   :  { %v517_v29 = vld [vmem:[#allocation5 + $0xd10] sm:$0xff] }
 0x17a   :  { %v373_v51 = vld [vmem:[#allocation5 + $0x890] sm:$0xff] }
 0x17b   :  { %3568 = vmatpush2.bf16.msra.mxu0 %v4954_v35  ;;  %3609 = vmatpush2.bf16.msra.mxu1 %v5082_v37  ;;  %v5163_v37 = vcombine.high %v389_v26, %v393_v27  ;;  %v377_v52 = vld [vmem:[#allocation5 + $0x8b0] sm:$0xff] }
 0x17c   :  { %3569 = vmatprep.subr.bf16.mxu0 %v4947_v40  ;;  %3610 = vmatprep.subr.bf16.mxu1 %v5075_v41  ;;  %v5291_v41 = vcombine.high %v517_v29, %v521_v30  ;;  %v501_v53 = vld [vmem:[#allocation5 + $0xc90] sm:$0xff] }
 0x17d   :  { %v505_v54 = vld [vmem:[#allocation5 + $0xcb0] sm:$0xff] }
 0x17e   :  { %v365_v62 = vld [vmem:[#allocation5 + $0x850] sm:$0xff] }
 0x17f   :  { %3570 = vmatpush2.bf16.msra.mxu0 %v4946_v46  ;;  %3611 = vmatpush2.bf16.msra.mxu1 %v5074_v48  ;;  %v5162_v46 = vcombine.low %v389_v26, %v393_v27  ;;  %v5290_v48 = vcombine.low %v517_v29, %v521_v30  ;;  %v369_v63 = vld [vmem:[#allocation5 + $0x870] sm:$0xff] }
 0x180   :  { %3571 = vmatprep.subr.bf16.mxu0 %v4939_v49  ;;  %3612 = vmatprep.subr.bf16.mxu1 %v5067_v50  ;;  %v5155_v49 = vcombine.high %v381_v42, %v385_v43  ;;  %v5283_v50 = vcombine.high %v509_v44, %v513_v45  ;;  %v493_v0 = vld [vmem:[#allocation5 + $0xc50] sm:$0xff] }
 0x181   :  { %v497_v1 = vld [vmem:[#allocation5 + $0xc70] sm:$0xff] }
 0x182   :  { %v357_v8 = vld [vmem:[#allocation5 + $0x810] sm:$0xff] }
 0x183   :  { %3572 = vmatpush2.bf16.msra.mxu0 %v4938_v55  ;;  %3613 = vmatpush2.bf16.msra.mxu1 %v5066_v56  ;;  %v5154_v55 = vcombine.low %v381_v42, %v385_v43  ;;  %v5282_v56 = vcombine.low %v509_v44, %v513_v45  ;;  %v361_v9 = vld [vmem:[#allocation5 + $0x830] sm:$0xff] }
 0x184   :  { %3623 = vmatprep.subr.bf16.mxu0 %v5187_v57  ;;  %3664 = vmatprep.subr.bf16.mxu1 %v5315_v61  ;;  %v5147_v57 = vcombine.high %v373_v51, %v377_v52  ;;  %v5275_v61 = vcombine.high %v501_v53, %v505_v54  ;;  %v473_v29 = vld [vmem:[#allocation5 + $0xbb0] sm:$0xff] }
 0x185   :  { %v597_v30 = vld [vmem:[#allocation5 + $0xf90] sm:$0xff] }
 0x186   :  { %v3329_v11 = vpop.f32.mrf.mxu0  ;;  %3574 = vmatmul.mubr.bf16.vlgmr.msra.gmra.mxu0 %v5902_v16  ;;  %v3370_v15 = vpop.f32.mrf.mxu1  ;;  %3615 = vmatmul.mubr.bf16.vlgmr.msra.gmra.mxu1 %v5904_v20  ;;  %v589_v42 = vld [vmem:[#allocation5 + $0xf50] sm:$0xff] }
 0x187   :  { %v3330_v14 = vadd.f32 %v3329_v11, %v5940_v36  ;;  %3624 = vmatpush1.bf16.msra.mxu0 %v5186_v2  ;;  %3665 = vmatpush1.bf16.msra.mxu1 %v5314_v3  ;;  %v5146_v2 = vcombine.low %v373_v51, %v377_v52  ;;  %v5274_v3 = vcombine.low %v501_v53, %v505_v54  ;;  %v485_v11 = vld [vmem:[#allocation5 + $0xc10] sm:$0xff] }
 0x188   :  { %v3331_v18 = vpop.f32.mrf.mxu0  ;;  %3625 = vmatprep.subr.bf16.mxu0 %v5179_v4  ;;  %v3372_v24 = vpop.f32.mrf.mxu1  ;;  %3666 = vmatprep.subr.bf16.mxu1 %v5307_v6  ;;  %v5139_v4 = vcombine.high %v365_v62, %v369_v63  ;;  %v5267_v6 = vcombine.high %v493_v0, %v497_v1  ;;  %v593_v43 = vld [vmem:[#allocation5 + $0xf70] sm:$0xff] }
 0x189   :  { %v5949_v22 = vadd.f32 %v3370_v15, %v3330_v14  ;;  %v3332_v23 = vadd.f32 %v3331_v18, %v5944_v47  ;;  %3655 = vmatprep.mubr.bf16.mxu0 %v5906_v28  ;;  %3696 = vmatprep.mubr.bf16.mxu1 %v5909_v31  ;;  %v5298_v47 = vcombine.low %v525_v12, %v529_v13  ;;  %v489_v12 = vld [vmem:[#allocation5 + $0xc30] sm:$0xff] }
 0x18a   :  { %v3333_v36 = vpop.f32.mrf.mxu0  ;;  %v3374_v33 = vpop.f32.mrf.mxu1  ;;  %v5138_v13 = vcombine.low %v365_v62, %v369_v63  ;;  %v5266_v14 = vcombine.low %v493_v0, %v497_v1  ;;  %v5131_v15 = vcombine.high %v357_v8, %v361_v9  ;;  %v477_v18 = vld [vmem:[#allocation5 + $0xbd0] sm:$0xff]  ;;  %v5362_v54 = vcombine.low %v589_v42, %v593_v43 }
 0x18b   :  { %v5954_v32 = vadd.f32 %v3372_v24, %v3332_v23  ;;  %3626 = vmatpush1.bf16.msra.mxu0 %v5178_v17  ;;  %3667 = vmatpush1.bf16.msra.mxu1 %v5306_v19  ;;  %v5259_v17 = vcombine.high %v485_v11, %v489_v12  ;;  %v481_v19 = vld [vmem:[#allocation5 + $0xbf0] sm:$0xff]  ;;  %v5130_v24 = vcombine.low %v357_v8, %v361_v9  ;;  %vm3869_vm2 = vcmp.gt.f32.partialorder %v5949_v22, 0.0 }
 0x18c   :  { %v3334_v35 = vpop.f32.mrf.mxu0  ;;  %3627 = vmatprep.subr.bf16.mxu0 %v5171_v21  ;;  %v3375_v40 = vpop.f32.mrf.mxu1  ;;  %3668 = vmatprep.subr.bf16.mxu1 %v5299_v25  ;;  %v605_v21 = vld [vmem:[#allocation5 + $0xfd0] sm:$0xff]  ;;  %v5258_v25 = vcombine.low %v485_v11, %v489_v12  ;;  %v5251_v26 = vcombine.high %v477_v18, %v481_v19 }
 0x18d   :  { %v609_v23 = vld [vmem:[#allocation5 + $0xff0] sm:$0xff]  ;;  %vm3870_vm0 = vcmp.gt.f32.partialorder %v5954_v32, 0.0 }
 0x18e   :  { %v5379_v27 = vcombine.high %v605_v21, %v609_v23  ;;  %v469_v36 = vld [vmem:[#allocation5 + $0xb90] sm:$0xff]  ;;  %v5378_v35 = vcombine.low %v605_v21, %v609_v23 }
 0x18f   :  { %3628 = vmatpush1.bf16.msra.mxu0 %v5170_v34  ;;  %3669 = vmatpush1.bf16.msra.mxu1 %v5298_v47  ;;  %v601_v33 = vld [vmem:[#allocation5 + $0xfb0] sm:$0xff]  ;;  %v5250_v34 = vcombine.low %v477_v18, %v481_v19  ;;  %v5243_v47 = vcombine.high %v469_v36, %v473_v29  ;;  %v5242_v44 = vcombine.low %v469_v36, %v473_v29 }
 0x190   :  { %3629 = vmatprep.subr.bf16.mxu0 %v5163_v37  ;;  %3670 = vmatprep.subr.bf16.mxu1 %v5291_v41  ;;  %v5371_v37 = vcombine.high %v597_v30, %v601_v33  ;;  %v461_v40 = vld [vmem:[#allocation5 + $0xb50] sm:$0xff]  ;;  %v5370_v45 = vcombine.low %v597_v30, %v601_v33 }
 0x191   :  { %v465_v41 = vld [vmem:[#allocation5 + $0xb70] sm:$0xff] }
 0x192   :  { %v581_v51 = vld [vmem:[#allocation5 + $0xf10] sm:$0xff]  ;;  %v5234_v53 = vcombine.low %v461_v40, %v465_v41 }
 0x193   :  { %3630 = vmatpush1.bf16.msra.mxu0 %v5162_v46  ;;  %3671 = vmatpush1.bf16.msra.mxu1 %v5290_v48  ;;  %v5235_v46 = vcombine.high %v461_v40, %v465_v41  ;;  %v5363_v48 = vcombine.high %v589_v42, %v593_v43  ;;  %v585_v52 = vld [vmem:[#allocation5 + $0xf30] sm:$0xff]  ;;  %v286_v40 = vld [vmem:[#allocation5 + $0x5d8] sm:$0xff]  ;;  %v623_v43 = vsub.s32 2, %v5926_v60 }
 0x194   :  { %3631 = vmatprep.subr.bf16.mxu0 %v5155_v49  ;;  %3672 = vmatprep.subr.bf16.mxu1 %v5283_v50  ;;  %v453_v49 = vld [vmem:[#allocation5 + $0xb10] sm:$0xff]  ;;  %v5354_v1 = vcombine.low %v581_v51, %v585_v52  ;;  %v290_v41 = vld [vmem:[#allocation5 + $0x5f8] sm:$0xff] }
 0x195   :  { %v457_v50 = vld [vmem:[#allocation5 + $0xb30] sm:$0xff] }
 0x196   :  { %v573_v62 = vld [vmem:[#allocation5 + $0xed0] sm:$0xff]  ;;  %v5226_v0 = vcombine.low %v453_v49, %v457_v50 }
 0x197   :  { %3632 = vmatpush1.bf16.msra.mxu0 %v5154_v55  ;;  %3673 = vmatpush1.bf16.msra.mxu1 %v5282_v56  ;;  %v5227_v55 = vcombine.high %v453_v49, %v457_v50  ;;  %v5355_v56 = vcombine.high %v581_v51, %v585_v52  ;;  %v577_v63 = vld [vmem:[#allocation5 + $0xef0] sm:$0xff]  ;;  %v150_v49 = vld [vmem:[#allocation5 + $0x198] sm:$0xff] }
 0x198   :  { %3633 = vmatprep.subr.bf16.mxu0 %v5147_v57  ;;  %3674 = vmatprep.subr.bf16.mxu1 %v5275_v61  ;;  %v445_v57 = vld [vmem:[#allocation5 + $0xad0] sm:$0xff]  ;;  %v5346_v12 = vcombine.low %v573_v62, %v577_v63  ;;  %v154_v50 = vld [vmem:[#allocation5 + $0x1b8] sm:$0xff] }
 0x199   :  { %v449_v61 = vld [vmem:[#allocation5 + $0xaf0] sm:$0xff]  ;;  %v278_v51 = vld [vmem:[#allocation5 + $0x598] sm:$0xff] }
 0x19a   :  { %v565_v8 = vld [vmem:[#allocation5 + $0xe90] sm:$0xff]  ;;  %v5218_v11 = vcombine.low %v445_v57, %v449_v61  ;;  %v282_v52 = vld [vmem:[#allocation5 + $0x5b8] sm:$0xff] }
 0x19b   :  { %3634 = vmatpush1.bf16.msra.mxu0 %v5146_v2  ;;  %3675 = vmatpush1.bf16.msra.mxu1 %v5274_v3  ;;  %v5219_v2 = vcombine.high %v445_v57, %v449_v61  ;;  %v5347_v3 = vcombine.high %v573_v62, %v577_v63  ;;  %v569_v9 = vld [vmem:[#allocation5 + $0xeb0] sm:$0xff]  ;;  %v5053_v61 = vcombine.high %v278_v51, %v282_v52  ;;  %v142_v62 = vld [vmem:[#allocation5 + $0x158] sm:$0xff] }
 0x19c   :  { %3635 = vmatprep.subr.bf16.mxu0 %v5139_v4  ;;  %3676 = vmatprep.subr.bf16.mxu1 %v5267_v6  ;;  %v437_v4 = vld [vmem:[#allocation5 + $0xa90] sm:$0xff]  ;;  %v5338_v23 = vcombine.low %v565_v8, %v569_v9  ;;  %v146_v63 = vld [vmem:[#allocation5 + $0x178] sm:$0xff] }
 0x19d   :  { %v441_v6 = vld [vmem:[#allocation5 + $0xab0] sm:$0xff] }
 0x19e   :  { %v557_v18 = vld [vmem:[#allocation5 + $0xe50] sm:$0xff]  ;;  %v5210_v21 = vcombine.low %v437_v4, %v441_v6 }
 0x19f   :  { %3636 = vmatpush1.bf16.msra.mxu0 %v5138_v13  ;;  %3677 = vmatpush1.bf16.msra.mxu1 %v5266_v14  ;;  %v5211_v13 = vcombine.high %v437_v4, %v441_v6  ;;  %v5339_v14 = vcombine.high %v565_v8, %v569_v9  ;;  %v561_v19 = vld [vmem:[#allocation5 + $0xe70] sm:$0xff]  ;;  %v4924_v6 = vcombine.low %v150_v49, %v154_v50 }
 0x1a0   :  { %3637 = vmatprep.subr.bf16.mxu0 %v5131_v15  ;;  %3678 = vmatprep.subr.bf16.mxu1 %v5259_v17  ;;  %v429_v15 = vld [vmem:[#allocation5 + $0xa50] sm:$0xff]  ;;  %v5330_v33 = vcombine.low %v557_v18, %v561_v19  ;;  %v5052_v9 = vcombine.low %v278_v51, %v282_v52  ;;  %v114_v51 = vld [vmem:[#allocation5 + $0x78] sm:$0xff] }
 0x1a1   :  { %v433_v17 = vld [vmem:[#allocation5 + $0xa70] sm:$0xff]  ;;  %v238_v52 = vld [vmem:[#allocation5 + $0x458] sm:$0xff] }
 0x1a2   :  { %v549_v36 = vld [vmem:[#allocation5 + $0xe10] sm:$0xff]  ;;  %v5202_v30 = vcombine.low %v429_v15, %v433_v17 }
 0x1a3   :  { %3638 = vmatpush1.bf16.msra.mxu0 %v5130_v24  ;;  %3679 = vmatpush1.bf16.msra.mxu1 %v5258_v25  ;;  %v5203_v24 = vcombine.high %v429_v15, %v433_v17  ;;  %v5331_v25 = vcombine.high %v557_v18, %v561_v19  ;;  %v553_v29 = vld [vmem:[#allocation5 + $0xe30] sm:$0xff]  ;;  %v134_v15 = vld [vmem:[#allocation5 + $0x118] sm:$0xff] }
 0x1a4   :  { %3639 = vmatprep.subr.bf16.mxu0 %v5251_v26  ;;  %3680 = vmatprep.subr.bf16.mxu1 %v5379_v27  ;;  %v421_v26 = vld [vmem:[#allocation5 + $0xa10] sm:$0xff]  ;;  %v138_v17 = vld [vmem:[#allocation5 + $0x138] sm:$0xff] }
 0x1a5   :  { %v425_v27 = vld [vmem:[#allocation5 + $0xa30] sm:$0xff]  ;;  %v262_v19 = vld [vmem:[#allocation5 + $0x518] sm:$0xff] }
 0x1a6   :  { %v5194_v42 = vcombine.low %v421_v26, %v425_v27 }
 0x1a7   :  { %3640 = vmatpush2.bf16.msra.mxu0 %v5250_v34  ;;  %3681 = vmatpush2.bf16.msra.mxu1 %v5378_v35  ;;  %v5195_v34 = vcombine.high %v421_v26, %v425_v27  ;;  %v5323_v35 = vcombine.high %v549_v36, %v553_v29 }
 0x1a8   :  { %3641 = vmatprep.subr.bf16.mxu0 %v5243_v47  ;;  %3682 = vmatprep.subr.bf16.mxu1 %v5371_v37  ;;  %v158_v47 = vld [vmem:[#allocation5 + $0x1d8] sm:$0xff] }
 0x1a9   :  { %v162_v37 = vld [vmem:[#allocation5 + $0x1f8] sm:$0xff] }
 0x1ab   :  { %3642 = vmatpush2.bf16.msra.mxu0 %v5242_v44  ;;  %3683 = vmatpush2.bf16.msra.mxu1 %v5370_v45  ;;  %v5322_v44 = vcombine.low %v549_v36, %v553_v29  ;;  %v4933_v45 = vcombine.high %v158_v47, %v162_v37  ;;  %v4909_v36 = vcombine.high %v134_v15, %v138_v17 }
 0x1ac   :  { %3643 = vmatprep.subr.bf16.mxu0 %v5235_v46  ;;  %3684 = vmatprep.subr.bf16.mxu1 %v5363_v48  ;;  %v5061_v46 = vcombine.high %v286_v40, %v290_v41  ;;  %v627_v48 = vsub.s32 3, %v5926_v60 }
 0x1ae   :  { %v628_v57 = vrot.slane %v5929_v7, %v627_v48 }
 0x1af   :  { %3644 = vmatpush2.bf16.msra.mxu0 %v5234_v53  ;;  %3685 = vmatpush2.bf16.msra.mxu1 %v5362_v54  ;;  %v624_v53 = vrot.slane %v5929_v7, %v623_v43  ;;  %v4932_v54 = vcombine.low %v158_v47, %v162_v37  ;;  %v4908_v47 = vcombine.low %v134_v15, %v138_v17  ;;  %v246_v43 = vld [vmem:[#allocation5 + $0x498] sm:$0xff] }
 0x1b0   :  { %3645 = vmatprep.subr.bf16.mxu0 %v5227_v55  ;;  %3686 = vmatprep.subr.bf16.mxu1 %v5355_v56  ;;  %v5060_v55 = vcombine.low %v286_v40, %v290_v41  ;;  %v4925_v56 = vcombine.high %v150_v49, %v154_v50  ;;  %v118_v41 = vld [vmem:[#allocation5 + $0x98] sm:$0xff] }
 0x1b1   :  { %v110_v50 = vld [vmem:[#allocation5 + $0x58] sm:$0xff] }
 0x1b2   :  { %v214_v17 = vld [vmem:[#allocation5 + $0x398] sm:$0xff] }
 0x1b3   :  { %3646 = vmatpush2.bf16.msra.mxu0 %v5226_v0  ;;  %3687 = vmatpush2.bf16.msra.mxu1 %v5354_v1  ;;  %v270_v1 = vld [vmem:[#allocation5 + $0x558] sm:$0xff] }
 0x1b4   :  { %3647 = vmatprep.subr.bf16.mxu0 %v5219_v2  ;;  %3688 = vmatprep.subr.bf16.mxu1 %v5347_v3  ;;  %v274_v2 = vld [vmem:[#allocation5 + $0x578] sm:$0xff] }
 0x1b5   :  { %v5044_v27 = vcombine.low %v270_v1, %v274_v2 }
 0x1b7   :  { %3648 = vmatpush2.bf16.msra.mxu0 %v5218_v11  ;;  %3689 = vmatpush2.bf16.msra.mxu1 %v5346_v12  ;;  %v4917_v11 = vcombine.high %v142_v62, %v146_v63 }
 0x1b8   :  { %3649 = vmatprep.subr.bf16.mxu0 %v5211_v13  ;;  %3690 = vmatprep.subr.bf16.mxu1 %v5339_v14  ;;  %v5045_v14 = vcombine.high %v270_v1, %v274_v2  ;;  %v4884_v1 = vcombine.low %v110_v50, %v114_v51 }
 0x1bb   :  { %3650 = vmatpush2.bf16.msra.mxu0 %v5210_v21  ;;  %3691 = vmatpush2.bf16.msra.mxu1 %v5338_v23  ;;  %v266_v21 = vld [vmem:[#allocation5 + $0x538] sm:$0xff] }
 0x1bc   :  { %3651 = vmatprep.subr.bf16.mxu0 %v5203_v24  ;;  %3692 = vmatprep.subr.bf16.mxu1 %v5331_v25  ;;  %v4916_v25 = vcombine.low %v142_v62, %v146_v63  ;;  %v106_v62 = vld [vmem:[#allocation5 + $0x38] sm:$0xff] }
 0x1bd   :  { %v230_v63 = vld [vmem:[#allocation5 + $0x418] sm:$0xff] }
 0x1bf   :  { %3652 = vmatpush2.bf16.msra.mxu0 %v5202_v30  ;;  %3693 = vmatpush2.bf16.msra.mxu1 %v5330_v33  ;;  %v5037_v30 = vcombine.high %v262_v19, %v266_v21  ;;  %v126_v33 = vld [vmem:[#allocation5 + $0xd8] sm:$0xff] }
 0x1c0   :  { %3653 = vmatprep.subr.bf16.mxu0 %v5195_v34  ;;  %3694 = vmatprep.subr.bf16.mxu1 %v5323_v35  ;;  %v254_v34 = vld [vmem:[#allocation5 + $0x4d8] sm:$0xff] }
 0x1c1   :  { %v258_v35 = vld [vmem:[#allocation5 + $0x4f8] sm:$0xff] }
 0x1c2   :  { %v5029_v40 = vcombine.high %v254_v34, %v258_v35 }
 0x1c3   :  { %3654 = vmatpush2.bf16.msra.mxu0 %v5194_v42  ;;  %3695 = vmatpush2.bf16.msra.mxu1 %v5322_v44  ;;  %v122_v42 = vld [vmem:[#allocation5 + $0xb8] sm:$0xff] }
 0x1c4   :  { %3705 = vmatprep.subr.bf16.mxu0 %v4933_v45  ;;  %3746 = vmatprep.subr.bf16.mxu1 %v5061_v46  ;;  %v250_v44 = vld [vmem:[#allocation5 + $0x4b8] sm:$0xff]  ;;  %v5028_v46 = vcombine.low %v254_v34, %v258_v35  ;;  %v4893_v48 = vcombine.high %v118_v41, %v122_v42 }
 0x1c5   :  { %v5021_v49 = vcombine.high %v246_v43, %v250_v44 }
 0x1c6   :  { %v3411_v0 = vpop.f32.mrf.mxu0  ;;  %3656 = vmatmul.mubr.bf16.vlgmr.msra.gmra.mxu0 %v5914_v38  ;;  %v3452_v4 = vpop.f32.mrf.mxu1  ;;  %3697 = vmatmul.mubr.bf16.vlgmr.msra.gmra.mxu1 %v5916_v39 }
 0x1c7   :  { %v3412_v3 = vadd.f32 %v3411_v0, %v624_v53  ;;  %3706 = vmatpush1.bf16.msra.mxu0 %v4932_v54  ;;  %3747 = vmatpush1.bf16.msra.mxu1 %v5060_v55  ;;  %v242_v53 = vld [vmem:[#allocation5 + $0x478] sm:$0xff]  ;;  %v4892_v54 = vcombine.low %v118_v41, %v122_v42  ;;  %v5020_v55 = vcombine.low %v246_v43, %v250_v44 }
 0x1c8   :  { %v3413_v8 = vpop.f32.mrf.mxu0  ;;  %3707 = vmatprep.subr.bf16.mxu0 %v4925_v56  ;;  %v3454_v13 = vpop.f32.mrf.mxu1  ;;  %3748 = vmatprep.subr.bf16.mxu1 %v5053_v61  ;;  %v4885_v56 = vcombine.high %v110_v50, %v114_v51  ;;  %v102_v61 = vld [vmem:[#allocation5 + $0x18] sm:$0xff]  ;;  %v5012_v2 = vcombine.low %v238_v52, %v242_v53 }
 0x1c9   :  { %v5962_v7 = vadd.f32 %v3452_v4, %v3412_v3  ;;  %v3414_v12 = vadd.f32 %v3413_v8, %v628_v57  ;;  %3737 = vmatprep.mubr.bf16.mxu0 %v5896_v58  ;;  %3778 = vmatprep.mubr.bf16.mxu1 %v5898_v59  ;;  %v130_v58 = vld [vmem:[#allocation5 + $0xf8] sm:$0xff]  ;;  %v5036_v59 = vcombine.low %v262_v19, %v266_v21 }
 0x1ca   :  { %v3415_v18 = vpop.f32.mrf.mxu0  ;;  %v3456_v24 = vpop.f32.mrf.mxu1  ;;  %v4901_v37 = vcombine.high %v126_v33, %v130_v58  ;;  %v4900_v45 = vcombine.low %v126_v33, %v130_v58  ;;  %v5013_v57 = vcombine.high %v238_v52, %v242_v53  ;;  %v234_v0 = vld [vmem:[#allocation5 + $0x438] sm:$0xff]  ;;  %v4877_v3 = vcombine.high %v102_v61, %v106_v62 }
 0x1cb   :  { %v5966_v23 = vadd.f32 %v3454_v13, %v3414_v12  ;;  %3708 = vmatpush1.bf16.msra.mxu0 %v4924_v6  ;;  %3749 = vmatpush1.bf16.msra.mxu1 %v5052_v9  ;;  %v5005_v4 = vcombine.high %v230_v63, %v234_v0  ;;  %v222_v6 = vld [vmem:[#allocation5 + $0x3d8] sm:$0xff]  ;;  %v4876_v12 = vcombine.low %v102_v61, %v106_v62 }
 0x1cc   :  { %v3416_v26 = vpop.f32.mrf.mxu0  ;;  %3709 = vmatprep.subr.bf16.mxu0 %v4917_v11  ;;  %v3457_v29 = vpop.f32.mrf.mxu1  ;;  %3750 = vmatprep.subr.bf16.mxu1 %v5045_v14  ;;  %v226_v8 = vld [vmem:[#allocation5 + $0x3f8] sm:$0xff]  ;;  %v5004_v13 = vcombine.low %v230_v63, %v234_v0 }
 0x1cd   :  { %v350_v9 = vld [vmem:[#allocation5 + $0x7d8] sm:$0xff]  ;;  %v4997_v14 = vcombine.high %v222_v6, %v226_v8  ;;  %v4996_v24 = vcombine.low %v222_v6, %v226_v8 }
 0x1ce   :  { %v354_v11 = vld [vmem:[#allocation5 + $0x7f8] sm:$0xff] }
 0x1cf   :  { %3710 = vmatpush1.bf16.msra.mxu0 %v4916_v25  ;;  %3751 = vmatpush1.bf16.msra.mxu1 %v5044_v27  ;;  %v5125_v15 = vcombine.high %v350_v9, %v354_v11  ;;  %v218_v18 = vld [vmem:[#allocation5 + $0x3b8] sm:$0xff]  ;;  %v5124_v25 = vcombine.low %v350_v9, %v354_v11 }
 0x1d0   :  { %3711 = vmatprep.subr.bf16.mxu0 %v4909_v36  ;;  %3752 = vmatprep.subr.bf16.mxu1 %v5037_v30  ;;  %v342_v19 = vld [vmem:[#allocation5 + $0x798] sm:$0xff]  ;;  %v4989_v26 = vcombine.high %v214_v17, %v218_v18  ;;  %v4988_v58 = vcombine.low %v214_v17, %v218_v18 }
 0x1d1   :  { %v346_v21 = vld [vmem:[#allocation5 + $0x7b8] sm:$0xff] }
 0x1d2   :  { %v5117_v27 = vcombine.high %v342_v19, %v346_v21  ;;  %v206_v36 = vld [vmem:[#allocation5 + $0x358] sm:$0xff]  ;;  %v5116_v34 = vcombine.low %v342_v19, %v346_v21 }
 0x1d3   :  { %3712 = vmatpush1.bf16.msra.mxu0 %v4908_v47  ;;  %3753 = vmatpush1.bf16.msra.mxu1 %v5036_v59  ;;  %v210_v29 = vld [vmem:[#allocation5 + $0x378] sm:$0xff] }
 0x1d4   :  { %3713 = vmatprep.subr.bf16.mxu0 %v4901_v37  ;;  %3754 = vmatprep.subr.bf16.mxu1 %v5029_v40  ;;  %v334_v30 = vld [vmem:[#allocation5 + $0x758] sm:$0xff]  ;;  %v4981_v35 = vcombine.high %v206_v36, %v210_v29  ;;  %v4980_v42 = vcombine.low %v206_v36, %v210_v29 }
 0x1d5   :  { %v338_v33 = vld [vmem:[#allocation5 + $0x778] sm:$0xff] }
 0x1d6   :  { %v5109_v47 = vcombine.high %v334_v30, %v338_v33  ;;  %v198_v59 = vld [vmem:[#allocation5 + $0x318] sm:$0xff]  ;;  %v5108_v43 = vcombine.low %v334_v30, %v338_v33 }
 0x1d7   :  { %3714 = vmatpush1.bf16.msra.mxu0 %v4900_v45  ;;  %3755 = vmatpush1.bf16.msra.mxu1 %v5028_v46  ;;  %v202_v37 = vld [vmem:[#allocation5 + $0x338] sm:$0xff] }
 0x1d8   :  { %3715 = vmatprep.subr.bf16.mxu0 %v4893_v48  ;;  %3756 = vmatprep.subr.bf16.mxu1 %v5021_v49  ;;  %v326_v40 = vld [vmem:[#allocation5 + $0x718] sm:$0xff]  ;;  %v4973_v44 = vcombine.high %v198_v59, %v202_v37  ;;  %v4972_v51 = vcombine.low %v198_v59, %v202_v37 }
 0x1d9   :  { %v330_v41 = vld [vmem:[#allocation5 + $0x738] sm:$0xff] }
 0x1da   :  { %v5101_v45 = vcombine.high %v326_v40, %v330_v41  ;;  %v190_v46 = vld [vmem:[#allocation5 + $0x2d8] sm:$0xff]  ;;  %v5100_v52 = vcombine.low %v326_v40, %v330_v41 }
 0x1db   :  { %3716 = vmatpush1.bf16.msra.mxu0 %v4892_v54  ;;  %3757 = vmatpush1.bf16.msra.mxu1 %v5020_v55  ;;  %v194_v48 = vld [vmem:[#allocation5 + $0x2f8] sm:$0xff] }
 0x1dc   :  { %3717 = vmatprep.subr.bf16.mxu0 %v4885_v56  ;;  %3758 = vmatprep.subr.bf16.mxu1 %v5013_v57  ;;  %v318_v49 = vld [vmem:[#allocation5 + $0x6d8] sm:$0xff]  ;;  %v4965_v53 = vcombine.high %v190_v46, %v194_v48  ;;  %v4964_v62 = vcombine.low %v190_v46, %v194_v48 }
 0x1dd   :  { %v322_v50 = vld [vmem:[#allocation5 + $0x6f8] sm:$0xff] }
 0x1de   :  { %v5093_v54 = vcombine.high %v318_v49, %v322_v50  ;;  %v182_v55 = vld [vmem:[#allocation5 + $0x298] sm:$0xff]  ;;  %v5092_v63 = vcombine.low %v318_v49, %v322_v50 }
 0x1df   :  { %3718 = vmatpush1.bf16.msra.mxu0 %v4884_v1  ;;  %3759 = vmatpush1.bf16.msra.mxu1 %v5012_v2  ;;  %v186_v56 = vld [vmem:[#allocation5 + $0x2b8] sm:$0xff] }
 0x1e0   :  { %3719 = vmatprep.subr.bf16.mxu0 %v4877_v3  ;;  %3760 = vmatprep.subr.bf16.mxu1 %v5005_v4  ;;  %v310_v57 = vld [vmem:[#allocation5 + $0x698] sm:$0xff]  ;;  %v4957_v0 = vcombine.high %v182_v55, %v186_v56  ;;  %v4956_v8 = vcombine.low %v182_v55, %v186_v56 }
 0x1e1   :  { %v314_v61 = vld [vmem:[#allocation5 + $0x6b8] sm:$0xff] }
 0x1e2   :  { %v5085_v1 = vcombine.high %v310_v57, %v314_v61  ;;  %v174_v2 = vld [vmem:[#allocation5 + $0x258] sm:$0xff]  ;;  %v5084_v9 = vcombine.low %v310_v57, %v314_v61 }
 0x1e3   :  { %3720 = vmatpush1.bf16.msra.mxu0 %v4876_v12  ;;  %3761 = vmatpush1.bf16.msra.mxu1 %v5004_v13  ;;  %v178_v3 = vld [vmem:[#allocation5 + $0x278] sm:$0xff] }
 0x1e4   :  { %3721 = vmatprep.subr.bf16.mxu0 %v4997_v14  ;;  %3762 = vmatprep.subr.bf16.mxu1 %v5125_v15  ;;  %v302_v4 = vld [vmem:[#allocation5 + $0x658] sm:$0xff]  ;;  %v4949_v11 = vcombine.high %v174_v2, %v178_v3  ;;  %v4948_v18 = vcombine.low %v174_v2, %v178_v3 }
 0x1e5   :  { %v306_v6 = vld [vmem:[#allocation5 + $0x678] sm:$0xff] }
 0x1e6   :  { %v5077_v12 = vcombine.high %v302_v4, %v306_v6  ;;  %v166_v13 = vld [vmem:[#allocation5 + $0x218] sm:$0xff]  ;;  %v5076_v19 = vcombine.low %v302_v4, %v306_v6 }
 0x1e7   :  { %3722 = vmatpush2.bf16.msra.mxu0 %v4996_v24  ;;  %3763 = vmatpush2.bf16.msra.mxu1 %v5124_v25  ;;  %v170_v14 = vld [vmem:[#allocation5 + $0x238] sm:$0xff] }
 0x1e8   :  { %3723 = vmatprep.subr.bf16.mxu0 %v4989_v26  ;;  %3764 = vmatprep.subr.bf16.mxu1 %v5117_v27  ;;  %v294_v15 = vld [vmem:[#allocation5 + $0x618] sm:$0xff]  ;;  %v4941_v21 = vcombine.high %v166_v13, %v170_v14  ;;  %v4940_v29 = vcombine.low %v166_v13, %v170_v14 }
 0x1e9   :  { %v298_v17 = vld [vmem:[#allocation5 + $0x638] sm:$0xff] }
 0x1ea   :  { %v5069_v24 = vcombine.high %v294_v15, %v298_v17  ;;  %v414_v25 = vld [vmem:[#allocation5 + $0x9d8] sm:$0xff]  ;;  %v5068_v30 = vcombine.low %v294_v15, %v298_v17 }
 0x1eb   :  { %3724 = vmatpush2.bf16.msra.mxu0 %v4988_v58  ;;  %3765 = vmatpush2.bf16.msra.mxu1 %v5116_v34  ;;  %v418_v26 = vld [vmem:[#allocation5 + $0x9f8] sm:$0xff] }
 0x1ec   :  { %3725 = vmatprep.subr.bf16.mxu0 %v4981_v35  ;;  %3766 = vmatprep.subr.bf16.mxu1 %v5109_v47  ;;  %v542_v27 = vld [vmem:[#allocation5 + $0xdd8] sm:$0xff]  ;;  %v5189_v33 = vcombine.high %v414_v25, %v418_v26  ;;  %v5188_v37 = vcombine.low %v414_v25, %v418_v26 }
 0x1ed   :  { %v546_v36 = vld [vmem:[#allocation5 + $0xdf8] sm:$0xff] }
 0x1ee   :  { %v5317_v58 = vcombine.high %v542_v27, %v546_v36  ;;  %v406_v34 = vld [vmem:[#allocation5 + $0x998] sm:$0xff]  ;;  %v5316_v40 = vcombine.low %v542_v27, %v546_v36 }
 0x1ef   :  { %3726 = vmatpush2.bf16.msra.mxu0 %v4980_v42  ;;  %3767 = vmatpush2.bf16.msra.mxu1 %v5108_v43  ;;  %v410_v35 = vld [vmem:[#allocation5 + $0x9b8] sm:$0xff] }
 0x1f0   :  { %3727 = vmatprep.subr.bf16.mxu0 %v4973_v44  ;;  %3768 = vmatprep.subr.bf16.mxu1 %v5101_v45  ;;  %v534_v47 = vld [vmem:[#allocation5 + $0xd98] sm:$0xff]  ;;  %v5181_v41 = vcombine.high %v406_v34, %v410_v35 }
 0x1f1   :  { %v538_v59 = vld [vmem:[#allocation5 + $0xdb8] sm:$0xff] }
 0x1f2   :  { %v5309_v42 = vcombine.high %v534_v47, %v538_v59  ;;  %v398_v43 = vld [vmem:[#allocation5 + $0x958] sm:$0xff] }
 0x1f3   :  { %3728 = vmatpush2.bf16.msra.mxu0 %v4972_v51  ;;  %3769 = vmatpush2.bf16.msra.mxu1 %v5100_v52  ;;  %v402_v44 = vld [vmem:[#allocation5 + $0x978] sm:$0xff]  ;;  %v5180_v51 = vcombine.low %v406_v34, %v410_v35 }
 0x1f4   :  { %3729 = vmatprep.subr.bf16.mxu0 %v4965_v53  ;;  %3770 = vmatprep.subr.bf16.mxu1 %v5093_v54  ;;  %v526_v46 = vld [vmem:[#allocation5 + $0xd58] sm:$0xff]  ;;  %v5308_v53 = vcombine.low %v534_v47, %v538_v59  ;;  %v5173_v54 = vcombine.high %v398_v43, %v402_v44 }
 0x1f5   :  { %v530_v48 = vld [vmem:[#allocation5 + $0xd78] sm:$0xff] }
 0x1f6   :  { %v390_v57 = vld [vmem:[#allocation5 + $0x918] sm:$0xff]  ;;  %v5300_v2 = vcombine.low %v526_v46, %v530_v48 }
 0x1f7   :  { %3730 = vmatpush2.bf16.msra.mxu0 %v4964_v62  ;;  %3771 = vmatpush2.bf16.msra.mxu1 %v5092_v63  ;;  %v394_v61 = vld [vmem:[#allocation5 + $0x938] sm:$0xff] }
 0x1f8   :  { %3731 = vmatprep.subr.bf16.mxu0 %v4957_v0  ;;  %3772 = vmatprep.subr.bf16.mxu1 %v5085_v1  ;;  %v522_v62 = vld [vmem:[#allocation5 + $0xd38] sm:$0xff]  ;;  %v5172_v0 = vcombine.low %v398_v43, %v402_v44  ;;  %v5165_v3 = vcombine.high %v390_v57, %v394_v61 }
 0x1f9   :  { %v374_v15 = vld [vmem:[#allocation5 + $0x898] sm:$0xff] }
 0x1fa   :  { %v378_v17 = vld [vmem:[#allocation5 + $0x8b8] sm:$0xff] }
 0x1fb   :  { %3732 = vmatpush2.bf16.msra.mxu0 %v4956_v8  ;;  %3773 = vmatpush2.bf16.msra.mxu1 %v5084_v9  ;;  %v382_v8 = vld [vmem:[#allocation5 + $0x8d8] sm:$0xff]  ;;  %v5149_v25 = vcombine.high %v374_v15, %v378_v17 }
 0x1fc   :  { %3733 = vmatprep.subr.bf16.mxu0 %v4949_v11  ;;  %3774 = vmatprep.subr.bf16.mxu1 %v5077_v12  ;;  %v386_v9 = vld [vmem:[#allocation5 + $0x8f8] sm:$0xff]  ;;  %v5164_v12 = vcombine.low %v390_v57, %v394_v61 }
 0x1fd   :  { %v510_v11 = vld [vmem:[#allocation5 + $0xcd8] sm:$0xff]  ;;  %v5157_v13 = vcombine.high %v382_v8, %v386_v9 }
 0x1fe   :  { %v366_v27 = vld [vmem:[#allocation5 + $0x858] sm:$0xff] }
 0x1ff   :  { %3734 = vmatpush2.bf16.msra.mxu0 %v4948_v18  ;;  %3775 = vmatpush2.bf16.msra.mxu1 %v5076_v19  ;;  %v502_v18 = vld [vmem:[#allocation5 + $0xc98] sm:$0xff] }
 0x200   :  { %3735 = vmatprep.subr.bf16.mxu0 %v4941_v21  ;;  %3776 = vmatprep.subr.bf16.mxu1 %v5069_v24  ;;  %v506_v19 = vld [vmem:[#allocation5 + $0xcb8] sm:$0xff]  ;;  %v5156_v21 = vcombine.low %v382_v8, %v386_v9 }
 0x201   :  { %v5277_v26 = vcombine.high %v502_v18, %v506_v19  ;;  %v370_v36 = vld [vmem:[#allocation5 + $0x878] sm:$0xff] }
 0x202   :  { %v5141_v34 = vcombine.high %v366_v27, %v370_v36  ;;  %v358_v47 = vld [vmem:[#allocation5 + $0x818] sm:$0xff] }
 0x203   :  { %3736 = vmatpush2.bf16.msra.mxu0 %v4940_v29  ;;  %3777 = vmatpush2.bf16.msra.mxu1 %v5068_v30  ;;  %v494_v29 = vld [vmem:[#allocation5 + $0xc58] sm:$0xff] }
 0x204   :  { %3787 = vmatprep.subr.bf16.mxu0 %v5189_v33  ;;  %3828 = vmatprep.subr.bf16.mxu1 %v5317_v58  ;;  %v498_v30 = vld [vmem:[#allocation5 + $0xc78] sm:$0xff]  ;;  %v5148_v33 = vcombine.low %v374_v15, %v378_v17  ;;  %v5276_v58 = vcombine.low %v502_v18, %v506_v19 }
 0x205   :  { %v5269_v35 = vcombine.high %v494_v29, %v498_v30  ;;  %v362_v59 = vld [vmem:[#allocation5 + $0x838] sm:$0xff] }
 0x206   :  { %v3493_v45 = vpop.f32.mrf.mxu0  ;;  %3738 = vmatmul.mubr.bf16.vlgmr.msra.gmra.mxu0 %v5902_v16  ;;  %v3534_v50 = vpop.f32.mrf.mxu1  ;;  %3779 = vmatmul.mubr.bf16.vlgmr.msra.gmra.mxu1 %v5904_v20  ;;  %v5301_v16 = vcombine.high %v526_v46, %v530_v48  ;;  %v518_v20 = vld [vmem:[#allocation5 + $0xd18] sm:$0xff]  ;;  %v5133_v43 = vcombine.high %v358_v47, %v362_v59 }
 0x207   :  { %v3494_v49 = vadd.f32 %v3493_v45, %v5962_v7  ;;  %3788 = vmatpush1.bf16.msra.mxu0 %v5188_v37  ;;  %3829 = vmatpush1.bf16.msra.mxu1 %v5316_v40  ;;  %v5293_v6 = vcombine.high %v518_v20, %v522_v62  ;;  %v486_v37 = vld [vmem:[#allocation5 + $0xc18] sm:$0xff] }
 0x208   :  { %v5971_v52 = vpop.f32.mrf.mxu0  ;;  %3789 = vmatprep.subr.bf16.mxu0 %v5181_v41  ;;  %v5975_v56 = vpop.f32.mrf.mxu1  ;;  %3830 = vmatprep.subr.bf16.mxu1 %v5309_v42  ;;  %v490_v40 = vld [vmem:[#allocation5 + $0xc38] sm:$0xff]  ;;  %v5140_v41 = vcombine.low %v366_v27, %v370_v36  ;;  %v5268_v42 = vcombine.low %v494_v29, %v498_v30 }
 0x209   :  { %v5973_v55 = vadd.f32 %v3534_v50, %v3494_v49  ;;  %3819 = vmatprep.mubr.bf16.mxu0 %v5906_v28  ;;  %3860 = vmatprep.mubr.bf16.mxu1 %v5909_v31  ;;  %v514_v28 = vld [vmem:[#allocation5 + $0xcf8] sm:$0xff]  ;;  %v5292_v31 = vcombine.low %v518_v20, %v522_v62  ;;  %v5261_v44 = vcombine.high %v486_v37, %v490_v40 }
 0x20a   :  { %v3497_v7 = vpop.f32.mrf.mxu0  ;;  %v3538_v63 = vpop.f32.mrf.mxu1  ;;  %v5285_v14 = vcombine.high %v510_v11, %v514_v28  ;;  %v5284_v24 = vcombine.low %v510_v11, %v514_v28  ;;  %v478_v45 = vld [vmem:[#allocation5 + $0xbd8] sm:$0xff]  ;;  %v5132_v50 = vcombine.low %v358_v47, %v362_v59 }
 0x20b   :  { %3790 = vmatpush1.bf16.msra.mxu0 %v5180_v51  ;;  %3831 = vmatpush1.bf16.msra.mxu1 %v5308_v53  ;;  %v482_v46 = vld [vmem:[#allocation5 + $0xbf8] sm:$0xff]  ;;  %v5260_v51 = vcombine.low %v486_v37, %v490_v40  ;;  %vm3871_vm3 = vcmp.gt.f32.partialorder %v5973_v55, 0.0 }
 0x20c   :  { %v3498_v1 = vpop.f32.mrf.mxu0  ;;  %3791 = vmatprep.subr.bf16.mxu0 %v5173_v54  ;;  %v3539_v4 = vpop.f32.mrf.mxu1  ;;  %3832 = vmatprep.subr.bf16.mxu1 %v5301_v16  ;;  %v606_v48 = vld [vmem:[#allocation5 + $0xfd8] sm:$0xff]  ;;  %v5253_v53 = vcombine.high %v478_v45, %v482_v46  ;;  %v5252_v20 = vcombine.low %v478_v45, %v482_v46  ;;  %v3496_v45 = vadd.f32 %v5971_v52, %v5966_v23  ;;  %v3878_v52 = vmul.f32 0.01, %v5954_v32 }
 0x20d   :  { %v610_v49 = vld [vmem:[#allocation5 + $0xff8] sm:$0xff] }
 0x20e   :  { %v5381_v54 = vcombine.high %v606_v48, %v610_v49  ;;  %v470_v16 = vld [vmem:[#allocation5 + $0xb98] sm:$0xff]  ;;  %v5380_v62 = vcombine.low %v606_v48, %v610_v49 }
 0x20f   :  { %3792 = vmatpush1.bf16.msra.mxu0 %v5172_v0  ;;  %3833 = vmatpush1.bf16.msra.mxu1 %v5300_v2  ;;  %v474_v57 = vld [vmem:[#allocation5 + $0xbb8] sm:$0xff] }
 0x210   :  { %3793 = vmatprep.subr.bf16.mxu0 %v5165_v3  ;;  %3834 = vmatprep.subr.bf16.mxu1 %v5293_v6  ;;  %v598_v61 = vld [vmem:[#allocation5 + $0xf98] sm:$0xff]  ;;  %v5245_v63 = vcombine.high %v470_v16, %v474_v57  ;;  %v5244_v6 = vcombine.low %v470_v16, %v474_v57  ;;  %v3537_v57 = vadd.f32 %v5975_v56, %v3496_v45 }
 0x211   :  { %v602_v7 = vld [vmem:[#allocation5 + $0xfb8] sm:$0xff] }
 0x212   :  { %v5373_v0 = vcombine.high %v598_v61, %v602_v7  ;;  %v462_v1 = vld [vmem:[#allocation5 + $0xb58] sm:$0xff]  ;;  %v5372_v8 = vcombine.low %v598_v61, %v602_v7  ;;  %vm3872_vm1 = vcmp.gt.f32.partialorder %v3537_v57, 0.0 }
 0x213   :  { %3794 = vmatpush1.bf16.msra.mxu0 %v5164_v12  ;;  %3835 = vmatpush1.bf16.msra.mxu1 %v5292_v31  ;;  %v466_v2 = vld [vmem:[#allocation5 + $0xb78] sm:$0xff] }
 0x214   :  { %3795 = vmatprep.subr.bf16.mxu0 %v5157_v13  ;;  %3836 = vmatprep.subr.bf16.mxu1 %v5285_v14  ;;  %v590_v3 = vld [vmem:[#allocation5 + $0xf58] sm:$0xff]  ;;  %v5237_v9 = vcombine.high %v462_v1, %v466_v2  ;;  %v5236_v14 = vcombine.low %v462_v1, %v466_v2  ;;  %v5985_v2 = vld [vmem:[#allocation7] sm:$0xff] }
 0x215   :  { %v594_v4 = vld [vmem:[#allocation5 + $0xf78] sm:$0xff] }
 0x216   :  { %v5365_v11 = vcombine.high %v590_v3, %v594_v4  ;;  %v454_v28 = vld [vmem:[#allocation5 + $0xb18] sm:$0xff]  ;;  %v5364_v15 = vcombine.low %v590_v3, %v594_v4 }
 0x217   :  { %3796 = vmatpush1.bf16.msra.mxu0 %v5156_v21  ;;  %3837 = vmatpush1.bf16.msra.mxu1 %v5284_v24  ;;  %v458_v12 = vld [vmem:[#allocation5 + $0xb38] sm:$0xff] }
 0x218   :  { %3797 = vmatprep.subr.bf16.mxu0 %v5149_v25  ;;  %3838 = vmatprep.subr.bf16.mxu1 %v5277_v26  ;;  %v582_v31 = vld [vmem:[#allocation5 + $0xf18] sm:$0xff]  ;;  %v5229_v17 = vcombine.high %v454_v28, %v458_v12  ;;  %v5228_v26 = vcombine.low %v454_v28, %v458_v12 }
 0x219   :  { %v586_v13 = vld [vmem:[#allocation5 + $0xf38] sm:$0xff] }
 0x21a   :  { %v5357_v18 = vcombine.high %v582_v31, %v586_v13  ;;  %v446_v19 = vld [vmem:[#allocation5 + $0xad8] sm:$0xff]  ;;  %v5356_v27 = vcombine.low %v582_v31, %v586_v13  ;;  %v5531_v31 = vld [vmem:[#allocation8 + $0x164] ss:$8 sps:$4 sm:$0xff]  }
 0x21b   :  { %3798 = vmatpush1.bf16.msra.mxu0 %v5148_v33  ;;  %3839 = vmatpush1.bf16.msra.mxu1 %v5276_v58  ;;  %v450_v21 = vld [vmem:[#allocation5 + $0xaf8] sm:$0xff] }
 0x21c   :  { %3799 = vmatprep.subr.bf16.mxu0 %v5141_v34  ;;  %3840 = vmatprep.subr.bf16.mxu1 %v5269_v35  ;;  %v574_v24 = vld [vmem:[#allocation5 + $0xed8] sm:$0xff]  ;;  %v5221_v36 = vcombine.high %v446_v19, %v450_v21  ;;  %v5220_v35 = vcombine.low %v446_v19, %v450_v21 }
 0x21d   :  { %v578_v25 = vld [vmem:[#allocation5 + $0xef8] sm:$0xff] }
 0x21e   :  { %v5349_v29 = vcombine.high %v574_v24, %v578_v25  ;;  %v438_v30 = vld [vmem:[#allocation5 + $0xa98] sm:$0xff]  ;;  %v5348_v47 = vcombine.low %v574_v24, %v578_v25 }
 0x21f   :  { %3800 = vmatpush1.bf16.msra.mxu0 %v5140_v41  ;;  %3841 = vmatpush1.bf16.msra.mxu1 %v5268_v42  ;;  %v442_v33 = vld [vmem:[#allocation5 + $0xab8] sm:$0xff] }
 0x220   :  { %3801 = vmatprep.subr.bf16.mxu0 %v5133_v43  ;;  %3842 = vmatprep.subr.bf16.mxu1 %v5261_v44  ;;  %v566_v58 = vld [vmem:[#allocation5 + $0xe98] sm:$0xff]  ;;  %v5213_v59 = vcombine.high %v438_v30, %v442_v33  ;;  %v5212_v44 = vcombine.low %v438_v30, %v442_v33  ;;  %v5543_v33 = vld [vmem:[#allocation8 + $0x144] ss:$8 sps:$4 sm:$0xff]  }
 0x221   :  { %v570_v34 = vld [vmem:[#allocation5 + $0xeb8] sm:$0xff] }
 0x222   :  { %v5341_v37 = vcombine.high %v566_v58, %v570_v34  ;;  %v430_v40 = vld [vmem:[#allocation5 + $0xa58] sm:$0xff]  ;;  %v5340_v46 = vcombine.low %v566_v58, %v570_v34  ;;  %v5538_v58 = vld [vmem:[#allocation8 + $0x40] ss:$8 sps:$4 sm:$0xff]  }
 0x223   :  { %3802 = vmatpush1.bf16.msra.mxu0 %v5132_v50  ;;  %3843 = vmatpush1.bf16.msra.mxu1 %v5260_v51  ;;  %v434_v41 = vld [vmem:[#allocation5 + $0xa78] sm:$0xff]  ;;  %v5541_v34 = vld [vmem:[#allocation8 + $0x140] ss:$8 sps:$4 sm:$0xff]  }
 0x224   :  { %3803 = vmatprep.subr.bf16.mxu0 %v5253_v53  ;;  %3844 = vmatprep.subr.bf16.mxu1 %v5381_v54  ;;  %v558_v42 = vld [vmem:[#allocation5 + $0xe58] sm:$0xff]  ;;  %v5205_v48 = vcombine.high %v430_v40, %v434_v41  ;;  %v5204_v16 = vcombine.low %v430_v40, %v434_v41  ;;  %v5552_v40 = vld [vmem:[#allocation8 + $0x24] ss:$8 sps:$4 sm:$0xff]  }
 0x225   :  { %v562_v43 = vld [vmem:[#allocation5 + $0xe78] sm:$0xff]  ;;  %v5555_v41 = vld [vmem:[#allocation8 + $0x124] ss:$8 sps:$4 sm:$0xff]  }
 0x226   :  { %v5333_v49 = vcombine.high %v558_v42, %v562_v43  ;;  %v422_v50 = vld [vmem:[#allocation5 + $0xa18] sm:$0xff]  ;;  %v5332_v61 = vcombine.low %v558_v42, %v562_v43  ;;  %v5550_v42 = vld [vmem:[#allocation8 + $0x20] ss:$8 sps:$4 sm:$0xff]  }
 0x227   :  { %3804 = vmatpush2.bf16.msra.mxu0 %v5252_v20  ;;  %3845 = vmatpush2.bf16.msra.mxu1 %v5380_v62  ;;  %v426_v51 = vld [vmem:[#allocation5 + $0xa38] sm:$0xff]  ;;  %v631_v62 = vsub.s32 4, %v5926_v60  ;;  %v5553_v43 = vld [vmem:[#allocation8 + $0x120] ss:$8 sps:$4 sm:$0xff]  }
 0x228   :  { %3805 = vmatprep.subr.bf16.mxu0 %v5245_v63  ;;  %3846 = vmatprep.subr.bf16.mxu1 %v5373_v0  ;;  %v550_v53 = vld [vmem:[#allocation5 + $0xe18] sm:$0xff]  ;;  %v5197_v7 = vcombine.high %v422_v50, %v426_v51  ;;  %v5196_v20 = vcombine.low %v422_v50, %v426_v51  ;;  %v3880_v63 = vmul.f32 0.01, %v3537_v57  ;;  %v5567_v50 = vld [vmem:[#allocation8 + $0x104] ss:$8 sps:$4 sm:$0xff]  }
 0x229   :  { %v554_v54 = vld [vmem:[#allocation5 + $0xe38] sm:$0xff]  ;;  %v632_v3 = vrot.slane %v5985_v2, %v631_v62  ;;  %v5562_v51 = vld [vmem:[#allocation8] ss:$8 sps:$4 sm:$0xff]  }
 0x22a   :  { %v5325_v23 = vcombine.high %v550_v53, %v554_v54  ;;  %v5324_v0 = vcombine.low %v550_v53, %v554_v54  ;;  %v5522_v1 = vld [vmem:[#allocation8 + $0x74] ss:$8 sps:$4 sm:$0xff]   ;;  %v5520_v4 = vld [vmem:[#allocation8 + $0x70] ss:$8 sps:$4 sm:$0xff]   ;;  %v5565_v53 = vld [vmem:[#allocation8 + $0x100] ss:$8 sps:$4 sm:$0xff]  }
 0x22b   :  { %3806 = vmatpush2.bf16.msra.mxu0 %v5244_v6  ;;  %3847 = vmatpush2.bf16.msra.mxu1 %v5372_v8  ;;  %v5525_v56 = vld [vmem:[#allocation8 + $0x174] ss:$8 sps:$4 sm:$0xff]   ;;  %v3886_v6 = vsel %vm3870_vm0, %v5954_v32, %v3878_v52  ;;  %v5523_v8 = vld [vmem:[#allocation8 + $0x170] ss:$8 sps:$4 sm:$0xff]   ;;  %v5574_v52 = vld [vmem:[#allocation8 + $0xe0] ss:$8 sps:$4 sm:$0xff]  }
 0x22c   :  { %3807 = vmatprep.subr.bf16.mxu0 %v5237_v9  ;;  %3848 = vmatprep.subr.bf16.mxu1 %v5365_v11  ;;  %v3888_v9 = vsel %vm3872_vm1, %v3537_v57, %v3880_v63  ;;  %v5528_v11 = vld [vmem:[#allocation8 + $0x64] ss:$8 sps:$4 sm:$0xff]   ;;  %v3894_v12 = vpack.c.bf16 %v3886_v6, %v3886_v6  ;;  %v5534_v19 = vld [vmem:[#allocation8 + $0x54] ss:$8 sps:$4 sm:$0xff]   ;;  %v5568_v57 = vld [vmem:[#allocation8 + $0xf0] ss:$8 sps:$4 sm:$0xff]  }
 0x22d   :  { %v5561_v45 = vld [vmem:[#allocation8 + $0x114] ss:$8 sps:$4 sm:$0xff]   ;;  %v5589_v6 = vld [vmem:[#allocation8 + $0x1c0] ss:$8 sps:$4 sm:$0xff]  }
 0x22e   :  { %v5570_v54 = vld [vmem:[#allocation8 + $0xf4] ss:$8 sps:$4 sm:$0xff]  }
 0x22f   :  { %3808 = vmatpush2.bf16.msra.mxu0 %v5236_v14  ;;  %3849 = vmatpush2.bf16.msra.mxu1 %v5364_v15  ;;  %v3896_v15 = vpack.c.bf16 %v3888_v9, %v3888_v9  ;;  %v5582_v62 = vld [vmem:[#allocation8 + $0xd4] ss:$8 sps:$4 sm:$0xff]  }
 0x230   :  { %3809 = vmatprep.subr.bf16.mxu0 %v5229_v17  ;;  %3850 = vmatprep.subr.bf16.mxu1 %v5357_v18  ;;  %v5526_v17 = vld [vmem:[#allocation8 + $0x60] ss:$8 sps:$4 sm:$0xff]   ;;  %v5585_v63 = vld [vmem:[#allocation8 + $0x1d4] ss:$8 sps:$4 sm:$0xff]  }
 0x231   :  { %v5529_v18 = vld [vmem:[#allocation8 + $0x160] ss:$8 sps:$4 sm:$0xff]   ;;  %v5597_v9 = vld [vmem:[#allocation8 + $0x1b4] ss:$8 sps:$4 sm:$0xff]  }
 0x233   :  { %3810 = vmatpush2.bf16.msra.mxu0 %v5228_v26  ;;  %3851 = vmatpush2.bf16.msra.mxu1 %v5356_v27 }
 0x234   :  { %3811 = vmatprep.subr.bf16.mxu0 %v5221_v36  ;;  %3852 = vmatprep.subr.bf16.mxu1 %v5349_v29  ;;  %v5535_v36 = vld [vmem:[#allocation8 + $0x150] ss:$8 sps:$4 sm:$0xff]   ;;  %v5540_v29 = vld [vmem:[#allocation8 + $0x44] ss:$8 sps:$4 sm:$0xff]  }
 0x237   :  { %3812 = vmatpush2.bf16.msra.mxu0 %v5220_v35  ;;  %3853 = vmatpush2.bf16.msra.mxu1 %v5348_v47  ;;  %v5546_v35 = vld [vmem:[#allocation8 + $0x34] ss:$8 sps:$4 sm:$0xff]  }
 0x238   :  { %3813 = vmatprep.subr.bf16.mxu0 %v5213_v59  ;;  %3854 = vmatprep.subr.bf16.mxu1 %v5341_v37  ;;  %v5549_v47 = vld [vmem:[#allocation8 + $0x134] ss:$8 sps:$4 sm:$0xff]   ;;  %v5544_v59 = vld [vmem:[#allocation8 + $0x30] ss:$8 sps:$4 sm:$0xff]  }
 0x239   :  { %v5547_v37 = vld [vmem:[#allocation8 + $0x130] ss:$8 sps:$4 sm:$0xff]  }
 0x23b   :  { %3814 = vmatpush2.bf16.msra.mxu0 %v5212_v44  ;;  %3855 = vmatpush2.bf16.msra.mxu1 %v5340_v46  ;;  %v5558_v44 = vld [vmem:[#allocation8 + $0x14] ss:$8 sps:$4 sm:$0xff]   ;;  %v5556_v46 = vld [vmem:[#allocation8 + $0x10] ss:$8 sps:$4 sm:$0xff]  }
 0x23c   :  { %3815 = vmatprep.subr.bf16.mxu0 %v5205_v48  ;;  %3856 = vmatprep.subr.bf16.mxu1 %v5333_v49  ;;  %v5559_v48 = vld [vmem:[#allocation8 + $0x110] ss:$8 sps:$4 sm:$0xff]   ;;  %v5564_v49 = vld [vmem:[#allocation8 + $0x4] ss:$8 sps:$4 sm:$0xff]  }
 0x23f   :  { %3816 = vmatpush2.bf16.msra.mxu0 %v5204_v16  ;;  %3857 = vmatpush2.bf16.msra.mxu1 %v5332_v61  ;;  %v5573_v16 = vld [vmem:[#allocation8 + $0x1f4] ss:$8 sps:$4 sm:$0xff]   ;;  %v5571_v61 = vld [vmem:[#allocation8 + $0x1f0] ss:$8 sps:$4 sm:$0xff]  }
 0x240   :  { %3817 = vmatprep.subr.bf16.mxu0 %v5197_v7  ;;  %3858 = vmatprep.subr.bf16.mxu1 %v5325_v23  ;;  %v5576_v7 = vld [vmem:[#allocation8 + $0xe4] ss:$8 sps:$4 sm:$0xff]  }
 0x241   :  { %v5579_v23 = vld [vmem:[#allocation8 + $0x1e4] ss:$8 sps:$4 sm:$0xff]  }
 0x243   :  { %3818 = vmatpush2.bf16.msra.mxu0 %v5196_v20  ;;  %3859 = vmatpush2.bf16.msra.mxu1 %v5324_v0  ;;  %v5577_v20 = vld [vmem:[#allocation8 + $0x1e0] ss:$8 sps:$4 sm:$0xff]   ;;  %v5580_v0 = vld [vmem:[#allocation8 + $0xd0] ss:$8 sps:$4 sm:$0xff]  }
 0x244   :  { %4681 = vmatprep.subr.bf16.mxu0 %v5522_v1  ;;  %4722 = vmatprep.subr.bf16.mxu1 %v5525_v56  ;;  %v5583_v1 = vld [vmem:[#allocation8 + $0x1d0] ss:$8 sps:$4 sm:$0xff]   ;;  %v5588_v56 = vld [vmem:[#allocation8 + $0xc4] ss:$8 sps:$4 sm:$0xff]  }
 0x246   :  { %v3575_v28 = vpop.f32.mrf.mxu0  ;;  %3820 = vmatmul.mubr.bf16.vlgmr.msra.gmra.mxu0 %v5914_v38  ;;  %v3616_v14 = vpop.f32.mrf.mxu1  ;;  %3861 = vmatmul.mubr.bf16.vlgmr.msra.gmra.mxu1 %v5916_v39  ;;  %v5537_v38 = vld [vmem:[#allocation8 + $0x154] ss:$8 sps:$4 sm:$0xff]   ;;  %v5532_v39 = vld [vmem:[#allocation8 + $0x50] ss:$8 sps:$4 sm:$0xff]  }
 0x247   :  { %v3576_v13 = vadd.f32 %v3575_v28, %v632_v3  ;;  %4682 = vmatpush1.bf16.msra.mxu0 %v5520_v4  ;;  %4713 = vmatprep.mubr.bf16.mxu0 %v3894_v12  ;;  %v5591_v3 = vld [vmem:[#allocation8 + $0x1c4] ss:$8 sps:$4 sm:$0xff]   ;;  %v5586_v4 = vld [vmem:[#allocation8 + $0xc0] ss:$8 sps:$4 sm:$0xff]   ;;  %v5595_v28 = vld [vmem:[#allocation8 + $0x1b0] ss:$8 sps:$4 sm:$0xff]  }
 0x248   :  { %4723 = vmatpush1.bf16.msra.mxu1 %v5523_v8  ;;  %v5991_v32 = vpop.f32.mrf.mxu0  ;;  %4754 = vmatprep.mubr.bf16.mxu1 %v3896_v15  ;;  %v5995_v24 = vpop.f32.mrf.mxu1  ;;  %v5594_v8 = vld [vmem:[#allocation8 + $0xb4] ss:$8 sps:$4 sm:$0xff]   ;;  %v5600_v12 = vld [vmem:[#allocation8 + $0xa4] ss:$8 sps:$4 sm:$0xff]  }
 0x249   :  { %v5993_v21 = vadd.f32 %v3616_v14, %v3576_v13  ;;  %4683 = vmatprep.subr.bf16.mxu0 %v5528_v11  ;;  %4724 = vmatprep.subr.bf16.mxu1 %v5531_v31  ;;  %v5592_v11 = vld [vmem:[#allocation8 + $0xb0] ss:$8 sps:$4 sm:$0xff]   ;;  %v5603_v31 = vld [vmem:[#allocation8 + $0x1a4] ss:$8 sps:$4 sm:$0xff]   ;;  %v5598_v13 = vld [vmem:[#allocation8 + $0xa0] ss:$8 sps:$4 sm:$0xff]  }
 0x24a   :  { %v3579_v25 = vpop.f32.mrf.mxu0  ;;  %v3620_v26 = vpop.f32.mrf.mxu1  ;;  %v5601_v14 = vld [vmem:[#allocation8 + $0x1a0] ss:$8 sps:$4 sm:$0xff]   ;;  %v5606_v15 = vld [vmem:[#allocation8 + $0x94] ss:$8 sps:$4 sm:$0xff]  }
 0x24b   :  { %4684 = vmatpush1.bf16.msra.mxu0 %v5526_v17  ;;  %v5609_v17 = vld [vmem:[#allocation8 + $0x194] ss:$8 sps:$4 sm:$0xff]   ;;  %v5612_v25 = vld [vmem:[#allocation8 + $0x84] ss:$8 sps:$4 sm:$0xff]   ;;  %v3877_v26 = vmul.f32 0.01, %v5949_v22 }
 0x24c   :  { %4725 = vmatpush1.bf16.msra.mxu1 %v5529_v18  ;;  %v3580_v27 = vpop.f32.mrf.mxu0  ;;  %4685 = vmatprep.subr.bf16.mxu0 %v5534_v19  ;;  %v3621_v30 = vpop.f32.mrf.mxu1  ;;  %v635_v18 = vsub.s32 5, %v5926_v60  ;;  %v5604_v19 = vld [vmem:[#allocation8 + $0x90] ss:$8 sps:$4 sm:$0xff]  }
 0x24d   :  { %4726 = vmatprep.subr.bf16.mxu1 %v5537_v38  ;;  %v5607_v38 = vld [vmem:[#allocation8 + $0x190] ss:$8 sps:$4 sm:$0xff]   ;;  %v3879_v27 = vmul.f32 0.01, %v5973_v55  ;;  %v5613_v30 = vld [vmem:[#allocation8 + $0x180] ss:$8 sps:$4 sm:$0xff]  }
 0x24f   :  { %4686 = vmatpush1.bf16.msra.mxu0 %v5532_v39  ;;  %v5615_v39 = vld [vmem:[#allocation8 + $0x184] ss:$8 sps:$4 sm:$0xff]  }
 0x250   :  { %4727 = vmatpush1.bf16.msra.mxu1 %v5535_v36  ;;  %4687 = vmatprep.subr.bf16.mxu0 %v5540_v29  ;;  %v636_v36 = vrot.slane %v5985_v2, %v635_v18  ;;  %v5610_v29 = vld [vmem:[#allocation8 + $0x80] ss:$8 sps:$4 sm:$0xff]  }
 0x251   :  { %4728 = vmatprep.subr.bf16.mxu1 %v5543_v33  ;;  %v5618_v33 = vld [vmem:[#allocation8 + $0x274] ss:$8 sps:$4 sm:$0xff]   ;;  %v5637_v18 = vld [vmem:[#allocation8 + $0x200] ss:$8 sps:$4 sm:$0xff]  }
 0x253   :  { %4688 = vmatpush1.bf16.msra.mxu0 %v5538_v58  ;;  %v3885_v58 = vsel %vm3869_vm2, %v5949_v22, %v3877_v26  ;;  %v5640_v26 = vld [vmem:[#allocation8 + $0x2f0] ss:$8 sps:$4 sm:$0xff]  }
 0x254   :  { %4729 = vmatpush1.bf16.msra.mxu1 %v5541_v34  ;;  %4689 = vmatprep.subr.bf16.mxu0 %v5546_v35  ;;  %v5666_v34 = vld [vmem:[#allocation8 + $0x374] ss:$8 sps:$4 sm:$0xff]   ;;  %v3887_v35 = vsel %vm3871_vm3, %v5973_v55, %v3879_v27  ;;  %v5619_v55 = vld [vmem:[#allocation8 + $0x260] ss:$8 sps:$4 sm:$0xff]   ;;  %v5688_v27 = vld [vmem:[#allocation8 + $0x3f0] ss:$8 sps:$4 sm:$0xff]  }
 0x255   :  { %4730 = vmatprep.subr.bf16.mxu1 %v5549_v47  ;;  %v3578_v47 = vadd.f32 %v5991_v32, %v636_v36  ;;  %v5693_v36 = vld [vmem:[#allocation8 + $0x3e4] ss:$8 sps:$4 sm:$0xff]  }
 0x257   :  { %4690 = vmatpush1.bf16.msra.mxu0 %v5544_v59  ;;  %v5616_v59 = vld [vmem:[#allocation8 + $0x270] ss:$8 sps:$4 sm:$0xff]   ;;  %v3619_v22 = vadd.f32 %v5995_v24, %v3578_v47 }
 0x258   :  { %4731 = vmatpush1.bf16.msra.mxu1 %v5547_v37  ;;  %4691 = vmatprep.subr.bf16.mxu0 %v5552_v40  ;;  %v3893_v37 = vpack.c.bf16 %v3885_v58, %v3885_v58  ;;  %v5621_v40 = vld [vmem:[#allocation8 + $0x264] ss:$8 sps:$4 sm:$0xff]   ;;  %v5696_v58 = vld [vmem:[#allocation8 + $0x3d4] ss:$8 sps:$4 sm:$0xff]   ;;  %v5694_v47 = vld [vmem:[#allocation8 + $0x3d0] ss:$8 sps:$4 sm:$0xff]  }
 0x259   :  { %4732 = vmatprep.subr.bf16.mxu1 %v5555_v41  ;;  %v5664_v41 = vld [vmem:[#allocation8 + $0x370] ss:$8 sps:$4 sm:$0xff]  }
 0x25b   :  { %4692 = vmatpush1.bf16.msra.mxu0 %v5550_v42  ;;  %v3895_v42 = vpack.c.bf16 %v3887_v35, %v3887_v35  ;;  %v5651_v35 = vld [vmem:[#allocation8 + $0x2c4] ss:$8 sps:$4 sm:$0xff]  }
 0x25c   :  { %4733 = vmatpush1.bf16.msra.mxu1 %v5553_v43  ;;  %4693 = vmatprep.subr.bf16.mxu0 %v5558_v44  ;;  %v5669_v43 = vld [vmem:[#allocation8 + $0x364] ss:$8 sps:$4 sm:$0xff]  }
 0x25d   :  { %4734 = vmatprep.subr.bf16.mxu1 %v5561_v45 }
 0x25f   :  { %4694 = vmatpush1.bf16.msra.mxu0 %v5556_v46  ;;  %v5624_v46 = vld [vmem:[#allocation8 + $0x254] ss:$8 sps:$4 sm:$0xff]  }
 0x260   :  { %4735 = vmatpush1.bf16.msra.mxu1 %v5559_v48  ;;  %4695 = vmatprep.subr.bf16.mxu0 %v5564_v49  ;;  %v5667_v48 = vld [vmem:[#allocation8 + $0x360] ss:$8 sps:$4 sm:$0xff]  }
 0x261   :  { %4736 = vmatprep.subr.bf16.mxu1 %v5567_v50 }
 0x263   :  { %4696 = vmatpush1.bf16.msra.mxu0 %v5562_v51  ;;  %v5672_v51 = vld [vmem:[#allocation8 + $0x354] ss:$8 sps:$4 sm:$0xff]  }
 0x264   :  { %4737 = vmatpush1.bf16.msra.mxu1 %v5565_v53  ;;  %4697 = vmatprep.subr.bf16.mxu0 %v5570_v54 }
 0x265   :  { %4738 = vmatprep.subr.bf16.mxu1 %v5573_v16 }
 0x267   :  { %4698 = vmatpush2.bf16.msra.mxu0 %v5568_v57  ;;  %v5622_v57 = vld [vmem:[#allocation8 + $0x250] ss:$8 sps:$4 sm:$0xff]  }
 0x268   :  { %4739 = vmatpush2.bf16.msra.mxu1 %v5571_v61  ;;  %4699 = vmatprep.subr.bf16.mxu0 %v5576_v7  ;;  %v5627_v61 = vld [vmem:[#allocation8 + $0x244] ss:$8 sps:$4 sm:$0xff]   ;;  %v5670_v7 = vld [vmem:[#allocation8 + $0x350] ss:$8 sps:$4 sm:$0xff]  }
 0x269   :  { %4740 = vmatprep.subr.bf16.mxu1 %v5579_v23 }
 0x26b   :  { %4700 = vmatpush2.bf16.msra.mxu0 %v5574_v52 }
 0x26c   :  { %4741 = vmatpush2.bf16.msra.mxu1 %v5577_v20  ;;  %4701 = vmatprep.subr.bf16.mxu0 %v5582_v62  ;;  %v5675_v20 = vld [vmem:[#allocation8 + $0x344] ss:$8 sps:$4 sm:$0xff]   ;;  %v5625_v62 = vld [vmem:[#allocation8 + $0x240] ss:$8 sps:$4 sm:$0xff]  }
 0x26d   :  { %4742 = vmatprep.subr.bf16.mxu1 %v5585_v63 }
 0x26f   :  { %4702 = vmatpush2.bf16.msra.mxu0 %v5580_v0 }
 0x270   :  { %4743 = vmatpush2.bf16.msra.mxu1 %v5583_v1  ;;  %4703 = vmatprep.subr.bf16.mxu0 %v5588_v56  ;;  %v5630_v1 = vld [vmem:[#allocation8 + $0x234] ss:$8 sps:$4 sm:$0xff]   ;;  %v5673_v56 = vld [vmem:[#allocation8 + $0x340] ss:$8 sps:$4 sm:$0xff]  }
 0x271   :  { %4744 = vmatprep.subr.bf16.mxu1 %v5591_v3  ;;  %v5678_v3 = vld [vmem:[#allocation8 + $0x334] ss:$8 sps:$4 sm:$0xff]  }
 0x273   :  { %4704 = vmatpush2.bf16.msra.mxu0 %v5586_v4  ;;  %v5628_v4 = vld [vmem:[#allocation8 + $0x230] ss:$8 sps:$4 sm:$0xff]  }
 0x274   :  { %4745 = vmatpush2.bf16.msra.mxu1 %v5589_v6  ;;  %4705 = vmatprep.subr.bf16.mxu0 %v5594_v8  ;;  %v5633_v6 = vld [vmem:[#allocation8 + $0x224] ss:$8 sps:$4 sm:$0xff]   ;;  %v5676_v8 = vld [vmem:[#allocation8 + $0x330] ss:$8 sps:$4 sm:$0xff]  }
 0x275   :  { %4746 = vmatprep.subr.bf16.mxu1 %v5597_v9  ;;  %v5681_v9 = vld [vmem:[#allocation8 + $0x324] ss:$8 sps:$4 sm:$0xff]  }
 0x277   :  { %4706 = vmatpush2.bf16.msra.mxu0 %v5592_v11  ;;  %v5631_v11 = vld [vmem:[#allocation8 + $0x220] ss:$8 sps:$4 sm:$0xff]  }
 0x278   :  { %4747 = vmatpush2.bf16.msra.mxu1 %v5595_v28  ;;  %4707 = vmatprep.subr.bf16.mxu0 %v5600_v12  ;;  %v5636_v28 = vld [vmem:[#allocation8 + $0x214] ss:$8 sps:$4 sm:$0xff]   ;;  %v5679_v12 = vld [vmem:[#allocation8 + $0x320] ss:$8 sps:$4 sm:$0xff]  }
 0x279   :  { %4748 = vmatprep.subr.bf16.mxu1 %v5603_v31  ;;  %v5684_v31 = vld [vmem:[#allocation8 + $0x314] ss:$8 sps:$4 sm:$0xff]  }
 0x27b   :  { %4708 = vmatpush2.bf16.msra.mxu0 %v5598_v13  ;;  %v5634_v13 = vld [vmem:[#allocation8 + $0x210] ss:$8 sps:$4 sm:$0xff]  }
 0x27c   :  { %4749 = vmatpush2.bf16.msra.mxu1 %v5601_v14  ;;  %4709 = vmatprep.subr.bf16.mxu0 %v5606_v15  ;;  %v5639_v14 = vld [vmem:[#allocation8 + $0x204] ss:$8 sps:$4 sm:$0xff]   ;;  %v5682_v15 = vld [vmem:[#allocation8 + $0x310] ss:$8 sps:$4 sm:$0xff]  }
 0x27d   :  { %4750 = vmatprep.subr.bf16.mxu1 %v5609_v17  ;;  %v5687_v17 = vld [vmem:[#allocation8 + $0x304] ss:$8 sps:$4 sm:$0xff]  }
 0x27f   :  { %4710 = vmatpush2.bf16.msra.mxu0 %v5604_v19  ;;  %v5642_v19 = vld [vmem:[#allocation8 + $0x2f4] ss:$8 sps:$4 sm:$0xff]  }
 0x280   :  { %4751 = vmatpush2.bf16.msra.mxu1 %v5607_v38  ;;  %4711 = vmatprep.subr.bf16.mxu0 %v5612_v25  ;;  %v5685_v38 = vld [vmem:[#allocation8 + $0x300] ss:$8 sps:$4 sm:$0xff]   ;;  %v5690_v25 = vld [vmem:[#allocation8 + $0x3f4] ss:$8 sps:$4 sm:$0xff]  }
 0x281   :  { %4752 = vmatprep.subr.bf16.mxu1 %v5615_v39  ;;  %v5645_v39 = vld [vmem:[#allocation8 + $0x2e4] ss:$8 sps:$4 sm:$0xff]  }
 0x283   :  { %4712 = vmatpush2.bf16.msra.mxu0 %v5610_v29  ;;  %v5643_v29 = vld [vmem:[#allocation8 + $0x2e0] ss:$8 sps:$4 sm:$0xff]  }
 0x284   :  { %4753 = vmatpush2.bf16.msra.mxu1 %v5613_v30  ;;  %4763 = vmatprep.subr.bf16.mxu0 %v5618_v33  ;;  %v5648_v30 = vld [vmem:[#allocation8 + $0x2d4] ss:$8 sps:$4 sm:$0xff]   ;;  %v5691_v33 = vld [vmem:[#allocation8 + $0x3e0] ss:$8 sps:$4 sm:$0xff]  }
 0x285   :  { %4804 = vmatprep.subr.bf16.mxu1 %v5666_v34  ;;  %v5646_v34 = vld [vmem:[#allocation8 + $0x2d0] ss:$8 sps:$4 sm:$0xff]  }
 0x286   :  { %v6006_v44 = vpop.f32.mrf.mxu0  ;;  %4714 = vmatmul.mubr.bf16.vlgmr.msra.gmra.mxu0 %v3893_v37  ;;  %v6009_v45 = vpop.f32.mrf.mxu1  ;;  %v5649_v37 = vld [vmem:[#allocation8 + $0x2c0] ss:$8 sps:$4 sm:$0xff]  }
 0x287   :  { %4755 = vmatmul.mubr.bf16.vlgmr.msra.gmra.mxu1 %v3895_v42  ;;  %4764 = vmatpush1.bf16.msra.mxu0 %v5616_v59  ;;  %v5699_v59 = vld [vmem:[#allocation8 + $0x3c4] ss:$8 sps:$4 sm:$0xff]   ;;  %v5702_v42 = vld [vmem:[#allocation8 + $0x3b4] ss:$8 sps:$4 sm:$0xff]  }
 0x288   :  { %v3659_v32 = vpop.f32.mrf.mxu0  ;;  %4765 = vmatprep.subr.bf16.mxu0 %v5621_v40  ;;  %4805 = vmatpush1.bf16.msra.mxu1 %v5664_v41  ;;  %v3700_v50 = vpop.f32.mrf.mxu1  ;;  %v5654_v40 = vld [vmem:[#allocation8 + $0x2b4] ss:$8 sps:$4 sm:$0xff]   ;;  %v5697_v41 = vld [vmem:[#allocation8 + $0x3c0] ss:$8 sps:$4 sm:$0xff]  }
 0x289   :  { %v3660_v49 = vadd.f32 %v3659_v32, %v3619_v22  ;;  %4806 = vmatprep.subr.bf16.mxu1 %v5669_v43  ;;  %v5652_v43 = vld [vmem:[#allocation8 + $0x2b0] ss:$8 sps:$4 sm:$0xff]   ;;  %v5657_v22 = vld [vmem:[#allocation8 + $0x2a4] ss:$8 sps:$4 sm:$0xff]   ;;  %v3658_v32 = vadd.f32 %v6006_v44, %v5993_v21  ;;  %v5661_v44 = vld [vmem:[#allocation8 + $0x280] ss:$8 sps:$4 sm:$0xff]  }
 0x28a   :  { %v3661_v53 = vpop.f32.mrf.mxu0  ;;  %v3702_v16 = vpop.f32.mrf.mxu1  ;;  %v5711_v21 = vld [vmem:[#allocation8 + $0x384] ss:$8 sps:$4 sm:$0xff]  }
 0x28b   :  { %v3701_v54 = vadd.f32 %v3700_v50, %v3660_v49  ;;  %4766 = vmatpush1.bf16.msra.mxu0 %v5619_v55  ;;  %v5700_v55 = vld [vmem:[#allocation8 + $0x3b0] ss:$8 sps:$4 sm:$0xff]   ;;  %v5660_v49 = vld [vmem:[#allocation8 + $0x294] ss:$8 sps:$4 sm:$0xff]   ;;  %v5703_v50 = vld [vmem:[#allocation8 + $0x3a0] ss:$8 sps:$4 sm:$0xff]  }
 0x28c   :  { %v3662_v24 = vpop.f32.mrf.mxu0  ;;  %4767 = vmatprep.subr.bf16.mxu0 %v5624_v46  ;;  %4807 = vmatpush1.bf16.msra.mxu1 %v5667_v48  ;;  %v3703_v52 = vpop.f32.mrf.mxu1  ;;  %v5705_v46 = vld [vmem:[#allocation8 + $0x3a4] ss:$8 sps:$4 sm:$0xff]   ;;  %v5655_v48 = vld [vmem:[#allocation8 + $0x2a0] ss:$8 sps:$4 sm:$0xff]   ;;  %v5708_v53 = vld [vmem:[#allocation8 + $0x394] ss:$8 sps:$4 sm:$0xff]  }
 0x28d   :  { %vm3874_vm4 = vcmp.gt.f32.partialorder %v3701_v54, 0.0  ;;  %v3882_v23 = vmul.f32 0.01, %v3701_v54  ;;  %4808 = vmatprep.subr.bf16.mxu1 %v5672_v51  ;;  %v3699_v51 = vadd.f32 %v6009_v45, %v3658_v32  ;;  %v5663_v16 = vld [vmem:[#allocation8 + $0x284] ss:$8 sps:$4 sm:$0xff]  }
 0x28f   :  { %4768 = vmatpush1.bf16.msra.mxu0 %v5622_v57  ;;  %v3890_v63 = vsel %vm3874_vm4, %v3701_v54, %v3882_v23  ;;  %v5658_v54 = vld [vmem:[#allocation8 + $0x290] ss:$8 sps:$4 sm:$0xff]   ;;  %v3881_v24 = vmul.f32 0.01, %v3699_v51  ;;  %vm3873_vm5 = vcmp.gt.f32.partialorder %v3699_v51, 0.0 }
 0x290   :  { %4769 = vmatprep.subr.bf16.mxu0 %v5627_v61  ;;  %v3898_v0 = vpack.c.bf16 %v3890_v63, %v3890_v63  ;;  %4809 = vmatpush1.bf16.msra.mxu1 %v5670_v7  ;;  %v5706_v57 = vld [vmem:[#allocation8 + $0x390] ss:$8 sps:$4 sm:$0xff]   ;;  %v5709_v61 = vld [vmem:[#allocation8 + $0x380] ss:$8 sps:$4 sm:$0xff]  }
 0x291   :  { %4810 = vmatprep.subr.bf16.mxu1 %v5675_v20  ;;  %v3889_v7 = vsel %vm3873_vm5, %v3699_v51, %v3881_v24 }
 0x292   :  { %4795 = vmatprep.mubr.bf16.mxu0 %v3898_v0  ;;  %v3897_v45 = vpack.c.bf16 %v3889_v7, %v3889_v7 }
 0x293   :  { %4770 = vmatpush1.bf16.msra.mxu0 %v5625_v62 }
 0x294   :  { %4771 = vmatprep.subr.bf16.mxu0 %v5630_v1  ;;  %4811 = vmatpush1.bf16.msra.mxu1 %v5673_v56 }
 0x295   :  { %4812 = vmatprep.subr.bf16.mxu1 %v5678_v3  ;;  %v639_v3 = vsub.s32 6, %v5926_v60 }
 0x297   :  { %4772 = vmatpush1.bf16.msra.mxu0 %v5628_v4  ;;  %v643_v4 = vsub.s32 7, %v5926_v60 }
 0x298   :  { %4773 = vmatprep.subr.bf16.mxu0 %v5633_v6  ;;  %4813 = vmatpush1.bf16.msra.mxu1 %v5676_v8  ;;  %v640_v6 = vrot.slane %v5985_v2, %v639_v3 }
 0x299   :  { %4814 = vmatprep.subr.bf16.mxu1 %v5681_v9  ;;  %v644_v8 = vrot.slane %v5985_v2, %v643_v4 }
 0x29b   :  { %4774 = vmatpush1.bf16.msra.mxu0 %v5631_v11 }
 0x29c   :  { %4775 = vmatprep.subr.bf16.mxu0 %v5636_v28  ;;  %4815 = vmatpush1.bf16.msra.mxu1 %v5679_v12 }
 0x29d   :  { %4816 = vmatprep.subr.bf16.mxu1 %v5684_v31 }
 0x29f   :  { %4776 = vmatpush1.bf16.msra.mxu0 %v5634_v13 }
 0x2a0   :  { %4777 = vmatprep.subr.bf16.mxu0 %v5639_v14  ;;  %4817 = vmatpush1.bf16.msra.mxu1 %v5682_v15 }
 0x2a1   :  { %4818 = vmatprep.subr.bf16.mxu1 %v5687_v17 }
 0x2a3   :  { %4778 = vmatpush1.bf16.msra.mxu0 %v5637_v18 }
 0x2a4   :  { %4779 = vmatprep.subr.bf16.mxu0 %v5642_v19  ;;  %4819 = vmatpush1.bf16.msra.mxu1 %v5685_v38 }
 0x2a5   :  { %4820 = vmatprep.subr.bf16.mxu1 %v5690_v25 }
 0x2a7   :  { %4780 = vmatpush2.bf16.msra.mxu0 %v5640_v26 }
 0x2a8   :  { %4781 = vmatprep.subr.bf16.mxu0 %v5645_v39  ;;  %4821 = vmatpush2.bf16.msra.mxu1 %v5688_v27 }
 0x2a9   :  { %4822 = vmatprep.subr.bf16.mxu1 %v5693_v36 }
 0x2ab   :  { %4782 = vmatpush2.bf16.msra.mxu0 %v5643_v29 }
 0x2ac   :  { %4783 = vmatprep.subr.bf16.mxu0 %v5648_v30  ;;  %4823 = vmatpush2.bf16.msra.mxu1 %v5691_v33 }
 0x2ad   :  { %4824 = vmatprep.subr.bf16.mxu1 %v5696_v58 }
 0x2af   :  { %4784 = vmatpush2.bf16.msra.mxu0 %v5646_v34  ;;  %v4029_v34 = vld [vmem:[#allocation10] sm:$0x3] }
 0x2b0   :  { %4785 = vmatprep.subr.bf16.mxu0 %v5651_v35  ;;  %4825 = vmatpush2.bf16.msra.mxu1 %v5694_v47  ;;  %v4034_v35 = vrot.slane %v4029_v34, %v615_v5  ;;  %v4038_v47 = vrot.slane %v4029_v34, %v619_v10 }
 0x2b1   :  { %4826 = vmatprep.subr.bf16.mxu1 %v5699_v59 }
 0x2b3   :  { %4786 = vmatpush2.bf16.msra.mxu0 %v5649_v37 }
 0x2b4   :  { %4787 = vmatprep.subr.bf16.mxu0 %v5654_v40  ;;  %4827 = vmatpush2.bf16.msra.mxu1 %v5697_v41 }
 0x2b5   :  { %4828 = vmatprep.subr.bf16.mxu1 %v5702_v42 }
 0x2b7   :  { %4788 = vmatpush2.bf16.msra.mxu0 %v5652_v43 }
 0x2b8   :  { %4789 = vmatprep.subr.bf16.mxu0 %v5657_v22  ;;  %4829 = vmatpush2.bf16.msra.mxu1 %v5700_v55 }
 0x2b9   :  { %4830 = vmatprep.subr.bf16.mxu1 %v5705_v46 }
 0x2bb   :  { %4790 = vmatpush2.bf16.msra.mxu0 %v5655_v48 }
 0x2bc   :  { %4791 = vmatprep.subr.bf16.mxu0 %v5660_v49  ;;  %4831 = vmatpush2.bf16.msra.mxu1 %v5703_v50 }
 0x2bd   :  { %4832 = vmatprep.subr.bf16.mxu1 %v5708_v53 }
 0x2bf   :  { %4792 = vmatpush2.bf16.msra.mxu0 %v5658_v54 }
 0x2c0   :  { %4793 = vmatprep.subr.bf16.mxu0 %v5663_v16  ;;  %4833 = vmatpush2.bf16.msra.mxu1 %v5706_v57 }
 0x2c1   :  { %4834 = vmatprep.subr.bf16.mxu1 %v5711_v21 }
 0x2c3   :  { %4794 = vmatpush2.bf16.msra.mxu0 %v5661_v44 }
 0x2c4   :  { %4835 = vmatpush2.bf16.msra.mxu1 %v5709_v61 }
 0x2c6   :  { %v3739_v23 = vpop.f32.mrf.mxu0  ;;  %4796 = vmatmul.mubr.bf16.vlgmr.msra.gmra.mxu0 %v3897_v45  ;;  %v3780_v52 = vpop.f32.mrf.mxu1 }
 0x2c7   :  { %v3740_v9 = vadd.f32 %v3739_v23, %v640_v6 }
 0x2c8   :  { %v3741_v20 = vpop.f32.mrf.mxu0  ;;  %v3782_v62 = vpop.f32.mrf.mxu1 }
 0x2c9   :  { %v3742_v11 = vadd.f32 %v3741_v20, %v644_v8  ;;  %v3781_v28 = vadd.f32 %v3780_v52, %v3740_v9 }
 0x2ca   :  { %v3743_v63 = vpop.f32.mrf.mxu0  ;;  %v3784_v0 = vpop.f32.mrf.mxu1 }
 0x2cb   :  { %v3783_v31 = vadd.f32 %v3782_v62, %v3742_v11 }
 0x2cc   :  { %v3744_v1 = vpop.f32.mrf.mxu0  ;;  %v3785_v56 = vpop.f32.mrf.mxu1 }
 0x306   :  { %v3821_v12 = vpop.f32.mrf.mxu0  ;;  %v3862_v14 = vpop.f32.mrf.mxu1 }
 0x307   :  { %v3822_v13 = vadd.f32 %v3821_v12, %v3781_v28 }
 0x308   :  { %v3823_v15 = vpop.f32.mrf.mxu0  ;;  %v3864_v19 = vpop.f32.mrf.mxu1 }
 0x309   :  { %v3863_v17 = vadd.f32 %v3862_v14, %v3822_v13  ;;  %v3824_v18 = vadd.f32 %v3823_v15, %v3783_v31 }
 0x30a   :  { %v3825_v38 = vpop.f32.mrf.mxu0  ;;  %v3866_v39 = vpop.f32.mrf.mxu1 }
 0x30b   :  { %vm3875_vm6 = vcmp.gt.f32.partialorder %v3863_v17, 0.0  ;;  %v3883_v25 = vmul.f32 0.01, %v3863_v17  ;;  %v3865_v26 = vadd.f32 %v3864_v19, %v3824_v18 }
 0x30c   :  { %v3826_v27 = vpop.f32.mrf.mxu0  ;;  %v3867_v2 = vpop.f32.mrf.mxu1 }
 0x30d   :  { %vm3876_vm7 = vcmp.gt.f32.partialorder %v3865_v26, 0.0  ;;  %v3884_v36 = vmul.f32 0.01, %v3865_v26  ;;  %v3891_v29 = vsel %vm3875_vm6, %v3863_v17, %v3883_v25 }
 0x30e   :  { %v3899_v58 = vpack.c.bf16 %v3891_v29, %v3891_v29 }
 0x30f   :  { %v3892_v30 = vsel %vm3876_vm7, %v3865_v26, %v3884_v36 }
 0x310   :  { %v3900_v33 = vpack.c.bf16 %v3892_v30, %v3892_v30 }
 0x312   :  { %4836 = vmatprep.mubr.bf16.mxu1 %v3900_v33 }
 0x313   :  { %4837 = vmatmul.mubr.bf16.vlgmr.msra.gmra.mxu1 %v3899_v58 }
 0x346   :  { %v4715_v59 = vpop.f32.mrf.mxu0 }
 0x347   :  { %v4716_v37 = vadd.f32 %v4715_v59, %v4034_v35  ;;  %v4756_v40 = vpop.f32.mrf.mxu1 }
 0x348   :  { %v4717_v41 = vpop.f32.mrf.mxu0 }
 0x349   :  { %v4757_v42 = vadd.f32 %v4756_v40, %v4716_v37  ;;  %v4718_v43 = vadd.f32 %v4717_v41, %v4038_v47  ;;  %v4758_v22 = vpop.f32.mrf.mxu1 }
 0x34a   :  { %v4719_v55 = vpop.f32.mrf.mxu0 }
 0x34b   :  { %v4759_v32 = vadd.f32 %v4758_v22, %v4718_v43  ;;  %v4760_v46 = vpop.f32.mrf.mxu1 }
 0x34c   :  { %v4720_v48 = vpop.f32.mrf.mxu0 }
 0x34d   :  { %v4761_v49 = vpop.f32.mrf.mxu1 }
 0x386   :  { %v4797_v50 = vpop.f32.mrf.mxu0 }
 0x387   :  { %v4798_v51 = vadd.f32 %v4797_v50, %v4757_v42 }
 0x388   :  { %v4799_v53 = vpop.f32.mrf.mxu0 }
 0x389   :  { %v4800_v54 = vadd.f32 %v4799_v53, %v4759_v32 }
 0x38a   :  { %v4801_v5 = vpop.f32.mrf.mxu0 }
 0x38c   :  { %v4802_v16 = vpop.f32.mrf.mxu0 }
 0x3d3   :  { %v4838_v60 = vpop.f32.mrf.mxu1 }
 0x3d4   :  { %v4839_v10 = vadd.f32 %v4838_v60, %v4798_v51 }
 0x3d5   :  { %v4840_v57 = vpop.f32.mrf.mxu1 }
 0x3d6   :  { %vm4845_vm8 = vcmp.gt.f32.partialorder %v4839_v10, 0.0  ;;  %v4847_v24 = vmul.f32 0.01, %v4839_v10  ;;  %v4841_v21 = vadd.f32 %v4840_v57, %v4800_v54 }
 0x3d7   :  { %v4842_v44 = vpop.f32.mrf.mxu1 }
 0x3d8   :  { %vm4846_vm9 = vcmp.gt.f32.partialorder %v4841_v21, 0.0  ;;  %v4848_v61 = vmul.f32 0.01, %v4841_v21  ;;  %v4849_v7 = vsel %vm4845_vm8, %v4839_v10, %v4847_v24 }
 0x3d9   :  { %v4843_v45 = vpop.f32.mrf.mxu1  ;;  %4851 = vst [vmem:[#allocation11] sm:$0xff] %v4849_v7 }
 0x3da   :  { %v4850_v23 = vsel %vm4846_vm9, %v4841_v21, %v4848_v61 }
 0x3db   :  { %4852 = vst [vmem:[#allocation11 + $0x8] sm:$0xff] %v4850_v23 }
 0x3dc   :  { %5824 = shalt.err (!%p5821_p1)
}
 0x3dd   :  { %4862 = dma.vmem_to_hbm [thread:$0]  %s4860_s4, 256, %s6030_s5, [#allocation4]  }
 0x3de   :  { %5839 = dma.done.wait [#allocation4], 256  }
 0x3df   :  { %5840 = vsyncadd [#allocation4], 4294967040 }
 0x3e0   :  { %4866 = vsyncpa [#allocation3], 1 }
 0x3e1   :  { %4867 = vsyncpa [#allocation6], 1 }
 0x3e2   :  { %4868 = vsyncpa [#allocation9], 1 }
 0x3e3   :  { %4869 = vsyncpa [#allocation4], 1 }

</bundles_post_ra>
